<compile_context>
chip_gen: v7x
topology: tpu7x:2x2x1
jax: 0.10.0
libtpu: 0.0.40
codegen_flags: <defaults>
</compile_context>

<pallas_src>
import functools

import jax
import jax.numpy as jnp
from jax import lax
from jax.experimental import pallas as pl
from jax.experimental.pallas import tpu as pltpu


def _round_up(x, m):
    return ((x + m - 1) // m) * m


def _vmem_limit_bytes():
    """Explicit scoped-VMEM limit: ~3/4 of physical, capped at 100 MiB
    (v5e/v6e: 128 MiB physical -> ~96 MiB; v7x: 64 MiB -> 48 MiB)."""
    try:
        phys = pltpu.get_tpu_info().vmem_capacity_bytes
    except Exception:
        phys = 64 << 20  # conservative default (v7x-sized)
    return int(min(phys * 3 // 4, 100 << 20))


def _pick_time_chunk(T, Bb, Hp, vmem_budget):
    """Largest time chunk whose double-buffered bf16 gate slab (+ weights and
    state) fits the VMEM budget.  Conservatively budgets W_hh^T at 2 buffers
    so the Buffered(1)-unsupported fallback path also fits."""
    gate_step_bytes = Bb * 4 * Hp * 2           # bf16 gate pre-activations
    fixed = 2 * (Hp * 4 * Hp * 2)               # W_hh^T (worst case 2 bufs, bf16)
    fixed += 2 * (Bb * Hp * 4)                  # h, c scratch (f32)
    fixed += 2 * (Bb * Hp * 4)                  # h_last output block (2 bufs, f32)
    avail = vmem_budget - fixed
    tc = max(1, avail // (2 * gate_step_bytes))  # gates double-buffered
    tc = int(min(tc, T, 128))
    if tc > 8:
        tc = (tc // 8) * 8                       # keep the unroll-by-8 loop even
    return tc


def _lstm_recurrence_kernel(gates_ref, whh_ref, hlast_ref, h_ref, c_ref, *,
                            hidden_p, chunk, unroll):
    """Grid = (batch_blocks, time_chunks); one invocation advances `chunk` steps.

    gates_ref : (chunk, Bb, 4*Hp) bf16  precomputed x@W_ih^T + bias
    whh_ref   : (Hp, 4*Hp)        bf16  W_hh^T (constant, single-buffered)
    hlast_ref : (Bb, Hp)          f32   h at the final timestep (lane-dense)
    h_ref/c_ref: (Bb, Hp)         f32   recurrent state, persists across chunks
    """
    Hp = hidden_p
    t = pl.program_id(1)

    @pl.when(t == 0)
    def _():
        h_ref[...] = jnp.zeros_like(h_ref)
        c_ref[...] = jnp.zeros_like(c_ref)

    w_hh = whh_ref[...]  # constant across the chunk; hoisted out of the loop

    def sig(z):
        # sigmoid via tanh: 1 native EUP op instead of exp + reciprocal.
        return 0.5 * (jnp.tanh(0.5 * z) + 1.0)

    def step(j, carry):
        h, c = carry
        # Only the recurrent matmul stays inside the sequential loop; bf16
        # operands on the MXU, f32 accumulation.
        g = gates_ref[j].astype(jnp.float32) + jnp.dot(
            h.astype(jnp.bfloat16), w_hh, preferred_element_type=jnp.float32)
        # PyTorch gate ordering: input, forget, cell(g), output.
        i_g = sig(g[:, 0 * Hp:1 * Hp])
        f_g = sig(g[:, 1 * Hp:2 * Hp])
        g_g = jnp.tanh(g[:, 2 * Hp:3 * Hp])
        o_g = sig(g[:, 3 * Hp:4 * Hp])
        c = f_g * c + i_g * g_g
        h = o_g * jnp.tanh(c)
        return h, c

    h, c = lax.fori_loop(0, chunk, step, (h_ref[...], c_ref[...]),
                         unroll=unroll)
    h_ref[...] = h
    c_ref[...] = c

    @pl.when(t == pl.num_programs(1) - 1)
    def _():
        hlast_ref[...] = h


def lstm_discriminator_forward(x, params):
    """x: [B, T, D] (batch_first, like the PyTorch module). Returns [B, 1]."""
    B, T, D = x.shape
    w_ih = params["weight_ih"].astype(jnp.float32)     # [4H, D]
    w_hh = params["weight_hh"].astype(jnp.float32)     # [4H, H]
    bias = (params["bias_ih"] + params["bias_hh"]).astype(jnp.float32)  # [4H]
    fc_w = params["fc_weight"].astype(jnp.float32)     # [1, H]
    fc_b = params["fc_bias"].astype(jnp.float32)       # [1]
    H = w_hh.shape[1]

    # ---- alignment: lane-pad hidden; sublane-pad batch (16 for bf16) --------
    Hp = _round_up(H, 128)
    if B <= 16:
        Bb = 16
    else:
        # Split batch across >= 2 blocks so both v7x TensorCores get work.
        Bb = min(128, _round_up(-(-B // 2), 16))
    Bp = _round_up(B, Bb)
    nb = Bp // Bb

    vmem_limit = _vmem_limit_bytes()
    Tc = _pick_time_chunk(T, Bb, Hp, int(vmem_limit * 0.8))
    nt = -(-T // Tc)
    Tp = nt * Tc

    # Transposed, per-gate lane-padded weight layouts:
    #   wih_t[d, g*Hp + j] = W_ih[g*H + j, d]   (zero for j >= H)
    #   whh_t[k, g*Hp + j] = W_hh[g*H + j, k]   (zero for j >= H or k >= H)
    wih_t = jnp.zeros((D, 4, Hp), jnp.float32)
    wih_t = wih_t.at[:, :, :H].set(w_ih.reshape(4, H, D).transpose(2, 0, 1))
    wih_t = wih_t.reshape(D, 4 * Hp)

    whh_t = jnp.zeros((Hp, 4, Hp), jnp.float32)
    whh_t = whh_t.at[:H, :, :H].set(w_hh.reshape(4, H, H).transpose(2, 0, 1))
    whh_t = whh_t.reshape(Hp, 4 * Hp).astype(jnp.bfloat16)

    bias_p = jnp.zeros((4, Hp), jnp.float32).at[:, :H].set(bias.reshape(4, H))
    bias_p = bias_p.reshape(4 * Hp)

    # ---- hoisted input projection, computed directly time-major -------------
    x_t = jnp.transpose(x, (1, 0, 2)).astype(jnp.float32)      # (T, B, D) small
    gates = jnp.einsum("tbd,dg->tbg", x_t, wih_t) + bias_p      # (T, B, 4Hp) f32
    gates = gates.astype(jnp.bfloat16)
    # Zero-pad batch (rows sliced off later) and FRONT-pad time: an all-zero
    # gate pre-activation step keeps (h, c) == 0 exactly (tanh(0)=0 forces
    # c'=0, h'=0), so the real T steps start from the true initial state.
    gates = jnp.pad(gates, ((Tp - T, 0), (0, Bp - B), (0, 0)))

    unroll = Tc if Tc <= 8 else 8
    kernel = functools.partial(_lstm_recurrence_kernel,
                               hidden_p=Hp, chunk=Tc, unroll=unroll)

    cost = pl.CostEstimate(
        flops=int(2 * Tp * Bp * Hp * 4 * Hp),
        transcendentals=int(5 * Tp * Bp * Hp),
        bytes_accessed=int(gates.size * 2 + whh_t.size * 2 + Bp * Hp * 4),
    )

    def build(single_buffer_whh):
        whh_kwargs = ({"pipeline_mode": pl.Buffered(1)}
                      if single_buffer_whh else {})
        return pl.pallas_call(
            kernel,
            out_shape=jax.ShapeDtypeStruct((Bp, Hp), jnp.float32),
            grid_spec=pltpu.PrefetchScalarGridSpec(
                num_scalar_prefetch=0,
                grid=(nb, nt),
                in_specs=[
                    # streamed gate pre-activations, one time chunk per step
                    pl.BlockSpec((Tc, Bb, 4 * Hp), lambda b, t: (t, b, 0)),
                    # constant recurrent weight block (single-buffered)
                    pl.BlockSpec((Hp, 4 * Hp), lambda b, t: (0, 0),
                                 **whh_kwargs),
                ],
                out_specs=pl.BlockSpec((Bb, Hp), lambda b, t: (b, 0)),
                scratch_shapes=[
                    pltpu.VMEM((Bb, Hp), jnp.float32),   # h
                    pltpu.VMEM((Bb, Hp), jnp.float32),   # c
                ],
            ),
            compiler_params=pltpu.CompilerParams(
                dimension_semantics=("parallel", "arbitrary"),
                vmem_limit_bytes=vmem_limit),
            cost_estimate=cost,
        )

    try:
        h_last = build(True)(gates, whh_t)
    except Exception:
        # pipeline_mode=pl.Buffered(1) unsupported by this jax build: fall
        # back to default double buffering of the constant W_hh^T block.
        h_last = build(False)(gates, whh_t)

    # Final Linear outside the kernel (lane-dense kernel output instead of a
    # 1-lane masked store); slice off batch/hidden padding first.
    return h_last[:B, :H] @ fc_w.T + fc_b


def _reference_forward(x, params):
    """Pure-JAX reference matching PyTorch nn.LSTM + Linear semantics."""
    w_ih = params["weight_ih"]
    w_hh = params["weight_hh"]
    b = params["bias_ih"] + params["bias_hh"]
    fc_w = params["fc_weight"]
    fc_b = params["fc_bias"]
    B, T, D = x.shape
    H = w_hh.shape[1]

    def step(carry, x_t):
        h, c = carry
        gates = x_t @ w_ih.T + h @ w_hh.T + b
        i = jax.nn.sigmoid(gates[:, 0 * H:1 * H])
        f = jax.nn.sigmoid(gates[:, 1 * H:2 * H])
        g = jnp.tanh(gates[:, 2 * H:3 * H])
        o = jax.nn.sigmoid(gates[:, 3 * H:4 * H])
        c = f * c + i * g
        h = o * jnp.tanh(c)
        return (h, c), None

    h0 = jnp.zeros((B, H), jnp.float32)
    c0 = jnp.zeros((B, H), jnp.float32)
    (h, _), _ = jax.lax.scan(step, (h0, c0), jnp.transpose(x, (1, 0, 2)))
    return h @ fc_w.T + fc_b


if __name__ == "__main__":
    B, T, D, H = 2, 8, 4, 32   # batch, seq len, input_dim, hidden_dim

    key = jax.random.PRNGKey(0)
    k = jax.random.split(key, 7)
    scale = 0.1
    params = {
        "weight_ih": scale * jax.random.normal(k[0], (4 * H, D), jnp.float32),
        "weight_hh": scale * jax.random.normal(k[1], (4 * H, H), jnp.float32),
        "bias_ih":   scale * jax.random.normal(k[2], (4 * H,), jnp.float32),
        "bias_hh":   scale * jax.random.normal(k[3], (4 * H,), jnp.float32),
        "fc_weight": scale * jax.random.normal(k[4], (1, H), jnp.float32),
        "fc_bias":   scale * jax.random.normal(k[5], (1,), jnp.float32),
    }
    x = jax.random.normal(k[6], (B, T, D), jnp.float32)

    logit = jax.block_until_ready(lstm_discriminator_forward(x, params))
    ref = jax.block_until_ready(_reference_forward(x, params))

    assert logit.shape == (B, 1), logit.shape
    # bf16 gate stream / recurrent weights => slightly looser tolerance vs f32.
    assert jnp.allclose(logit, ref, rtol=2e-2, atol=2e-2), (logit, ref)
    print("KERNEL_OK")
</pallas_src>

<mosaic_0001>
module attributes {stable_mosaic.version = 11 : i64} {
  func.func @_lstm_recurrence_kernel(%arg0: i32, %arg1: i32, %arg2: memref<8x16x512xbf16, #tpu.memory_space<vmem>>, %arg3: memref<128x512xbf16, #tpu.memory_space<vmem>>, %arg4: memref<16x128xf32, #tpu.memory_space<vmem>>, %arg5: memref<16x128xf32, #tpu.memory_space<vmem>>, %arg6: memref<16x128xf32, #tpu.memory_space<vmem>>) attributes {dimension_semantics = [#tpu.dimension_semantics<parallel>, #tpu.dimension_semantics<arbitrary>], iteration_bounds = array<i64: 1, 1>, scalar_prefetch = 0 : i64, scratch_operands = 2 : i64, tpu.core_type = #tpu.core_type<tc>, window_params = [{transform_indices = @transform_0, window_bounds = array<i64: 8, 16, 512>}, {pipeline_mode = #tpu.pipeline_mode<synchronous>, transform_indices = @transform_1, window_bounds = array<i64: 128, 512>}, {transform_indices = @transform_2, window_bounds = array<i64: 16, 128>}]} {
    %c0_i32 = arith.constant 0 : i32
    %0 = arith.cmpi eq, %arg1, %c0_i32 : i32
    %1 = arith.extui %0 : i1 to i32
    %c0_i32_0 = arith.constant 0 : i32
    %2 = arith.cmpi ne, %1, %c0_i32_0 : i32
    scf.if %2 {
      %cst_108 = arith.constant 0.000000e+00 : f32
      %315 = vector.broadcast %cst_108 : f32 to vector<16x128xf32>
      %c0_109 = arith.constant 0 : index
      %c0_110 = arith.constant 0 : index
      %316 = vector.load %arg5[%c0_109, %c0_110] : memref<16x128xf32, #tpu.memory_space<vmem>>, vector<16x128xf32>
      tpu.vector_store %arg5[%c0_109, %c0_110], %315 {strides = array<i32>} : memref<16x128xf32, #tpu.memory_space<vmem>>, vector<16x128xf32>,
      %cst_111 = arith.constant 0.000000e+00 : f32
      %317 = vector.broadcast %cst_111 : f32 to vector<16x128xf32>
      %c0_112 = arith.constant 0 : index
      %c0_113 = arith.constant 0 : index
      %318 = vector.load %arg6[%c0_112, %c0_113] : memref<16x128xf32, #tpu.memory_space<vmem>>, vector<16x128xf32>
      tpu.vector_store %arg6[%c0_112, %c0_113], %317 {strides = array<i32>} : memref<16x128xf32, #tpu.memory_space<vmem>>, vector<16x128xf32>,
    } else {
    }
    %c0 = arith.constant 0 : index
    %c0_1 = arith.constant 0 : index
    %3 = vector.load %arg3[%c0, %c0_1] : memref<128x512xbf16, #tpu.memory_space<vmem>>, vector<128x512xbf16>
    %c0_2 = arith.constant 0 : index
    %c0_3 = arith.constant 0 : index
    %4 = vector.load %arg5[%c0_2, %c0_3] : memref<16x128xf32, #tpu.memory_space<vmem>>, vector<16x128xf32>
    %c0_4 = arith.constant 0 : index
    %c0_5 = arith.constant 0 : index
    %5 = vector.load %arg6[%c0_4, %c0_5] : memref<16x128xf32, #tpu.memory_space<vmem>>, vector<16x128xf32>
    %c0_i32_6 = arith.constant 0 : i32
    %6 = arith.index_cast %c0_i32_6 : i32 to index
    %c0_7 = arith.constant 0 : index
    %c0_8 = arith.constant 0 : index
    %7 = vector.load %arg2[%6, %c0_7, %c0_8] : memref<8x16x512xbf16, #tpu.memory_space<vmem>>, vector<1x16x512xbf16>
    %8 = vector.shape_cast %7 : vector<1x16x512xbf16> to vector<16x512xbf16>
    %9 = arith.extf %8 : vector<16x512xbf16> to vector<16x512xf32>
    %10 = arith.truncf %4 : vector<16x128xf32> to vector<16x128xbf16>
    %cst = arith.constant dense<0.000000e+00> : vector<16x512xf32>
    %11 = tpu.matmul %10, %3, %cst {dimension_numbers = #tpu.dot_dimension_numbers<[1], [0], [0], [1], [0, 0, 1, 1], [], []>} : vector<16x128xbf16>, vector<128x512xbf16>, vector<16x512xf32> -> vector<16x512xf32>
    %12 = arith.addf %9, %11 : vector<16x512xf32>
    %13 = vector.extract_strided_slice %12 {offsets = [0, 0], sizes = [16, 128], strides = [1, 1]} : vector<16x512xf32> to vector<16x128xf32>
    %cst_9 = arith.constant 5.000000e-01 : f32
    %14 = vector.broadcast %cst_9 : f32 to vector<16x128xf32>
    %15 = arith.mulf %14, %13 : vector<16x128xf32>
    %16 = math.tanh %15 : vector<16x128xf32>
    %cst_10 = arith.constant 1.000000e+00 : f32
    %17 = vector.broadcast %cst_10 : f32 to vector<16x128xf32>
    %18 = arith.addf %16, %17 : vector<16x128xf32>
    %cst_11 = arith.constant 5.000000e-01 : f32
    %19 = vector.broadcast %cst_11 : f32 to vector<16x128xf32>
    %20 = arith.mulf %19, %18 : vector<16x128xf32>
    %21 = vector.extract_strided_slice %12 {offsets = [0, 128], sizes = [16, 128], strides = [1, 1]} : vector<16x512xf32> to vector<16x128xf32>
    %cst_12 = arith.constant 5.000000e-01 : f32
    %22 = vector.broadcast %cst_12 : f32 to vector<16x128xf32>
    %23 = arith.mulf %22, %21 : vector<16x128xf32>
    %24 = math.tanh %23 : vector<16x128xf32>
    %cst_13 = arith.constant 1.000000e+00 : f32
    %25 = vector.broadcast %cst_13 : f32 to vector<16x128xf32>
    %26 = arith.addf %24, %25 : vector<16x128xf32>
    %cst_14 = arith.constant 5.000000e-01 : f32
    %27 = vector.broadcast %cst_14 : f32 to vector<16x128xf32>
    %28 = arith.mulf %27, %26 : vector<16x128xf32>
    %29 = vector.extract_strided_slice %12 {offsets = [0, 256], sizes = [16, 128], strides = [1, 1]} : vector<16x512xf32> to vector<16x128xf32>
    %30 = math.tanh %29 : vector<16x128xf32>
    %31 = vector.extract_strided_slice %12 {offsets = [0, 384], sizes = [16, 128], strides = [1, 1]} : vector<16x512xf32> to vector<16x128xf32>
    %cst_15 = arith.constant 5.000000e-01 : f32
    %32 = vector.broadcast %cst_15 : f32 to vector<16x128xf32>
    %33 = arith.mulf %32, %31 : vector<16x128xf32>
    %34 = math.tanh %33 : vector<16x128xf32>
    %cst_16 = arith.constant 1.000000e+00 : f32
    %35 = vector.broadcast %cst_16 : f32 to vector<16x128xf32>
    %36 = arith.addf %34, %35 : vector<16x128xf32>
    %cst_17 = arith.constant 5.000000e-01 : f32
    %37 = vector.broadcast %cst_17 : f32 to vector<16x128xf32>
    %38 = arith.mulf %37, %36 : vector<16x128xf32>
    %39 = arith.mulf %28, %5 : vector<16x128xf32>
    %40 = arith.mulf %20, %30 : vector<16x128xf32>
    %41 = arith.addf %39, %40 : vector<16x128xf32>
    %42 = math.tanh %41 : vector<16x128xf32>
    %43 = arith.mulf %38, %42 : vector<16x128xf32>
    %c1_i32 = arith.constant 1 : i32
    %44 = arith.index_cast %c1_i32 : i32 to index
    %c0_18 = arith.constant 0 : index
    %c0_19 = arith.constant 0 : index
    %45 = vector.load %arg2[%44, %c0_18, %c0_19] : memref<8x16x512xbf16, #tpu.memory_space<vmem>>, vector<1x16x512xbf16>
    %46 = vector.shape_cast %45 : vector<1x16x512xbf16> to vector<16x512xbf16>
    %47 = arith.extf %46 : vector<16x512xbf16> to vector<16x512xf32>
    %48 = arith.truncf %43 : vector<16x128xf32> to vector<16x128xbf16>
    %cst_20 = arith.constant dense<0.000000e+00> : vector<16x512xf32>
    %49 = tpu.matmul %48, %3, %cst_20 {dimension_numbers = #tpu.dot_dimension_numbers<[1], [0], [0], [1], [0, 0, 1, 1], [], []>} : vector<16x128xbf16>, vector<128x512xbf16>, vector<16x512xf32> -> vector<16x512xf32>
    %50 = arith.addf %47, %49 : vector<16x512xf32>
    %51 = vector.extract_strided_slice %50 {offsets = [0, 0], sizes = [16, 128], strides = [1, 1]} : vector<16x512xf32> to vector<16x128xf32>
    %cst_21 = arith.constant 5.000000e-01 : f32
    %52 = vector.broadcast %cst_21 : f32 to vector<16x128xf32>
    %53 = arith.mulf %52, %51 : vector<16x128xf32>
    %54 = math.tanh %53 : vector<16x128xf32>
    %cst_22 = arith.constant 1.000000e+00 : f32
    %55 = vector.broadcast %cst_22 : f32 to vector<16x128xf32>
    %56 = arith.addf %54, %55 : vector<16x128xf32>
    %cst_23 = arith.constant 5.000000e-01 : f32
    %57 = vector.broadcast %cst_23 : f32 to vector<16x128xf32>
    %58 = arith.mulf %57, %56 : vector<16x128xf32>
    %59 = vector.extract_strided_slice %50 {offsets = [0, 128], sizes = [16, 128], strides = [1, 1]} : vector<16x512xf32> to vector<16x128xf32>
    %cst_24 = arith.constant 5.000000e-01 : f32
    %60 = vector.broadcast %cst_24 : f32 to vector<16x128xf32>
    %61 = arith.mulf %60, %59 : vector<16x128xf32>
    %62 = math.tanh %61 : vector<16x128xf32>
    %cst_25 = arith.constant 1.000000e+00 : f32
    %63 = vector.broadcast %cst_25 : f32 to vector<16x128xf32>
    %64 = arith.addf %62, %63 : vector<16x128xf32>
    %cst_26 = arith.constant 5.000000e-01 : f32
    %65 = vector.broadcast %cst_26 : f32 to vector<16x128xf32>
    %66 = arith.mulf %65, %64 : vector<16x128xf32>
    %67 = vector.extract_strided_slice %50 {offsets = [0, 256], sizes = [16, 128], strides = [1, 1]} : vector<16x512xf32> to vector<16x128xf32>
    %68 = math.tanh %67 : vector<16x128xf32>
    %69 = vector.extract_strided_slice %50 {offsets = [0, 384], sizes = [16, 128], strides = [1, 1]} : vector<16x512xf32> to vector<16x128xf32>
    %cst_27 = arith.constant 5.000000e-01 : f32
    %70 = vector.broadcast %cst_27 : f32 to vector<16x128xf32>
    %71 = arith.mulf %70, %69 : vector<16x128xf32>
    %72 = math.tanh %71 : vector<16x128xf32>
    %cst_28 = arith.constant 1.000000e+00 : f32
    %73 = vector.broadcast %cst_28 : f32 to vector<16x128xf32>
    %74 = arith.addf %72, %73 : vector<16x128xf32>
    %cst_29 = arith.constant 5.000000e-01 : f32
    %75 = vector.broadcast %cst_29 : f32 to vector<16x128xf32>
    %76 = arith.mulf %75, %74 : vector<16x128xf32>
    %77 = arith.mulf %66, %41 : vector<16x128xf32>
    %78 = arith.mulf %58, %68 : vector<16x128xf32>
    %79 = arith.addf %77, %78 : vector<16x128xf32>
    %80 = math.tanh %79 : vector<16x128xf32>
    %81 = arith.mulf %76, %80 : vector<16x128xf32>
    %c2_i32 = arith.constant 2 : i32
    %82 = arith.index_cast %c2_i32 : i32 to index
    %c0_30 = arith.constant 0 : index
    %c0_31 = arith.constant 0 : index
    %83 = vector.load %arg2[%82, %c0_30, %c0_31] : memref<8x16x512xbf16, #tpu.memory_space<vmem>>, vector<1x16x512xbf16>
    %84 = vector.shape_cast %83 : vector<1x16x512xbf16> to vector<16x512xbf16>
    %85 = arith.extf %84 : vector<16x512xbf16> to vector<16x512xf32>
    %86 = arith.truncf %81 : vector<16x128xf32> to vector<16x128xbf16>
    %cst_32 = arith.constant dense<0.000000e+00> : vector<16x512xf32>
    %87 = tpu.matmul %86, %3, %cst_32 {dimension_numbers = #tpu.dot_dimension_numbers<[1], [0], [0], [1], [0, 0, 1, 1], [], []>} : vector<16x128xbf16>, vector<128x512xbf16>, vector<16x512xf32> -> vector<16x512xf32>
    %88 = arith.addf %85, %87 : vector<16x512xf32>
    %89 = vector.extract_strided_slice %88 {offsets = [0, 0], sizes = [16, 128], strides = [1, 1]} : vector<16x512xf32> to vector<16x128xf32>
    %cst_33 = arith.constant 5.000000e-01 : f32
    %90 = vector.broadcast %cst_33 : f32 to vector<16x128xf32>
    %91 = arith.mulf %90, %89 : vector<16x128xf32>
    %92 = math.tanh %91 : vector<16x128xf32>
    %cst_34 = arith.constant 1.000000e+00 : f32
    %93 = vector.broadcast %cst_34 : f32 to vector<16x128xf32>
    %94 = arith.addf %92, %93 : vector<16x128xf32>
    %cst_35 = arith.constant 5.000000e-01 : f32
    %95 = vector.broadcast %cst_35 : f32 to vector<16x128xf32>
    %96 = arith.mulf %95, %94 : vector<16x128xf32>
    %97 = vector.extract_strided_slice %88 {offsets = [0, 128], sizes = [16, 128], strides = [1, 1]} : vector<16x512xf32> to vector<16x128xf32>
    %cst_36 = arith.constant 5.000000e-01 : f32
    %98 = vector.broadcast %cst_36 : f32 to vector<16x128xf32>
    %99 = arith.mulf %98, %97 : vector<16x128xf32>
    %100 = math.tanh %99 : vector<16x128xf32>
    %cst_37 = arith.constant 1.000000e+00 : f32
    %101 = vector.broadcast %cst_37 : f32 to vector<16x128xf32>
    %102 = arith.addf %100, %101 : vector<16x128xf32>
    %cst_38 = arith.constant 5.000000e-01 : f32
    %103 = vector.broadcast %cst_38 : f32 to vector<16x128xf32>
    %104 = arith.mulf %103, %102 : vector<16x128xf32>
    %105 = vector.extract_strided_slice %88 {offsets = [0, 256], sizes = [16, 128], strides = [1, 1]} : vector<16x512xf32> to vector<16x128xf32>
    %106 = math.tanh %105 : vector<16x128xf32>
    %107 = vector.extract_strided_slice %88 {offsets = [0, 384], sizes = [16, 128], strides = [1, 1]} : vector<16x512xf32> to vector<16x128xf32>
    %cst_39 = arith.constant 5.000000e-01 : f32
    %108 = vector.broadcast %cst_39 : f32 to vector<16x128xf32>
    %109 = arith.mulf %108, %107 : vector<16x128xf32>
    %110 = math.tanh %109 : vector<16x128xf32>
    %cst_40 = arith.constant 1.000000e+00 : f32
    %111 = vector.broadcast %cst_40 : f32 to vector<16x128xf32>
    %112 = arith.addf %110, %111 : vector<16x128xf32>
    %cst_41 = arith.constant 5.000000e-01 : f32
    %113 = vector.broadcast %cst_41 : f32 to vector<16x128xf32>
    %114 = arith.mulf %113, %112 : vector<16x128xf32>
    %115 = arith.mulf %104, %79 : vector<16x128xf32>
    %116 = arith.mulf %96, %106 : vector<16x128xf32>
    %117 = arith.addf %115, %116 : vector<16x128xf32>
    %118 = math.tanh %117 : vector<16x128xf32>
    %119 = arith.mulf %114, %118 : vector<16x128xf32>
    %c3_i32 = arith.constant 3 : i32
    %120 = arith.index_cast %c3_i32 : i32 to index
    %c0_42 = arith.constant 0 : index
    %c0_43 = arith.constant 0 : index
    %121 = vector.load %arg2[%120, %c0_42, %c0_43] : memref<8x16x512xbf16, #tpu.memory_space<vmem>>, vector<1x16x512xbf16>
    %122 = vector.shape_cast %121 : vector<1x16x512xbf16> to vector<16x512xbf16>
    %123 = arith.extf %122 : vector<16x512xbf16> to vector<16x512xf32>
    %124 = arith.truncf %119 : vector<16x128xf32> to vector<16x128xbf16>
    %cst_44 = arith.constant dense<0.000000e+00> : vector<16x512xf32>
    %125 = tpu.matmul %124, %3, %cst_44 {dimension_numbers = #tpu.dot_dimension_numbers<[1], [0], [0], [1], [0, 0, 1, 1], [], []>} : vector<16x128xbf16>, vector<128x512xbf16>, vector<16x512xf32> -> vector<16x512xf32>
    %126 = arith.addf %123, %125 : vector<16x512xf32>
    %127 = vector.extract_strided_slice %126 {offsets = [0, 0], sizes = [16, 128], strides = [1, 1]} : vector<16x512xf32> to vector<16x128xf32>
    %cst_45 = arith.constant 5.000000e-01 : f32
    %128 = vector.broadcast %cst_45 : f32 to vector<16x128xf32>
    %129 = arith.mulf %128, %127 : vector<16x128xf32>
    %130 = math.tanh %129 : vector<16x128xf32>
    %cst_46 = arith.constant 1.000000e+00 : f32
    %131 = vector.broadcast %cst_46 : f32 to vector<16x128xf32>
    %132 = arith.addf %130, %131 : vector<16x128xf32>
    %cst_47 = arith.constant 5.000000e-01 : f32
    %133 = vector.broadcast %cst_47 : f32 to vector<16x128xf32>
    %134 = arith.mulf %133, %132 : vector<16x128xf32>
    %135 = vector.extract_strided_slice %126 {offsets = [0, 128], sizes = [16, 128], strides = [1, 1]} : vector<16x512xf32> to vector<16x128xf32>
    %cst_48 = arith.constant 5.000000e-01 : f32
    %136 = vector.broadcast %cst_48 : f32 to vector<16x128xf32>
    %137 = arith.mulf %136, %135 : vector<16x128xf32>
    %138 = math.tanh %137 : vector<16x128xf32>
    %cst_49 = arith.constant 1.000000e+00 : f32
    %139 = vector.broadcast %cst_49 : f32 to vector<16x128xf32>
    %140 = arith.addf %138, %139 : vector<16x128xf32>
    %cst_50 = arith.constant 5.000000e-01 : f32
    %141 = vector.broadcast %cst_50 : f32 to vector<16x128xf32>
    %142 = arith.mulf %141, %140 : vector<16x128xf32>
    %143 = vector.extract_strided_slice %126 {offsets = [0, 256], sizes = [16, 128], strides = [1, 1]} : vector<16x512xf32> to vector<16x128xf32>
    %144 = math.tanh %143 : vector<16x128xf32>
    %145 = vector.extract_strided_slice %126 {offsets = [0, 384], sizes = [16, 128], strides = [1, 1]} : vector<16x512xf32> to vector<16x128xf32>
    %cst_51 = arith.constant 5.000000e-01 : f32
    %146 = vector.broadcast %cst_51 : f32 to vector<16x128xf32>
    %147 = arith.mulf %146, %145 : vector<16x128xf32>
    %148 = math.tanh %147 : vector<16x128xf32>
    %cst_52 = arith.constant 1.000000e+00 : f32
    %149 = vector.broadcast %cst_52 : f32 to vector<16x128xf32>
    %150 = arith.addf %148, %149 : vector<16x128xf32>
    %cst_53 = arith.constant 5.000000e-01 : f32
    %151 = vector.broadcast %cst_53 : f32 to vector<16x128xf32>
    %152 = arith.mulf %151, %150 : vector<16x128xf32>
    %153 = arith.mulf %142, %117 : vector<16x128xf32>
    %154 = arith.mulf %134, %144 : vector<16x128xf32>
    %155 = arith.addf %153, %154 : vector<16x128xf32>
    %156 = math.tanh %155 : vector<16x128xf32>
    %157 = arith.mulf %152, %156 : vector<16x128xf32>
    %c4_i32 = arith.constant 4 : i32
    %158 = arith.index_cast %c4_i32 : i32 to index
    %c0_54 = arith.constant 0 : index
    %c0_55 = arith.constant 0 : index
    %159 = vector.load %arg2[%158, %c0_54, %c0_55] : memref<8x16x512xbf16, #tpu.memory_space<vmem>>, vector<1x16x512xbf16>
    %160 = vector.shape_cast %159 : vector<1x16x512xbf16> to vector<16x512xbf16>
    %161 = arith.extf %160 : vector<16x512xbf16> to vector<16x512xf32>
    %162 = arith.truncf %157 : vector<16x128xf32> to vector<16x128xbf16>
    %cst_56 = arith.constant dense<0.000000e+00> : vector<16x512xf32>
    %163 = tpu.matmul %162, %3, %cst_56 {dimension_numbers = #tpu.dot_dimension_numbers<[1], [0], [0], [1], [0, 0, 1, 1], [], []>} : vector<16x128xbf16>, vector<128x512xbf16>, vector<16x512xf32> -> vector<16x512xf32>
    %164 = arith.addf %161, %163 : vector<16x512xf32>
    %165 = vector.extract_strided_slice %164 {offsets = [0, 0], sizes = [16, 128], strides = [1, 1]} : vector<16x512xf32> to vector<16x128xf32>
    %cst_57 = arith.constant 5.000000e-01 : f32
    %166 = vector.broadcast %cst_57 : f32 to vector<16x128xf32>
    %167 = arith.mulf %166, %165 : vector<16x128xf32>
    %168 = math.tanh %167 : vector<16x128xf32>
    %cst_58 = arith.constant 1.000000e+00 : f32
    %169 = vector.broadcast %cst_58 : f32 to vector<16x128xf32>
    %170 = arith.addf %168, %169 : vector<16x128xf32>
    %cst_59 = arith.constant 5.000000e-01 : f32
    %171 = vector.broadcast %cst_59 : f32 to vector<16x128xf32>
    %172 = arith.mulf %171, %170 : vector<16x128xf32>
    %173 = vector.extract_strided_slice %164 {offsets = [0, 128], sizes = [16, 128], strides = [1, 1]} : vector<16x512xf32> to vector<16x128xf32>
    %cst_60 = arith.constant 5.000000e-01 : f32
    %174 = vector.broadcast %cst_60 : f32 to vector<16x128xf32>
    %175 = arith.mulf %174, %173 : vector<16x128xf32>
    %176 = math.tanh %175 : vector<16x128xf32>
    %cst_61 = arith.constant 1.000000e+00 : f32
    %177 = vector.broadcast %cst_61 : f32 to vector<16x128xf32>
    %178 = arith.addf %176, %177 : vector<16x128xf32>
    %cst_62 = arith.constant 5.000000e-01 : f32
    %179 = vector.broadcast %cst_62 : f32 to vector<16x128xf32>
    %180 = arith.mulf %179, %178 : vector<16x128xf32>
    %181 = vector.extract_strided_slice %164 {offsets = [0, 256], sizes = [16, 128], strides = [1, 1]} : vector<16x512xf32> to vector<16x128xf32>
    %182 = math.tanh %181 : vector<16x128xf32>
    %183 = vector.extract_strided_slice %164 {offsets = [0, 384], sizes = [16, 128], strides = [1, 1]} : vector<16x512xf32> to vector<16x128xf32>
    %cst_63 = arith.constant 5.000000e-01 : f32
    %184 = vector.broadcast %cst_63 : f32 to vector<16x128xf32>
    %185 = arith.mulf %184, %183 : vector<16x128xf32>
    %186 = math.tanh %185 : vector<16x128xf32>
    %cst_64 = arith.constant 1.000000e+00 : f32
    %187 = vector.broadcast %cst_64 : f32 to vector<16x128xf32>
    %188 = arith.addf %186, %187 : vector<16x128xf32>
    %cst_65 = arith.constant 5.000000e-01 : f32
    %189 = vector.broadcast %cst_65 : f32 to vector<16x128xf32>
    %190 = arith.mulf %189, %188 : vector<16x128xf32>
    %191 = arith.mulf %180, %155 : vector<16x128xf32>
    %192 = arith.mulf %172, %182 : vector<16x128xf32>
    %193 = arith.addf %191, %192 : vector<16x128xf32>
    %194 = math.tanh %193 : vector<16x128xf32>
    %195 = arith.mulf %190, %194 : vector<16x128xf32>
    %c5_i32 = arith.constant 5 : i32
    %196 = arith.index_cast %c5_i32 : i32 to index
    %c0_66 = arith.constant 0 : index
    %c0_67 = arith.constant 0 : index
    %197 = vector.load %arg2[%196, %c0_66, %c0_67] : memref<8x16x512xbf16, #tpu.memory_space<vmem>>, vector<1x16x512xbf16>
    %198 = vector.shape_cast %197 : vector<1x16x512xbf16> to vector<16x512xbf16>
    %199 = arith.extf %198 : vector<16x512xbf16> to vector<16x512xf32>
    %200 = arith.truncf %195 : vector<16x128xf32> to vector<16x128xbf16>
    %cst_68 = arith.constant dense<0.000000e+00> : vector<16x512xf32>
    %201 = tpu.matmul %200, %3, %cst_68 {dimension_numbers = #tpu.dot_dimension_numbers<[1], [0], [0], [1], [0, 0, 1, 1], [], []>} : vector<16x128xbf16>, vector<128x512xbf16>, vector<16x512xf32> -> vector<16x512xf32>
    %202 = arith.addf %199, %201 : vector<16x512xf32>
    %203 = vector.extract_strided_slice %202 {offsets = [0, 0], sizes = [16, 128], strides = [1, 1]} : vector<16x512xf32> to vector<16x128xf32>
    %cst_69 = arith.constant 5.000000e-01 : f32
    %204 = vector.broadcast %cst_69 : f32 to vector<16x128xf32>
    %205 = arith.mulf %204, %203 : vector<16x128xf32>
    %206 = math.tanh %205 : vector<16x128xf32>
    %cst_70 = arith.constant 1.000000e+00 : f32
    %207 = vector.broadcast %cst_70 : f32 to vector<16x128xf32>
    %208 = arith.addf %206, %207 : vector<16x128xf32>
    %cst_71 = arith.constant 5.000000e-01 : f32
    %209 = vector.broadcast %cst_71 : f32 to vector<16x128xf32>
    %210 = arith.mulf %209, %208 : vector<16x128xf32>
    %211 = vector.extract_strided_slice %202 {offsets = [0, 128], sizes = [16, 128], strides = [1, 1]} : vector<16x512xf32> to vector<16x128xf32>
    %cst_72 = arith.constant 5.000000e-01 : f32
    %212 = vector.broadcast %cst_72 : f32 to vector<16x128xf32>
    %213 = arith.mulf %212, %211 : vector<16x128xf32>
    %214 = math.tanh %213 : vector<16x128xf32>
    %cst_73 = arith.constant 1.000000e+00 : f32
    %215 = vector.broadcast %cst_73 : f32 to vector<16x128xf32>
    %216 = arith.addf %214, %215 : vector<16x128xf32>
    %cst_74 = arith.constant 5.000000e-01 : f32
    %217 = vector.broadcast %cst_74 : f32 to vector<16x128xf32>
    %218 = arith.mulf %217, %216 : vector<16x128xf32>
    %219 = vector.extract_strided_slice %202 {offsets = [0, 256], sizes = [16, 128], strides = [1, 1]} : vector<16x512xf32> to vector<16x128xf32>
    %220 = math.tanh %219 : vector<16x128xf32>
    %221 = vector.extract_strided_slice %202 {offsets = [0, 384], sizes = [16, 128], strides = [1, 1]} : vector<16x512xf32> to vector<16x128xf32>
    %cst_75 = arith.constant 5.000000e-01 : f32
    %222 = vector.broadcast %cst_75 : f32 to vector<16x128xf32>
    %223 = arith.mulf %222, %221 : vector<16x128xf32>
    %224 = math.tanh %223 : vector<16x128xf32>
    %cst_76 = arith.constant 1.000000e+00 : f32
    %225 = vector.broadcast %cst_76 : f32 to vector<16x128xf32>
    %226 = arith.addf %224, %225 : vector<16x128xf32>
    %cst_77 = arith.constant 5.000000e-01 : f32
    %227 = vector.broadcast %cst_77 : f32 to vector<16x128xf32>
    %228 = arith.mulf %227, %226 : vector<16x128xf32>
    %229 = arith.mulf %218, %193 : vector<16x128xf32>
    %230 = arith.mulf %210, %220 : vector<16x128xf32>
    %231 = arith.addf %229, %230 : vector<16x128xf32>
    %232 = math.tanh %231 : vector<16x128xf32>
    %233 = arith.mulf %228, %232 : vector<16x128xf32>
    %c6_i32 = arith.constant 6 : i32
    %234 = arith.index_cast %c6_i32 : i32 to index
    %c0_78 = arith.constant 0 : index
    %c0_79 = arith.constant 0 : index
    %235 = vector.load %arg2[%234, %c0_78, %c0_79] : memref<8x16x512xbf16, #tpu.memory_space<vmem>>, vector<1x16x512xbf16>
    %236 = vector.shape_cast %235 : vector<1x16x512xbf16> to vector<16x512xbf16>
    %237 = arith.extf %236 : vector<16x512xbf16> to vector<16x512xf32>
    %238 = arith.truncf %233 : vector<16x128xf32> to vector<16x128xbf16>
    %cst_80 = arith.constant dense<0.000000e+00> : vector<16x512xf32>
    %239 = tpu.matmul %238, %3, %cst_80 {dimension_numbers = #tpu.dot_dimension_numbers<[1], [0], [0], [1], [0, 0, 1, 1], [], []>} : vector<16x128xbf16>, vector<128x512xbf16>, vector<16x512xf32> -> vector<16x512xf32>
    %240 = arith.addf %237, %239 : vector<16x512xf32>
    %241 = vector.extract_strided_slice %240 {offsets = [0, 0], sizes = [16, 128], strides = [1, 1]} : vector<16x512xf32> to vector<16x128xf32>
    %cst_81 = arith.constant 5.000000e-01 : f32
    %242 = vector.broadcast %cst_81 : f32 to vector<16x128xf32>
    %243 = arith.mulf %242, %241 : vector<16x128xf32>
    %244 = math.tanh %243 : vector<16x128xf32>
    %cst_82 = arith.constant 1.000000e+00 : f32
    %245 = vector.broadcast %cst_82 : f32 to vector<16x128xf32>
    %246 = arith.addf %244, %245 : vector<16x128xf32>
    %cst_83 = arith.constant 5.000000e-01 : f32
    %247 = vector.broadcast %cst_83 : f32 to vector<16x128xf32>
    %248 = arith.mulf %247, %246 : vector<16x128xf32>
    %249 = vector.extract_strided_slice %240 {offsets = [0, 128], sizes = [16, 128], strides = [1, 1]} : vector<16x512xf32> to vector<16x128xf32>
    %cst_84 = arith.constant 5.000000e-01 : f32
    %250 = vector.broadcast %cst_84 : f32 to vector<16x128xf32>
    %251 = arith.mulf %250, %249 : vector<16x128xf32>
    %252 = math.tanh %251 : vector<16x128xf32>
    %cst_85 = arith.constant 1.000000e+00 : f32
    %253 = vector.broadcast %cst_85 : f32 to vector<16x128xf32>
    %254 = arith.addf %252, %253 : vector<16x128xf32>
    %cst_86 = arith.constant 5.000000e-01 : f32
    %255 = vector.broadcast %cst_86 : f32 to vector<16x128xf32>
    %256 = arith.mulf %255, %254 : vector<16x128xf32>
    %257 = vector.extract_strided_slice %240 {offsets = [0, 256], sizes = [16, 128], strides = [1, 1]} : vector<16x512xf32> to vector<16x128xf32>
    %258 = math.tanh %257 : vector<16x128xf32>
    %259 = vector.extract_strided_slice %240 {offsets = [0, 384], sizes = [16, 128], strides = [1, 1]} : vector<16x512xf32> to vector<16x128xf32>
    %cst_87 = arith.constant 5.000000e-01 : f32
    %260 = vector.broadcast %cst_87 : f32 to vector<16x128xf32>
    %261 = arith.mulf %260, %259 : vector<16x128xf32>
    %262 = math.tanh %261 : vector<16x128xf32>
    %cst_88 = arith.constant 1.000000e+00 : f32
    %263 = vector.broadcast %cst_88 : f32 to vector<16x128xf32>
    %264 = arith.addf %262, %263 : vector<16x128xf32>
    %cst_89 = arith.constant 5.000000e-01 : f32
    %265 = vector.broadcast %cst_89 : f32 to vector<16x128xf32>
    %266 = arith.mulf %265, %264 : vector<16x128xf32>
    %267 = arith.mulf %256, %231 : vector<16x128xf32>
    %268 = arith.mulf %248, %258 : vector<16x128xf32>
    %269 = arith.addf %267, %268 : vector<16x128xf32>
    %270 = math.tanh %269 : vector<16x128xf32>
    %271 = arith.mulf %266, %270 : vector<16x128xf32>
    %c7_i32 = arith.constant 7 : i32
    %272 = arith.index_cast %c7_i32 : i32 to index
    %c0_90 = arith.constant 0 : index
    %c0_91 = arith.constant 0 : index
    %273 = vector.load %arg2[%272, %c0_90, %c0_91] : memref<8x16x512xbf16, #tpu.memory_space<vmem>>, vector<1x16x512xbf16>
    %274 = vector.shape_cast %273 : vector<1x16x512xbf16> to vector<16x512xbf16>
    %275 = arith.extf %274 : vector<16x512xbf16> to vector<16x512xf32>
    %276 = arith.truncf %271 : vector<16x128xf32> to vector<16x128xbf16>
    %cst_92 = arith.constant dense<0.000000e+00> : vector<16x512xf32>
    %277 = tpu.matmul %276, %3, %cst_92 {dimension_numbers = #tpu.dot_dimension_numbers<[1], [0], [0], [1], [0, 0, 1, 1], [], []>} : vector<16x128xbf16>, vector<128x512xbf16>, vector<16x512xf32> -> vector<16x512xf32>
    %278 = arith.addf %275, %277 : vector<16x512xf32>
    %279 = vector.extract_strided_slice %278 {offsets = [0, 0], sizes = [16, 128], strides = [1, 1]} : vector<16x512xf32> to vector<16x128xf32>
    %cst_93 = arith.constant 5.000000e-01 : f32
    %280 = vector.broadcast %cst_93 : f32 to vector<16x128xf32>
    %281 = arith.mulf %280, %279 : vector<16x128xf32>
    %282 = math.tanh %281 : vector<16x128xf32>
    %cst_94 = arith.constant 1.000000e+00 : f32
    %283 = vector.broadcast %cst_94 : f32 to vector<16x128xf32>
    %284 = arith.addf %282, %283 : vector<16x128xf32>
    %cst_95 = arith.constant 5.000000e-01 : f32
    %285 = vector.broadcast %cst_95 : f32 to vector<16x128xf32>
    %286 = arith.mulf %285, %284 : vector<16x128xf32>
    %287 = vector.extract_strided_slice %278 {offsets = [0, 128], sizes = [16, 128], strides = [1, 1]} : vector<16x512xf32> to vector<16x128xf32>
    %cst_96 = arith.constant 5.000000e-01 : f32
    %288 = vector.broadcast %cst_96 : f32 to vector<16x128xf32>
    %289 = arith.mulf %288, %287 : vector<16x128xf32>
    %290 = math.tanh %289 : vector<16x128xf32>
    %cst_97 = arith.constant 1.000000e+00 : f32
    %291 = vector.broadcast %cst_97 : f32 to vector<16x128xf32>
    %292 = arith.addf %290, %291 : vector<16x128xf32>
    %cst_98 = arith.constant 5.000000e-01 : f32
    %293 = vector.broadcast %cst_98 : f32 to vector<16x128xf32>
    %294 = arith.mulf %293, %292 : vector<16x128xf32>
    %295 = vector.extract_strided_slice %278 {offsets = [0, 256], sizes = [16, 128], strides = [1, 1]} : vector<16x512xf32> to vector<16x128xf32>
    %296 = math.tanh %295 : vector<16x128xf32>
    %297 = vector.extract_strided_slice %278 {offsets = [0, 384], sizes = [16, 128], strides = [1, 1]} : vector<16x512xf32> to vector<16x128xf32>
    %cst_99 = arith.constant 5.000000e-01 : f32
    %298 = vector.broadcast %cst_99 : f32 to vector<16x128xf32>
    %299 = arith.mulf %298, %297 : vector<16x128xf32>
    %300 = math.tanh %299 : vector<16x128xf32>
    %cst_100 = arith.constant 1.000000e+00 : f32
    %301 = vector.broadcast %cst_100 : f32 to vector<16x128xf32>
    %302 = arith.addf %300, %301 : vector<16x128xf32>
    %cst_101 = arith.constant 5.000000e-01 : f32
    %303 = vector.broadcast %cst_101 : f32 to vector<16x128xf32>
    %304 = arith.mulf %303, %302 : vector<16x128xf32>
    %305 = arith.mulf %294, %269 : vector<16x128xf32>
    %306 = arith.mulf %286, %296 : vector<16x128xf32>
    %307 = arith.addf %305, %306 : vector<16x128xf32>
    %308 = math.tanh %307 : vector<16x128xf32>
    %309 = arith.mulf %304, %308 : vector<16x128xf32>
    %c8_i32 = arith.constant 8 : i32
    %c0_102 = arith.constant 0 : index
    %c0_103 = arith.constant 0 : index
    %310 = vector.load %arg5[%c0_102, %c0_103] : memref<16x128xf32, #tpu.memory_space<vmem>>, vector<16x128xf32>
    tpu.vector_store %arg5[%c0_102, %c0_103], %309 {strides = array<i32>} : memref<16x128xf32, #tpu.memory_space<vmem>>, vector<16x128xf32>,
    %c0_104 = arith.constant 0 : index
    %c0_105 = arith.constant 0 : index
    %311 = vector.load %arg6[%c0_104, %c0_105] : memref<16x128xf32, #tpu.memory_space<vmem>>, vector<16x128xf32>
    tpu.vector_store %arg6[%c0_104, %c0_105], %307 {strides = array<i32>} : memref<16x128xf32, #tpu.memory_space<vmem>>, vector<16x128xf32>,
    %c0_i32_106 = arith.constant 0 : i32
    %312 = arith.cmpi eq, %arg1, %c0_i32_106 : i32
    %313 = arith.extui %312 : i1 to i32
    %c0_i32_107 = arith.constant 0 : i32
    %314 = arith.cmpi ne, %313, %c0_i32_107 : i32
    scf.if %314 {
      %c0_108 = arith.constant 0 : index
      %c0_109 = arith.constant 0 : index
      %315 = vector.load %arg4[%c0_108, %c0_109] : memref<16x128xf32, #tpu.memory_space<vmem>>, vector<16x128xf32>
      tpu.vector_store %arg4[%c0_108, %c0_109], %309 {strides = array<i32>} : memref<16x128xf32, #tpu.memory_space<vmem>>, vector<16x128xf32>,
    } else {
    }
    return
  }
  func.func @transform_0(%arg0: i32, %arg1: i32) -> (i32, i32, i32) {
    %c0_i32 = arith.constant 0 : i32
    %c0_i32_0 = arith.constant 0 : i32
    return %arg1, %arg0, %c0_i32 : i32, i32, i32
  }
  func.func @transform_1(%arg0: i32, %arg1: i32) -> (i32, i32) {
    %c0_i32 = arith.constant 0 : i32
    %c0_i32_0 = arith.constant 0 : i32
    %c0_i32_1 = arith.constant 0 : i32
    return %c0_i32, %c0_i32_0 : i32, i32
  }
  func.func @transform_2(%arg0: i32, %arg1: i32) -> (i32, i32) {
    %c0_i32 = arith.constant 0 : i32
    %c0_i32_0 = arith.constant 0 : i32
    return %arg0, %c0_i32 : i32, i32
  }
}

module attributes {stable_mosaic.version = 11 : i64} {
  func.func @_lstm_recurrence_kernel(%arg0: i32, %arg1: i32, %arg2: memref<8x16x512xbf16, #tpu.memory_space<vmem>>, %arg3: memref<128x512xbf16, #tpu.memory_space<vmem>>, %arg4: memref<16x128xf32, #tpu.memory_space<vmem>>, %arg5: memref<16x128xf32, #tpu.memory_space<vmem>>, %arg6: memref<16x128xf32, #tpu.memory_space<vmem>>) attributes {dimension_semantics = [#tpu.dimension_semantics<parallel>, #tpu.dimension_semantics<arbitrary>], iteration_bounds = array<i64: 1, 1>, scalar_prefetch = 0 : i64, scratch_operands = 2 : i64, tpu.core_type = #tpu.core_type<tc>, window_params = [{transform_indices = @transform_0, window_bounds = array<i64: 8, 16, 512>}, {pipeline_mode = #tpu.pipeline_mode<synchronous>, transform_indices = @transform_1, window_bounds = array<i64: 128, 512>}, {transform_indices = @transform_2, window_bounds = array<i64: 16, 128>}]} {
    %c0_i32 = arith.constant 0 : i32
    %0 = arith.cmpi eq, %arg1, %c0_i32 : i32
    %1 = arith.extui %0 : i1 to i32
    %c0_i32_0 = arith.constant 0 : i32
    %2 = arith.cmpi ne, %1, %c0_i32_0 : i32
    scf.if %2 {
      %cst_108 = arith.constant 0.000000e+00 : f32
      %315 = vector.broadcast %cst_108 : f32 to vector<16x128xf32>
      %c0_109 = arith.constant 0 : index
      %c0_110 = arith.constant 0 : index
      %316 = vector.load %arg5[%c0_109, %c0_110] : memref<16x128xf32, #tpu.memory_space<vmem>>, vector<16x128xf32>
      tpu.vector_store %arg5[%c0_109, %c0_110], %315 {strides = array<i32>} : memref<16x128xf32, #tpu.memory_space<vmem>>, vector<16x128xf32>,
      %cst_111 = arith.constant 0.000000e+00 : f32
      %317 = vector.broadcast %cst_111 : f32 to vector<16x128xf32>
      %c0_112 = arith.constant 0 : index
      %c0_113 = arith.constant 0 : index
      %318 = vector.load %arg6[%c0_112, %c0_113] : memref<16x128xf32, #tpu.memory_space<vmem>>, vector<16x128xf32>
      tpu.vector_store %arg6[%c0_112, %c0_113], %317 {strides = array<i32>} : memref<16x128xf32, #tpu.memory_space<vmem>>, vector<16x128xf32>,
    } else {
    }
    %c0 = arith.constant 0 : index
    %c0_1 = arith.constant 0 : index
    %3 = vector.load %arg3[%c0, %c0_1] : memref<128x512xbf16, #tpu.memory_space<vmem>>, vector<128x512xbf16>
    %c0_2 = arith.constant 0 : index
    %c0_3 = arith.constant 0 : index
    %4 = vector.load %arg5[%c0_2, %c0_3] : memref<16x128xf32, #tpu.memory_space<vmem>>, vector<16x128xf32>
    %c0_4 = arith.constant 0 : index
    %c0_5 = arith.constant 0 : index
    %5 = vector.load %arg6[%c0_4, %c0_5] : memref<16x128xf32, #tpu.memory_space<vmem>>, vector<16x128xf32>
    %c0_i32_6 = arith.constant 0 : i32
    %6 = arith.index_cast %c0_i32_6 : i32 to index
    %c0_7 = arith.constant 0 : index
    %c0_8 = arith.constant 0 : index
    %7 = vector.load %arg2[%6, %c0_7, %c0_8] : memref<8x16x512xbf16, #tpu.memory_space<vmem>>, vector<1x16x512xbf16>
    %8 = vector.shape_cast %7 : vector<1x16x512xbf16> to vector<16x512xbf16>
    %9 = arith.extf %8 : vector<16x512xbf16> to vector<16x512xf32>
    %10 = arith.truncf %4 : vector<16x128xf32> to vector<16x128xbf16>
    %cst = arith.constant dense<0.000000e+00> : vector<16x512xf32>
    %11 = tpu.matmul %10, %3, %cst {dimension_numbers = #tpu.dot_dimension_numbers<[1], [0], [0], [1], [0, 0, 1, 1], [], []>} : vector<16x128xbf16>, vector<128x512xbf16>, vector<16x512xf32> -> vector<16x512xf32>
    %12 = arith.addf %9, %11 : vector<16x512xf32>
    %13 = vector.extract_strided_slice %12 {offsets = [0, 0], sizes = [16, 128], strides = [1, 1]} : vector<16x512xf32> to vector<16x128xf32>
    %cst_9 = arith.constant 5.000000e-01 : f32
    %14 = vector.broadcast %cst_9 : f32 to vector<16x128xf32>
    %15 = arith.mulf %14, %13 : vector<16x128xf32>
    %16 = math.tanh %15 : vector<16x128xf32>
    %cst_10 = arith.constant 1.000000e+00 : f32
    %17 = vector.broadcast %cst_10 : f32 to vector<16x128xf32>
    %18 = arith.addf %16, %17 : vector<16x128xf32>
    %cst_11 = arith.constant 5.000000e-01 : f32
    %19 = vector.broadcast %cst_11 : f32 to vector<16x128xf32>
    %20 = arith.mulf %19, %18 : vector<16x128xf32>
    %21 = vector.extract_strided_slice %12 {offsets = [0, 128], sizes = [16, 128], strides = [1, 1]} : vector<16x512xf32> to vector<16x128xf32>
    %cst_12 = arith.constant 5.000000e-01 : f32
    %22 = vector.broadcast %cst_12 : f32 to vector<16x128xf32>
    %23 = arith.mulf %22, %21 : vector<16x128xf32>
    %24 = math.tanh %23 : vector<16x128xf32>
    %cst_13 = arith.constant 1.000000e+00 : f32
    %25 = vector.broadcast %cst_13 : f32 to vector<16x128xf32>
    %26 = arith.addf %24, %25 : vector<16x128xf32>
    %cst_14 = arith.constant 5.000000e-01 : f32
    %27 = vector.broadcast %cst_14 : f32 to vector<16x128xf32>
    %28 = arith.mulf %27, %26 : vector<16x128xf32>
    %29 = vector.extract_strided_slice %12 {offsets = [0, 256], sizes = [16, 128], strides = [1, 1]} : vector<16x512xf32> to vector<16x128xf32>
    %30 = math.tanh %29 : vector<16x128xf32>
    %31 = vector.extract_strided_slice %12 {offsets = [0, 384], sizes = [16, 128], strides = [1, 1]} : vector<16x512xf32> to vector<16x128xf32>
    %cst_15 = arith.constant 5.000000e-01 : f32
    %32 = vector.broadcast %cst_15 : f32 to vector<16x128xf32>
    %33 = arith.mulf %32, %31 : vector<16x128xf32>
    %34 = math.tanh %33 : vector<16x128xf32>
    %cst_16 = arith.constant 1.000000e+00 : f32
    %35 = vector.broadcast %cst_16 : f32 to vector<16x128xf32>
    %36 = arith.addf %34, %35 : vector<16x128xf32>
    %cst_17 = arith.constant 5.000000e-01 : f32
    %37 = vector.broadcast %cst_17 : f32 to vector<16x128xf32>
    %38 = arith.mulf %37, %36 : vector<16x128xf32>
    %39 = arith.mulf %28, %5 : vector<16x128xf32>
    %40 = arith.mulf %20, %30 : vector<16x128xf32>
    %41 = arith.addf %39, %40 : vector<16x128xf32>
    %42 = math.tanh %41 : vector<16x128xf32>
    %43 = arith.mulf %38, %42 : vector<16x128xf32>
    %c1_i32 = arith.constant 1 : i32
    %44 = arith.index_cast %c1_i32 : i32 to index
    %c0_18 = arith.constant 0 : index
    %c0_19 = arith.constant 0 : index
    %45 = vector.load %arg2[%44, %c0_18, %c0_19] : memref<8x16x512xbf16, #tpu.memory_space<vmem>>, vector<1x16x512xbf16>
    %46 = vector.shape_cast %45 : vector<1x16x512xbf16> to vector<16x512xbf16>
    %47 = arith.extf %46 : vector<16x512xbf16> to vector<16x512xf32>
    %48 = arith.truncf %43 : vector<16x128xf32> to vector<16x128xbf16>
    %cst_20 = arith.constant dense<0.000000e+00> : vector<16x512xf32>
    %49 = tpu.matmul %48, %3, %cst_20 {dimension_numbers = #tpu.dot_dimension_numbers<[1], [0], [0], [1], [0, 0, 1, 1], [], []>} : vector<16x128xbf16>, vector<128x512xbf16>, vector<16x512xf32> -> vector<16x512xf32>
    %50 = arith.addf %47, %49 : vector<16x512xf32>
    %51 = vector.extract_strided_slice %50 {offsets = [0, 0], sizes = [16, 128], strides = [1, 1]} : vector<16x512xf32> to vector<16x128xf32>
    %cst_21 = arith.constant 5.000000e-01 : f32
    %52 = vector.broadcast %cst_21 : f32 to vector<16x128xf32>
    %53 = arith.mulf %52, %51 : vector<16x128xf32>
    %54 = math.tanh %53 : vector<16x128xf32>
    %cst_22 = arith.constant 1.000000e+00 : f32
    %55 = vector.broadcast %cst_22 : f32 to vector<16x128xf32>
    %56 = arith.addf %54, %55 : vector<16x128xf32>
    %cst_23 = arith.constant 5.000000e-01 : f32
    %57 = vector.broadcast %cst_23 : f32 to vector<16x128xf32>
    %58 = arith.mulf %57, %56 : vector<16x128xf32>
    %59 = vector.extract_strided_slice %50 {offsets = [0, 128], sizes = [16, 128], strides = [1, 1]} : vector<16x512xf32> to vector<16x128xf32>
    %cst_24 = arith.constant 5.000000e-01 : f32
    %60 = vector.broadcast %cst_24 : f32 to vector<16x128xf32>
    %61 = arith.mulf %60, %59 : vector<16x128xf32>
    %62 = math.tanh %61 : vector<16x128xf32>
    %cst_25 = arith.constant 1.000000e+00 : f32
    %63 = vector.broadcast %cst_25 : f32 to vector<16x128xf32>
    %64 = arith.addf %62, %63 : vector<16x128xf32>
    %cst_26 = arith.constant 5.000000e-01 : f32
    %65 = vector.broadcast %cst_26 : f32 to vector<16x128xf32>
    %66 = arith.mulf %65, %64 : vector<16x128xf32>
    %67 = vector.extract_strided_slice %50 {offsets = [0, 256], sizes = [16, 128], strides = [1, 1]} : vector<16x512xf32> to vector<16x128xf32>
    %68 = math.tanh %67 : vector<16x128xf32>
    %69 = vector.extract_strided_slice %50 {offsets = [0, 384], sizes = [16, 128], strides = [1, 1]} : vector<16x512xf32> to vector<16x128xf32>
    %cst_27 = arith.constant 5.000000e-01 : f32
    %70 = vector.broadcast %cst_27 : f32 to vector<16x128xf32>
    %71 = arith.mulf %70, %69 : vector<16x128xf32>
    %72 = math.tanh %71 : vector<16x128xf32>
    %cst_28 = arith.constant 1.000000e+00 : f32
    %73 = vector.broadcast %cst_28 : f32 to vector<16x128xf32>
    %74 = arith.addf %72, %73 : vector<16x128xf32>
    %cst_29 = arith.constant 5.000000e-01 : f32
    %75 = vector.broadcast %cst_29 : f32 to vector<16x128xf32>
    %76 = arith.mulf %75, %74 : vector<16x128xf32>
    %77 = arith.mulf %66, %41 : vector<16x128xf32>
    %78 = arith.mulf %58, %68 : vector<16x128xf32>
    %79 = arith.addf %77, %78 : vector<16x128xf32>
    %80 = math.tanh %79 : vector<16x128xf32>
    %81 = arith.mulf %76, %80 : vector<16x128xf32>
    %c2_i32 = arith.constant 2 : i32
    %82 = arith.index_cast %c2_i32 : i32 to index
    %c0_30 = arith.constant 0 : index
    %c0_31 = arith.constant 0 : index
    %83 = vector.load %arg2[%82, %c0_30, %c0_31] : memref<8x16x512xbf16, #tpu.memory_space<vmem>>, vector<1x16x512xbf16>
    %84 = vector.shape_cast %83 : vector<1x16x512xbf16> to vector<16x512xbf16>
    %85 = arith.extf %84 : vector<16x512xbf16> to vector<16x512xf32>
    %86 = arith.truncf %81 : vector<16x128xf32> to vector<16x128xbf16>
    %cst_32 = arith.constant dense<0.000000e+00> : vector<16x512xf32>
    %87 = tpu.matmul %86, %3, %cst_32 {dimension_numbers = #tpu.dot_dimension_numbers<[1], [0], [0], [1], [0, 0, 1, 1], [], []>} : vector<16x128xbf16>, vector<128x512xbf16>, vector<16x512xf32> -> vector<16x512xf32>
    %88 = arith.addf %85, %87 : vector<16x512xf32>
    %89 = vector.extract_strided_slice %88 {offsets = [0, 0], sizes = [16, 128], strides = [1, 1]} : vector<16x512xf32> to vector<16x128xf32>
    %cst_33 = arith.constant 5.000000e-01 : f32
    %90 = vector.broadcast %cst_33 : f32 to vector<16x128xf32>
    %91 = arith.mulf %90, %89 : vector<16x128xf32>
    %92 = math.tanh %91 : vector<16x128xf32>
    %cst_34 = arith.constant 1.000000e+00 : f32
    %93 = vector.broadcast %cst_34 : f32 to vector<16x128xf32>
    %94 = arith.addf %92, %93 : vector<16x128xf32>
    %cst_35 = arith.constant 5.000000e-01 : f32
    %95 = vector.broadcast %cst_35 : f32 to vector<16x128xf32>
    %96 = arith.mulf %95, %94 : vector<16x128xf32>
    %97 = vector.extract_strided_slice %88 {offsets = [0, 128], sizes = [16, 128], strides = [1, 1]} : vector<16x512xf32> to vector<16x128xf32>
    %cst_36 = arith.constant 5.000000e-01 : f32
    %98 = vector.broadcast %cst_36 : f32 to vector<16x128xf32>
    %99 = arith.mulf %98, %97 : vector<16x128xf32>
    %100 = math.tanh %99 : vector<16x128xf32>
    %cst_37 = arith.constant 1.000000e+00 : f32
    %101 = vector.broadcast %cst_37 : f32 to vector<16x128xf32>
    %102 = arith.addf %100, %101 : vector<16x128xf32>
    %cst_38 = arith.constant 5.000000e-01 : f32
    %103 = vector.broadcast %cst_38 : f32 to vector<16x128xf32>
    %104 = arith.mulf %103, %102 : vector<16x128xf32>
    %105 = vector.extract_strided_slice %88 {offsets = [0, 256], sizes = [16, 128], strides = [1, 1]} : vector<16x512xf32> to vector<16x128xf32>
    %106 = math.tanh %105 : vector<16x128xf32>
    %107 = vector.extract_strided_slice %88 {offsets = [0, 384], sizes = [16, 128], strides = [1, 1]} : vector<16x512xf32> to vector<16x128xf32>
    %cst_39 = arith.constant 5.000000e-01 : f32
    %108 = vector.broadcast %cst_39 : f32 to vector<16x128xf32>
    %109 = arith.mulf %108, %107 : vector<16x128xf32>
    %110 = math.tanh %109 : vector<16x128xf32>
    %cst_40 = arith.constant 1.000000e+00 : f32
    %111 = vector.broadcast %cst_40 : f32 to vector<16x128xf32>
    %112 = arith.addf %110, %111 : vector<16x128xf32>
    %cst_41 = arith.constant 5.000000e-01 : f32
    %113 = vector.broadcast %cst_41 : f32 to vector<16x128xf32>
    %114 = arith.mulf %113, %112 : vector<16x128xf32>
    %115 = arith.mulf %104, %79 : vector<16x128xf32>
    %116 = arith.mulf %96, %106 : vector<16x128xf32>
    %117 = arith.addf %115, %116 : vector<16x128xf32>
    %118 = math.tanh %117 : vector<16x128xf32>
    %119 = arith.mulf %114, %118 : vector<16x128xf32>
    %c3_i32 = arith.constant 3 : i32
    %120 = arith.index_cast %c3_i32 : i32 to index
    %c0_42 = arith.constant 0 : index
    %c0_43 = arith.constant 0 : index
    %121 = vector.load %arg2[%120, %c0_42, %c0_43] : memref<8x16x512xbf16, #tpu.memory_space<vmem>>, vector<1x16x512xbf16>
    %122 = vector.shape_cast %121 : vector<1x16x512xbf16> to vector<16x512xbf16>
    %123 = arith.extf %122 : vector<16x512xbf16> to vector<16x512xf32>
    %124 = arith.truncf %119 : vector<16x128xf32> to vector<16x128xbf16>
    %cst_44 = arith.constant dense<0.000000e+00> : vector<16x512xf32>
    %125 = tpu.matmul %124, %3, %cst_44 {dimension_numbers = #tpu.dot_dimension_numbers<[1], [0], [0], [1], [0, 0, 1, 1], [], []>} : vector<16x128xbf16>, vector<128x512xbf16>, vector<16x512xf32> -> vector<16x512xf32>
    %126 = arith.addf %123, %125 : vector<16x512xf32>
    %127 = vector.extract_strided_slice %126 {offsets = [0, 0], sizes = [16, 128], strides = [1, 1]} : vector<16x512xf32> to vector<16x128xf32>
    %cst_45 = arith.constant 5.000000e-01 : f32
    %128 = vector.broadcast %cst_45 : f32 to vector<16x128xf32>
    %129 = arith.mulf %128, %127 : vector<16x128xf32>
    %130 = math.tanh %129 : vector<16x128xf32>
    %cst_46 = arith.constant 1.000000e+00 : f32
    %131 = vector.broadcast %cst_46 : f32 to vector<16x128xf32>
    %132 = arith.addf %130, %131 : vector<16x128xf32>
    %cst_47 = arith.constant 5.000000e-01 : f32
    %133 = vector.broadcast %cst_47 : f32 to vector<16x128xf32>
    %134 = arith.mulf %133, %132 : vector<16x128xf32>
    %135 = vector.extract_strided_slice %126 {offsets = [0, 128], sizes = [16, 128], strides = [1, 1]} : vector<16x512xf32> to vector<16x128xf32>
    %cst_48 = arith.constant 5.000000e-01 : f32
    %136 = vector.broadcast %cst_48 : f32 to vector<16x128xf32>
    %137 = arith.mulf %136, %135 : vector<16x128xf32>
    %138 = math.tanh %137 : vector<16x128xf32>
    %cst_49 = arith.constant 1.000000e+00 : f32
    %139 = vector.broadcast %cst_49 : f32 to vector<16x128xf32>
    %140 = arith.addf %138, %139 : vector<16x128xf32>
    %cst_50 = arith.constant 5.000000e-01 : f32
    %141 = vector.broadcast %cst_50 : f32 to vector<16x128xf32>
    %142 = arith.mulf %141, %140 : vector<16x128xf32>
    %143 = vector.extract_strided_slice %126 {offsets = [0, 256], sizes = [16, 128], strides = [1, 1]} : vector<16x512xf32> to vector<16x128xf32>
    %144 = math.tanh %143 : vector<16x128xf32>
    %145 = vector.extract_strided_slice %126 {offsets = [0, 384], sizes = [16, 128], strides = [1, 1]} : vector<16x512xf32> to vector<16x128xf32>
    %cst_51 = arith.constant 5.000000e-01 : f32
    %146 = vector.broadcast %cst_51 : f32 to vector<16x128xf32>
    %147 = arith.mulf %146, %145 : vector<16x128xf32>
    %148 = math.tanh %147 : vector<16x128xf32>
    %cst_52 = arith.constant 1.000000e+00 : f32
    %149 = vector.broadcast %cst_52 : f32 to vector<16x128xf32>
    %150 = arith.addf %148, %149 : vector<16x128xf32>
    %cst_53 = arith.constant 5.000000e-01 : f32
    %151 = vector.broadcast %cst_53 : f32 to vector<16x128xf32>
    %152 = arith.mulf %151, %150 : vector<16x128xf32>
    %153 = arith.mulf %142, %117 : vector<16x128xf32>
    %154 = arith.mulf %134, %144 : vector<16x128xf32>
    %155 = arith.addf %153, %154 : vector<16x128xf32>
    %156 = math.tanh %155 : vector<16x128xf32>
    %157 = arith.mulf %152, %156 : vector<16x128xf32>
    %c4_i32 = arith.constant 4 : i32
    %158 = arith.index_cast %c4_i32 : i32 to index
    %c0_54 = arith.constant 0 : index
    %c0_55 = arith.constant 0 : index
    %159 = vector.load %arg2[%158, %c0_54, %c0_55] : memref<8x16x512xbf16, #tpu.memory_space<vmem>>, vector<1x16x512xbf16>
    %160 = vector.shape_cast %159 : vector<1x16x512xbf16> to vector<16x512xbf16>
    %161 = arith.extf %160 : vector<16x512xbf16> to vector<16x512xf32>
    %162 = arith.truncf %157 : vector<16x128xf32> to vector<16x128xbf16>
    %cst_56 = arith.constant dense<0.000000e+00> : vector<16x512xf32>
    %163 = tpu.matmul %162, %3, %cst_56 {dimension_numbers = #tpu.dot_dimension_numbers<[1], [0], [0], [1], [0, 0, 1, 1], [], []>} : vector<16x128xbf16>, vector<128x512xbf16>, vector<16x512xf32> -> vector<16x512xf32>
    %164 = arith.addf %161, %163 : vector<16x512xf32>
    %165 = vector.extract_strided_slice %164 {offsets = [0, 0], sizes = [16, 128], strides = [1, 1]} : vector<16x512xf32> to vector<16x128xf32>
    %cst_57 = arith.constant 5.000000e-01 : f32
    %166 = vector.broadcast %cst_57 : f32 to vector<16x128xf32>
    %167 = arith.mulf %166, %165 : vector<16x128xf32>
    %168 = math.tanh %167 : vector<16x128xf32>
    %cst_58 = arith.constant 1.000000e+00 : f32
    %169 = vector.broadcast %cst_58 : f32 to vector<16x128xf32>
    %170 = arith.addf %168, %169 : vector<16x128xf32>
    %cst_59 = arith.constant 5.000000e-01 : f32
    %171 = vector.broadcast %cst_59 : f32 to vector<16x128xf32>
    %172 = arith.mulf %171, %170 : vector<16x128xf32>
    %173 = vector.extract_strided_slice %164 {offsets = [0, 128], sizes = [16, 128], strides = [1, 1]} : vector<16x512xf32> to vector<16x128xf32>
    %cst_60 = arith.constant 5.000000e-01 : f32
    %174 = vector.broadcast %cst_60 : f32 to vector<16x128xf32>
    %175 = arith.mulf %174, %173 : vector<16x128xf32>
    %176 = math.tanh %175 : vector<16x128xf32>
    %cst_61 = arith.constant 1.000000e+00 : f32
    %177 = vector.broadcast %cst_61 : f32 to vector<16x128xf32>
    %178 = arith.addf %176, %177 : vector<16x128xf32>
    %cst_62 = arith.constant 5.000000e-01 : f32
    %179 = vector.broadcast %cst_62 : f32 to vector<16x128xf32>
    %180 = arith.mulf %179, %178 : vector<16x128xf32>
    %181 = vector.extract_strided_slice %164 {offsets = [0, 256], sizes = [16, 128], strides = [1, 1]} : vector<16x512xf32> to vector<16x128xf32>
    %182 = math.tanh %181 : vector<16x128xf32>
    %183 = vector.extract_strided_slice %164 {offsets = [0, 384], sizes = [16, 128], strides = [1, 1]} : vector<16x512xf32> to vector<16x128xf32>
    %cst_63 = arith.constant 5.000000e-01 : f32
    %184 = vector.broadcast %cst_63 : f32 to vector<16x128xf32>
    %185 = arith.mulf %184, %183 : vector<16x128xf32>
    %186 = math.tanh %185 : vector<16x128xf32>
    %cst_64 = arith.constant 1.000000e+00 : f32
    %187 = vector.broadcast %cst_64 : f32 to vector<16x128xf32>
    %188 = arith.addf %186, %187 : vector<16x128xf32>
    %cst_65 = arith.constant 5.000000e-01 : f32
    %189 = vector.broadcast %cst_65 : f32 to vector<16x128xf32>
    %190 = arith.mulf %189, %188 : vector<16x128xf32>
    %191 = arith.mulf %180, %155 : vector<16x128xf32>
    %192 = arith.mulf %172, %182 : vector<16x128xf32>
    %193 = arith.addf %191, %192 : vector<16x128xf32>
    %194 = math.tanh %193 : vector<16x128xf32>
    %195 = arith.mulf %190, %194 : vector<16x128xf32>
    %c5_i32 = arith.constant 5 : i32
    %196 = arith.index_cast %c5_i32 : i32 to index
    %c0_66 = arith.constant 0 : index
    %c0_67 = arith.constant 0 : index
    %197 = vector.load %arg2[%196, %c0_66, %c0_67] : memref<8x16x512xbf16, #tpu.memory_space<vmem>>, vector<1x16x512xbf16>
    %198 = vector.shape_cast %197 : vector<1x16x512xbf16> to vector<16x512xbf16>
    %199 = arith.extf %198 : vector<16x512xbf16> to vector<16x512xf32>
    %200 = arith.truncf %195 : vector<16x128xf32> to vector<16x128xbf16>
    %cst_68 = arith.constant dense<0.000000e+00> : vector<16x512xf32>
    %201 = tpu.matmul %200, %3, %cst_68 {dimension_numbers = #tpu.dot_dimension_numbers<[1], [0], [0], [1], [0, 0, 1, 1], [], []>} : vector<16x128xbf16>, vector<128x512xbf16>, vector<16x512xf32> -> vector<16x512xf32>
    %202 = arith.addf %199, %201 : vector<16x512xf32>
    %203 = vector.extract_strided_slice %202 {offsets = [0, 0], sizes = [16, 128], strides = [1, 1]} : vector<16x512xf32> to vector<16x128xf32>
    %cst_69 = arith.constant 5.000000e-01 : f32
    %204 = vector.broadcast %cst_69 : f32 to vector<16x128xf32>
    %205 = arith.mulf %204, %203 : vector<16x128xf32>
    %206 = math.tanh %205 : vector<16x128xf32>
    %cst_70 = arith.constant 1.000000e+00 : f32
    %207 = vector.broadcast %cst_70 : f32 to vector<16x128xf32>
    %208 = arith.addf %206, %207 : vector<16x128xf32>
    %cst_71 = arith.constant 5.000000e-01 : f32
    %209 = vector.broadcast %cst_71 : f32 to vector<16x128xf32>
    %210 = arith.mulf %209, %208 : vector<16x128xf32>
    %211 = vector.extract_strided_slice %202 {offsets = [0, 128], sizes = [16, 128], strides = [1, 1]} : vector<16x512xf32> to vector<16x128xf32>
    %cst_72 = arith.constant 5.000000e-01 : f32
    %212 = vector.broadcast %cst_72 : f32 to vector<16x128xf32>
    %213 = arith.mulf %212, %211 : vector<16x128xf32>
    %214 = math.tanh %213 : vector<16x128xf32>
    %cst_73 = arith.constant 1.000000e+00 : f32
    %215 = vector.broadcast %cst_73 : f32 to vector<16x128xf32>
    %216 = arith.addf %214, %215 : vector<16x128xf32>
    %cst_74 = arith.constant 5.000000e-01 : f32
    %217 = vector.broadcast %cst_74 : f32 to vector<16x128xf32>
    %218 = arith.mulf %217, %216 : vector<16x128xf32>
    %219 = vector.extract_strided_slice %202 {offsets = [0, 256], sizes = [16, 128], strides = [1, 1]} : vector<16x512xf32> to vector<16x128xf32>
    %220 = math.tanh %219 : vector<16x128xf32>
    %221 = vector.extract_strided_slice %202 {offsets = [0, 384], sizes = [16, 128], strides = [1, 1]} : vector<16x512xf32> to vector<16x128xf32>
    %cst_75 = arith.constant 5.000000e-01 : f32
    %222 = vector.broadcast %cst_75 : f32 to vector<16x128xf32>
    %223 = arith.mulf %222, %221 : vector<16x128xf32>
    %224 = math.tanh %223 : vector<16x128xf32>
    %cst_76 = arith.constant 1.000000e+00 : f32
    %225 = vector.broadcast %cst_76 : f32 to vector<16x128xf32>
    %226 = arith.addf %224, %225 : vector<16x128xf32>
    %cst_77 = arith.constant 5.000000e-01 : f32
    %227 = vector.broadcast %cst_77 : f32 to vector<16x128xf32>
    %228 = arith.mulf %227, %226 : vector<16x128xf32>
    %229 = arith.mulf %218, %193 : vector<16x128xf32>
    %230 = arith.mulf %210, %220 : vector<16x128xf32>
    %231 = arith.addf %229, %230 : vector<16x128xf32>
    %232 = math.tanh %231 : vector<16x128xf32>
    %233 = arith.mulf %228, %232 : vector<16x128xf32>
    %c6_i32 = arith.constant 6 : i32
    %234 = arith.index_cast %c6_i32 : i32 to index
    %c0_78 = arith.constant 0 : index
    %c0_79 = arith.constant 0 : index
    %235 = vector.load %arg2[%234, %c0_78, %c0_79] : memref<8x16x512xbf16, #tpu.memory_space<vmem>>, vector<1x16x512xbf16>
    %236 = vector.shape_cast %235 : vector<1x16x512xbf16> to vector<16x512xbf16>
    %237 = arith.extf %236 : vector<16x512xbf16> to vector<16x512xf32>
    %238 = arith.truncf %233 : vector<16x128xf32> to vector<16x128xbf16>
    %cst_80 = arith.constant dense<0.000000e+00> : vector<16x512xf32>
    %239 = tpu.matmul %238, %3, %cst_80 {dimension_numbers = #tpu.dot_dimension_numbers<[1], [0], [0], [1], [0, 0, 1, 1], [], []>} : vector<16x128xbf16>, vector<128x512xbf16>, vector<16x512xf32> -> vector<16x512xf32>
    %240 = arith.addf %237, %239 : vector<16x512xf32>
    %241 = vector.extract_strided_slice %240 {offsets = [0, 0], sizes = [16, 128], strides = [1, 1]} : vector<16x512xf32> to vector<16x128xf32>
    %cst_81 = arith.constant 5.000000e-01 : f32
    %242 = vector.broadcast %cst_81 : f32 to vector<16x128xf32>
    %243 = arith.mulf %242, %241 : vector<16x128xf32>
    %244 = math.tanh %243 : vector<16x128xf32>
    %cst_82 = arith.constant 1.000000e+00 : f32
    %245 = vector.broadcast %cst_82 : f32 to vector<16x128xf32>
    %246 = arith.addf %244, %245 : vector<16x128xf32>
    %cst_83 = arith.constant 5.000000e-01 : f32
    %247 = vector.broadcast %cst_83 : f32 to vector<16x128xf32>
    %248 = arith.mulf %247, %246 : vector<16x128xf32>
    %249 = vector.extract_strided_slice %240 {offsets = [0, 128], sizes = [16, 128], strides = [1, 1]} : vector<16x512xf32> to vector<16x128xf32>
    %cst_84 = arith.constant 5.000000e-01 : f32
    %250 = vector.broadcast %cst_84 : f32 to vector<16x128xf32>
    %251 = arith.mulf %250, %249 : vector<16x128xf32>
    %252 = math.tanh %251 : vector<16x128xf32>
    %cst_85 = arith.constant 1.000000e+00 : f32
    %253 = vector.broadcast %cst_85 : f32 to vector<16x128xf32>
    %254 = arith.addf %252, %253 : vector<16x128xf32>
    %cst_86 = arith.constant 5.000000e-01 : f32
    %255 = vector.broadcast %cst_86 : f32 to vector<16x128xf32>
    %256 = arith.mulf %255, %254 : vector<16x128xf32>
    %257 = vector.extract_strided_slice %240 {offsets = [0, 256], sizes = [16, 128], strides = [1, 1]} : vector<16x512xf32> to vector<16x128xf32>
    %258 = math.tanh %257 : vector<16x128xf32>
    %259 = vector.extract_strided_slice %240 {offsets = [0, 384], sizes = [16, 128], strides = [1, 1]} : vector<16x512xf32> to vector<16x128xf32>
    %cst_87 = arith.constant 5.000000e-01 : f32
    %260 = vector.broadcast %cst_87 : f32 to vector<16x128xf32>
    %261 = arith.mulf %260, %259 : vector<16x128xf32>
    %262 = math.tanh %261 : vector<16x128xf32>
    %cst_88 = arith.constant 1.000000e+00 : f32
    %263 = vector.broadcast %cst_88 : f32 to vector<16x128xf32>
    %264 = arith.addf %262, %263 : vector<16x128xf32>
    %cst_89 = arith.constant 5.000000e-01 : f32
    %265 = vector.broadcast %cst_89 : f32 to vector<16x128xf32>
    %266 = arith.mulf %265, %264 : vector<16x128xf32>
    %267 = arith.mulf %256, %231 : vector<16x128xf32>
    %268 = arith.mulf %248, %258 : vector<16x128xf32>
    %269 = arith.addf %267, %268 : vector<16x128xf32>
    %270 = math.tanh %269 : vector<16x128xf32>
    %271 = arith.mulf %266, %270 : vector<16x128xf32>
    %c7_i32 = arith.constant 7 : i32
    %272 = arith.index_cast %c7_i32 : i32 to index
    %c0_90 = arith.constant 0 : index
    %c0_91 = arith.constant 0 : index
    %273 = vector.load %arg2[%272, %c0_90, %c0_91] : memref<8x16x512xbf16, #tpu.memory_space<vmem>>, vector<1x16x512xbf16>
    %274 = vector.shape_cast %273 : vector<1x16x512xbf16> to vector<16x512xbf16>
    %275 = arith.extf %274 : vector<16x512xbf16> to vector<16x512xf32>
    %276 = arith.truncf %271 : vector<16x128xf32> to vector<16x128xbf16>
    %cst_92 = arith.constant dense<0.000000e+00> : vector<16x512xf32>
    %277 = tpu.matmul %276, %3, %cst_92 {dimension_numbers = #tpu.dot_dimension_numbers<[1], [0], [0], [1], [0, 0, 1, 1], [], []>} : vector<16x128xbf16>, vector<128x512xbf16>, vector<16x512xf32> -> vector<16x512xf32>
    %278 = arith.addf %275, %277 : vector<16x512xf32>
    %279 = vector.extract_strided_slice %278 {offsets = [0, 0], sizes = [16, 128], strides = [1, 1]} : vector<16x512xf32> to vector<16x128xf32>
    %cst_93 = arith.constant 5.000000e-01 : f32
    %280 = vector.broadcast %cst_93 : f32 to vector<16x128xf32>
    %281 = arith.mulf %280, %279 : vector<16x128xf32>
    %282 = math.tanh %281 : vector<16x128xf32>
    %cst_94 = arith.constant 1.000000e+00 : f32
    %283 = vector.broadcast %cst_94 : f32 to vector<16x128xf32>
    %284 = arith.addf %282, %283 : vector<16x128xf32>
    %cst_95 = arith.constant 5.000000e-01 : f32
    %285 = vector.broadcast %cst_95 : f32 to vector<16x128xf32>
    %286 = arith.mulf %285, %284 : vector<16x128xf32>
    %287 = vector.extract_strided_slice %278 {offsets = [0, 128], sizes = [16, 128], strides = [1, 1]} : vector<16x512xf32> to vector<16x128xf32>
    %cst_96 = arith.constant 5.000000e-01 : f32
    %288 = vector.broadcast %cst_96 : f32 to vector<16x128xf32>
    %289 = arith.mulf %288, %287 : vector<16x128xf32>
    %290 = math.tanh %289 : vector<16x128xf32>
    %cst_97 = arith.constant 1.000000e+00 : f32
    %291 = vector.broadcast %cst_97 : f32 to vector<16x128xf32>
    %292 = arith.addf %290, %291 : vector<16x128xf32>
    %cst_98 = arith.constant 5.000000e-01 : f32
    %293 = vector.broadcast %cst_98 : f32 to vector<16x128xf32>
    %294 = arith.mulf %293, %292 : vector<16x128xf32>
    %295 = vector.extract_strided_slice %278 {offsets = [0, 256], sizes = [16, 128], strides = [1, 1]} : vector<16x512xf32> to vector<16x128xf32>
    %296 = math.tanh %295 : vector<16x128xf32>
    %297 = vector.extract_strided_slice %278 {offsets = [0, 384], sizes = [16, 128], strides = [1, 1]} : vector<16x512xf32> to vector<16x128xf32>
    %cst_99 = arith.constant 5.000000e-01 : f32
    %298 = vector.broadcast %cst_99 : f32 to vector<16x128xf32>
    %299 = arith.mulf %298, %297 : vector<16x128xf32>
    %300 = math.tanh %299 : vector<16x128xf32>
    %cst_100 = arith.constant 1.000000e+00 : f32
    %301 = vector.broadcast %cst_100 : f32 to vector<16x128xf32>
    %302 = arith.addf %300, %301 : vector<16x128xf32>
    %cst_101 = arith.constant 5.000000e-01 : f32
    %303 = vector.broadcast %cst_101 : f32 to vector<16x128xf32>
    %304 = arith.mulf %303, %302 : vector<16x128xf32>
    %305 = arith.mulf %294, %269 : vector<16x128xf32>
    %306 = arith.mulf %286, %296 : vector<16x128xf32>
    %307 = arith.addf %305, %306 : vector<16x128xf32>
    %308 = math.tanh %307 : vector<16x128xf32>
    %309 = arith.mulf %304, %308 : vector<16x128xf32>
    %c8_i32 = arith.constant 8 : i32
    %c0_102 = arith.constant 0 : index
    %c0_103 = arith.constant 0 : index
    %310 = vector.load %arg5[%c0_102, %c0_103] : memref<16x128xf32, #tpu.memory_space<vmem>>, vector<16x128xf32>
    tpu.vector_store %arg5[%c0_102, %c0_103], %309 {strides = array<i32>} : memref<16x128xf32, #tpu.memory_space<vmem>>, vector<16x128xf32>,
    %c0_104 = arith.constant 0 : index
    %c0_105 = arith.constant 0 : index
    %311 = vector.load %arg6[%c0_104, %c0_105] : memref<16x128xf32, #tpu.memory_space<vmem>>, vector<16x128xf32>
    tpu.vector_store %arg6[%c0_104, %c0_105], %307 {strides = array<i32>} : memref<16x128xf32, #tpu.memory_space<vmem>>, vector<16x128xf32>,
    %c0_i32_106 = arith.constant 0 : i32
    %312 = arith.cmpi eq, %arg1, %c0_i32_106 : i32
    %313 = arith.extui %312 : i1 to i32
    %c0_i32_107 = arith.constant 0 : i32
    %314 = arith.cmpi ne, %313, %c0_i32_107 : i32
    scf.if %314 {
      %c0_108 = arith.constant 0 : index
      %c0_109 = arith.constant 0 : index
      %315 = vector.load %arg4[%c0_108, %c0_109] : memref<16x128xf32, #tpu.memory_space<vmem>>, vector<16x128xf32>
      tpu.vector_store %arg4[%c0_108, %c0_109], %309 {strides = array<i32>} : memref<16x128xf32, #tpu.memory_space<vmem>>, vector<16x128xf32>,
    } else {
    }
    return
  }
  func.func @transform_0(%arg0: i32, %arg1: i32) -> (i32, i32, i32) {
    %c0_i32 = arith.constant 0 : i32
    %c0_i32_0 = arith.constant 0 : i32
    return %arg1, %arg0, %c0_i32 : i32, i32, i32
  }
  func.func @transform_1(%arg0: i32, %arg1: i32) -> (i32, i32) {
    %c0_i32 = arith.constant 0 : i32
    %c0_i32_0 = arith.constant 0 : i32
    %c0_i32_1 = arith.constant 0 : i32
    return %c0_i32, %c0_i32_0 : i32, i32
  }
  func.func @transform_2(%arg0: i32, %arg1: i32) -> (i32, i32) {
    %c0_i32 = arith.constant 0 : i32
    %c0_i32_0 = arith.constant 0 : i32
    return %arg0, %c0_i32 : i32, i32
  }
}

</mosaic_0001>

<bundles_post_ra>
// kernel: tpu_custom_call.1
= control target key start
LH: loop header
LB: loop body
LE: loop exit
PB: predicated region body
PF: predicated region fallthrough
CT: control target
= control target key end

     0   :  { %7 = vsyncpa [#allocation5], 0  ;;  %s2292_s0 = inlined_call_operand.hbm [shape: bf16[8,16,512], index: 0, kind: input, shape index: {}]   ;;  %s2293_s1 = inlined_call_operand.hbm [shape: bf16[128,512], index: 1, kind: input, shape index: {}]   ;;  %s2294_s2 = inlined_call_operand.hbm [shape: f32[16,128], index: 2, kind: output, shape index: {}]  }
   0x1   :  { %8 = vsyncpa [#allocation8], 0 }
   0x2   :  { %9 = vsyncpa [#allocation6], 0  ;;  %s1776_s9 = smov [#allocation4]   ;;  %s1704_s13 = scalar_lea.hbm %s2292_s0, 4096 }
   0x3   :  { %s15_s10 = sshll.u32 %s1776_s9, 4  ;;  %p1705_p0 = scmp.ne.s32.totalorder %s2292_s0, %s1704_s13  ;;  %s16_s10 = int_to_ptr.vmem [resolvable:$true] %s15_s10 }
   0x4   :  { %p1708_p1 = scmp.lt.u32.totalorder %s1704_s13, %s2292_s0 }
   0x6   :  { %p1710_p2 = pnand %p1708_p1, %p1705_p0 }
   0x8   :  { %1713 = shalt.err (!%p1710_p2)
}
   0x9   :  { %s1714_s18 = scalar_lea.vmem %s16_s10, 4096  ;;  %p1719_p4 = scmp.lt.s32.totalorder %s16_s10, %s16_s10 }
   0xa   :  { %p1715_p3 = scmp.ne.s32.totalorder %s16_s10, %s1714_s18  ;;  %p1720_p5 = scmp.lt.s32.totalorder %s1714_s18, %s1714_s18 }
   0xc   :  { %p1721_p6 = por %p1720_p5, %p1719_p4 }
   0xe   :  { %p1722_p7 = pnand %p1721_p6, %p1715_p3 }
  0x10   :  { %1725 = shalt.err (!%p1722_p7)
}
  0x11   :  { %s1777_s19 = smov 256   ;;  %s1778_s20 = smov 16  }
  0x12   :  { %21 = dma.hbm_to_vmem [thread:$0]  %s2292_s0, 4096, %s16_s10, [#allocation5], %s1777_s19, %s1777_s19, %s1778_s20  }
  0x13   :  { %s1779_s23 = smov [#allocation7]   ;;  %s1726_s27 = scalar_lea.hbm %s2293_s1, 4096 }
  0x14   :  { %s27_s24 = sshll.u32 %s1779_s23, 4  ;;  %p1727_p8 = scmp.ne.s32.totalorder %s2293_s1, %s1726_s27  ;;  %s28_s24 = int_to_ptr.vmem [resolvable:$true] %s27_s24 }
  0x15   :  { %p1730_p9 = scmp.lt.u32.totalorder %s1726_s27, %s2293_s1 }
  0x17   :  { %p1732_p10 = pnand %p1730_p9, %p1727_p8 }
  0x19   :  { %1735 = shalt.err (!%p1732_p10)
}
  0x1a   :  { %s1736_s4 = scalar_lea.vmem %s28_s24, 4096  ;;  %p1741_p12 = scmp.lt.s32.totalorder %s28_s24, %s28_s24 }
  0x1b   :  { %p1737_p11 = scmp.ne.s32.totalorder %s28_s24, %s1736_s4  ;;  %p1742_p13 = scmp.lt.s32.totalorder %s1736_s4, %s1736_s4 }
  0x1d   :  { %p1743_p0 = por %p1742_p13, %p1741_p12 }
  0x1f   :  { %p1744_p1 = pnand %p1743_p0, %p1737_p11 }
  0x21   :  { %1747 = shalt.err (!%p1744_p1)
}
  0x22   :  { %33 = dma.hbm_to_vmem [thread:$0]  %s2293_s1, 4096, %s28_s24, [#allocation8], %s1777_s19, %s1777_s19, %s1778_s20  }
  0x23   :  { %1770 = dma.done.wait [#allocation5], 4096  }
  0x24   :  { %1771 = vsyncadd [#allocation5], 4294963200 }
  0x25   :  { %1772 = dma.done.wait [#allocation8], 4096  }
  0x26   :  { %1773 = vsyncadd [#allocation8], 4294963200  ;;  %v1780_v0 = vmov 0   ;;  %v1826_v1 = vld [vmem:[#allocation7 + $0x4] ss:$16 sps:$4 sm:$0xff]   ;;  %v1781_v33 = vmov 0.0|0.0  }
  0x27   :  { %290 = vmatprep.mubr.bf16.mxu0 %v1780_v0  ;;  %333 = vmatprep.mubr.bf16.mxu1 %v1780_v0  ;;  %v1828_v2 = vld [vmem:[#allocation7] ss:$16 sps:$4 sm:$0xff]   ;;  %v1831_v3 = vld [vmem:[#allocation7 + $0x24] ss:$16 sps:$4 sm:$0xff]   ;;  %v1834_v4 = vld [vmem:[#allocation7 + $0xc] ss:$16 sps:$4 sm:$0xff]  }
  0x28   :  { %258 = vmatprep.subr.bf16.mxu0 %v1826_v1  ;;  %v1836_v5 = vld [vmem:[#allocation7 + $0x20] ss:$16 sps:$4 sm:$0xff]   ;;  %v1838_v6 = vld [vmem:[#allocation7 + $0x8] ss:$16 sps:$4 sm:$0xff]   ;;  %v1841_v7 = vld [vmem:[#allocation7 + $0x44] ss:$16 sps:$4 sm:$0xff]   ;;  %301 = vmatprep.subr.bf16.mxu1 %v1834_v4 }
  0x29   :  { %259 = vmatpush1.bf16.msra.mxu0 %v1828_v2  ;;  %v1844_v8 = vld [vmem:[#allocation7 + $0x2c] ss:$16 sps:$4 sm:$0xff]   ;;  %302 = vmatpush1.bf16.msra.mxu1 %v1838_v6  ;;  %v1847_v9 = vld [vmem:[#allocation7 + $0x28] ss:$16 sps:$4 sm:$0xff]   ;;  %v1851_v10 = vld [vmem:[#allocation7 + $0x40] ss:$16 sps:$4 sm:$0xff]  }
  0x2a   :  { %260 = vmatprep.subr.bf16.mxu0 %v1831_v3  ;;  %303 = vmatprep.subr.bf16.mxu1 %v1844_v8  ;;  %v1854_v11 = vld [vmem:[#allocation7 + $0x64] ss:$16 sps:$4 sm:$0xff]   ;;  %v1856_v12 = vld [vmem:[#allocation7 + $0x4c] ss:$16 sps:$4 sm:$0xff]   ;;  %v1859_v13 = vld [vmem:[#allocation7 + $0x48] ss:$16 sps:$4 sm:$0xff]  }
  0x2b   :  { %v1863_v14 = vld [vmem:[#allocation7 + $0x60] ss:$16 sps:$4 sm:$0xff]   ;;  %v1865_v15 = vld [vmem:[#allocation7 + $0x6c] ss:$16 sps:$4 sm:$0xff]   ;;  %v1868_v16 = vld [vmem:[#allocation7 + $0x84] ss:$16 sps:$4 sm:$0xff]  }
  0x2c   :  { %v1871_v17 = vld [vmem:[#allocation7 + $0x80] ss:$16 sps:$4 sm:$0xff]   ;;  %v1873_v18 = vld [vmem:[#allocation7 + $0x68] ss:$16 sps:$4 sm:$0xff]   ;;  %v1877_v19 = vld [vmem:[#allocation7 + $0x8c] ss:$16 sps:$4 sm:$0xff]  }
  0x2d   :  { %261 = vmatpush1.bf16.msra.mxu0 %v1836_v5  ;;  %304 = vmatpush1.bf16.msra.mxu1 %v1847_v9  ;;  %v1880_v20 = vld [vmem:[#allocation7 + $0xa4] ss:$16 sps:$4 sm:$0xff]   ;;  %v1883_v21 = vld [vmem:[#allocation7 + $0x88] ss:$16 sps:$4 sm:$0xff]   ;;  %v1887_v22 = vld [vmem:[#allocation7 + $0xa0] ss:$16 sps:$4 sm:$0xff]  }
  0x2e   :  { %262 = vmatprep.subr.bf16.mxu0 %v1841_v7  ;;  %305 = vmatprep.subr.bf16.mxu1 %v1856_v12  ;;  %v1889_v23 = vld [vmem:[#allocation7 + $0xac] ss:$16 sps:$4 sm:$0xff]   ;;  %v1892_v24 = vld [vmem:[#allocation7 + $0xc4] ss:$16 sps:$4 sm:$0xff]   ;;  %v1895_v25 = vld [vmem:[#allocation7 + $0xa8] ss:$16 sps:$4 sm:$0xff]  }
  0x2f   :  { %v1899_v26 = vld [vmem:[#allocation7 + $0xc0] ss:$16 sps:$4 sm:$0xff]   ;;  %v1901_v27 = vld [vmem:[#allocation7 + $0xcc] ss:$16 sps:$4 sm:$0xff]   ;;  %v1904_v28 = vld [vmem:[#allocation7 + $0xe4] ss:$16 sps:$4 sm:$0xff]  }
  0x30   :  { %v1907_v29 = vld [vmem:[#allocation7 + $0xc8] ss:$16 sps:$4 sm:$0xff]   ;;  %v1911_v30 = vld [vmem:[#allocation7 + $0xe0] ss:$16 sps:$4 sm:$0xff]   ;;  %v1913_v31 = vld [vmem:[#allocation7 + $0xec] ss:$16 sps:$4 sm:$0xff]  }
  0x31   :  { %263 = vmatpush1.bf16.msra.mxu0 %v1851_v10  ;;  %306 = vmatpush1.bf16.msra.mxu1 %v1859_v13  ;;  %v1917_v32 = vld [vmem:[#allocation7 + $0xe8] ss:$16 sps:$4 sm:$0xff]   ;;  %v85_v34 = vld [vmem:[#allocation4] sm:$0xff]  ;;  %v87_v35 = vld [vmem:[#allocation4 + $0x10] sm:$0xff]  ;;  %s1782_s1 = smov [#allocation9]  }
  0x32   :  { %264 = vmatprep.subr.bf16.mxu0 %v1854_v11  ;;  %307 = vmatprep.subr.bf16.mxu1 %v1865_v15  ;;  %v89_v36 = vunpack.c.l.bf16 %v85_v34  ;;  %v90_v37 = vunpack.c.h.bf16 %v85_v34  ;;  %v86_v38 = vld [vmem:[#allocation4 + $0x8] sm:$0xff]  ;;  %v93_v39 = vunpack.c.l.bf16 %v87_v35  ;;  %v94_v41 = vunpack.c.h.bf16 %v87_v35  ;;  %v88_v42 = vld [vmem:[#allocation4 + $0x18] sm:$0xff]  ;;  %s1410_s6 = sshll.u32 %s1782_s1, 4  ;;  %s1411_s6 = int_to_ptr.vmem [resolvable:$true] %s1410_s6 }
  0x33   :  { %v91_v45 = vunpack.c.l.bf16 %v86_v38  ;;  %v95_v52 = vunpack.c.l.bf16 %v88_v42  ;;  %v92_v60 = vunpack.c.h.bf16 %v86_v38  ;;  %v96_v63 = vunpack.c.h.bf16 %v88_v42  ;;  %s1748_s7 = scalar_lea.vmem %s1411_s6, 256  ;;  %p1753_p3 = scmp.lt.s32.totalorder %s1411_s6, %s1411_s6 }
  0x34   :  { %p1749_p2 = scmp.ne.s32.totalorder %s1411_s6, %s1748_s7  ;;  %p1754_p4 = scmp.lt.s32.totalorder %s1748_s7, %s1748_s7 }
  0x35   :  { %265 = vmatpush1.bf16.msra.mxu0 %v1863_v14  ;;  %308 = vmatpush1.bf16.msra.mxu1 %v1873_v18 }
  0x36   :  { %266 = vmatprep.subr.bf16.mxu0 %v1868_v16  ;;  %309 = vmatprep.subr.bf16.mxu1 %v1877_v19  ;;  %p1755_p5 = por %p1754_p4, %p1753_p3 }
  0x38   :  { %p1756_p6 = pnand %p1755_p5, %p1749_p2 }
  0x39   :  { %267 = vmatpush1.bf16.msra.mxu0 %v1871_v17  ;;  %310 = vmatpush1.bf16.msra.mxu1 %v1883_v21 }
  0x3a   :  { %268 = vmatprep.subr.bf16.mxu0 %v1880_v20  ;;  %311 = vmatprep.subr.bf16.mxu1 %v1889_v23 }
  0x3d   :  { %269 = vmatpush1.bf16.msra.mxu0 %v1887_v22  ;;  %312 = vmatpush1.bf16.msra.mxu1 %v1895_v25 }
  0x3e   :  { %270 = vmatprep.subr.bf16.mxu0 %v1892_v24  ;;  %313 = vmatprep.subr.bf16.mxu1 %v1901_v27 }
  0x41   :  { %271 = vmatpush1.bf16.msra.mxu0 %v1899_v26  ;;  %314 = vmatpush1.bf16.msra.mxu1 %v1907_v29 }
  0x42   :  { %272 = vmatprep.subr.bf16.mxu0 %v1904_v28  ;;  %315 = vmatprep.subr.bf16.mxu1 %v1913_v31 }
  0x45   :  { %273 = vmatpush1.bf16.msra.mxu0 %v1911_v30  ;;  %316 = vmatpush1.bf16.msra.mxu1 %v1917_v32 }
  0x46   :  { %402 = vmatprep.subr.bf16.mxu0 %v1826_v1  ;;  %445 = vmatprep.subr.bf16.mxu1 %v1834_v4 }
  0x48   :  { %291 = vmatmul.mubr.bf16.vlgmr.msra.gmra.mrb[0].mxu0 %v1781_v33  ;;  %334 = vmatmul.mubr.bf16.vlgmr.msra.gmra.mrb[0].mxu1 %v1781_v33 }
  0x49   :  { %403 = vmatpush1.bf16.msra.mxu0 %v1828_v2  ;;  %434 = vmatprep.mubr.bf16.mxu0 %v1780_v0 }
  0x4a   :  { %404 = vmatprep.subr.bf16.mxu0 %v1831_v3  ;;  %446 = vmatpush1.bf16.msra.mxu1 %v1838_v6 }
  0x4b   :  { %477 = vmatprep.mubr.bf16.mxu1 %v1780_v0  ;;  %447 = vmatprep.subr.bf16.mxu1 %v1844_v8 }
  0x4d   :  { %405 = vmatpush1.bf16.msra.mxu0 %v1836_v5 }
  0x4e   :  { %406 = vmatprep.subr.bf16.mxu0 %v1841_v7  ;;  %448 = vmatpush1.bf16.msra.mxu1 %v1847_v9 }
  0x4f   :  { %449 = vmatprep.subr.bf16.mxu1 %v1856_v12 }
  0x51   :  { %407 = vmatpush1.bf16.msra.mxu0 %v1851_v10 }
  0x52   :  { %408 = vmatprep.subr.bf16.mxu0 %v1854_v11  ;;  %450 = vmatpush1.bf16.msra.mxu1 %v1859_v13 }
  0x53   :  { %451 = vmatprep.subr.bf16.mxu1 %v1865_v15 }
  0x55   :  { %409 = vmatpush1.bf16.msra.mxu0 %v1863_v14 }
  0x56   :  { %410 = vmatprep.subr.bf16.mxu0 %v1868_v16  ;;  %452 = vmatpush1.bf16.msra.mxu1 %v1873_v18 }
  0x57   :  { %453 = vmatprep.subr.bf16.mxu1 %v1877_v19 }
  0x59   :  { %411 = vmatpush1.bf16.msra.mxu0 %v1871_v17 }
  0x5a   :  { %412 = vmatprep.subr.bf16.mxu0 %v1880_v20  ;;  %454 = vmatpush1.bf16.msra.mxu1 %v1883_v21 }
  0x5b   :  { %455 = vmatprep.subr.bf16.mxu1 %v1889_v23 }
  0x5d   :  { %413 = vmatpush1.bf16.msra.mxu0 %v1887_v22 }
  0x5e   :  { %414 = vmatprep.subr.bf16.mxu0 %v1892_v24  ;;  %456 = vmatpush1.bf16.msra.mxu1 %v1895_v25 }
  0x5f   :  { %457 = vmatprep.subr.bf16.mxu1 %v1901_v27 }
  0x61   :  { %415 = vmatpush1.bf16.msra.mxu0 %v1899_v26 }
  0x62   :  { %416 = vmatprep.subr.bf16.mxu0 %v1904_v28  ;;  %458 = vmatpush1.bf16.msra.mxu1 %v1907_v29 }
  0x63   :  { %459 = vmatprep.subr.bf16.mxu1 %v1913_v31 }
  0x65   :  { %417 = vmatpush1.bf16.msra.mxu0 %v1911_v30 }
  0x66   :  { %546 = vmatprep.subr.bf16.mxu0 %v1826_v1  ;;  %460 = vmatpush1.bf16.msra.mxu1 %v1917_v32 }
  0x67   :  { %589 = vmatprep.subr.bf16.mxu1 %v1834_v4 }
 0x11b   :  { %v292_v40 = vpop.f32.mrb[0].mxu0  ;;  %v335_v51 = vpop.f32.mrb[0].mxu1 }
 0x11c   :  { %v344_v43 = vadd.f32 %v292_v40, %v89_v36  ;;  %v294_v44 = vpop.f32.mrb[1].mxu0  ;;  %v337_v55 = vpop.f32.mrb[1].mxu1  ;;  %v346_v57 = vadd.f32 %v335_v51, %v91_v45 }
 0x11d   :  { %v345_v46 = vadd.f32 %v294_v44, %v90_v37  ;;  %v296_v47 = vpop.f32.mrb[2].mxu0  ;;  %v339_v58 = vpop.f32.mrb[2].mxu1  ;;  %v347_v33 = vadd.f32 %v337_v55, %v92_v60 }
 0x11e   :  { %v352_v48 = vmul.f32 0.5, %v344_v43  ;;  %v348_v49 = vadd.f32 %v296_v47, %v93_v39  ;;  %v298_v50 = vpop.f32.mrb[3].mxu0  ;;  %v341_v61 = vpop.f32.mrb[3].mxu1  ;;  %v350_v62 = vadd.f32 %v339_v58, %v95_v52 }
 0x11f   :  { %v360_v53 = vmul.f32 0.5, %v345_v46  ;;  %v349_v54 = vadd.f32 %v298_v50, %v94_v41  ;;  %v351_v34 = vadd.f32 %v341_v61, %v96_v63  ;;  %v370_v35 = vmul.f32 0.5, %v347_v33 }
 0x120   :  { %1512 = vtanh.f32 %v352_v48  ;;  %v353_v56 = vmul.f32 0.5, %v348_v49 }
 0x121   :  { %1514 = vtanh.f32 %v360_v53  ;;  %v361_v59 = vmul.f32 0.5, %v349_v54  ;;  %v371_v37 = vmul.f32 0.5, %v351_v34 }
 0x122   :  { %1516 = vtanh.f32 %v353_v56 }
 0x123   :  { %1518 = vtanh.f32 %v361_v59 }
 0x124   :  { %1520 = vtanh.f32 %v346_v57 }
 0x125   :  { %1522 = vtanh.f32 %v350_v62 }
 0x126   :  { %1524 = vtanh.f32 %v370_v35 }
 0x127   :  { %1526 = vtanh.f32 %v371_v37  ;;  %v389_v37 = vld [vmem:[#allocation4 + $0x20] sm:$0xff] }
 0x12a   :  { %v1513_v36 = vpop.eup %1512 }
 0x12b   :  { %v1515_v39 = vpop.eup %1514  ;;  %v356_v40 = vadd.f32 1.0, %v1513_v36 }
 0x12c   :  { %v1517_v41 = vpop.eup %1516  ;;  %v364_v43 = vadd.f32 1.0, %v1515_v39  ;;  %v391_v39 = vld [vmem:[#allocation4 + $0x30] sm:$0xff] }
 0x12d   :  { %v1519_v44 = vpop.eup %1518  ;;  %v358_v45 = vmul.f32 0.5, %v356_v40  ;;  %v357_v46 = vadd.f32 1.0, %v1517_v41  ;;  %v393_v40 = vunpack.c.l.bf16 %v389_v37  ;;  %v390_v41 = vld [vmem:[#allocation4 + $0x28] sm:$0xff] }
 0x12e   :  { %v1521_v38 = vpop.eup %1520  ;;  %v366_v47 = vmul.f32 0.5, %v364_v43  ;;  %v365_v48 = vadd.f32 1.0, %v1519_v44  ;;  %v394_v43 = vunpack.c.h.bf16 %v389_v37  ;;  %v397_v44 = vunpack.c.l.bf16 %v391_v39 }
 0x12f   :  { %v359_v42 = vmul.f32 0.5, %v357_v46  ;;  %v380_v49 = vmul.f32 %v1521_v38, %v358_v45  ;;  %v1523_v50 = vpop.eup %1522  ;;  %v398_v38 = vunpack.c.h.bf16 %v391_v39 }
 0x130   :  { %v378_v51 = vmul.f32 0.0, %v366_v47  ;;  %v367_v52 = vmul.f32 0.5, %v365_v48  ;;  %v1525_v57 = vpop.eup %1524  ;;  %v395_v48 = vunpack.c.l.bf16 %v390_v41 }
 0x131   :  { %v381_v53 = vmul.f32 %v1523_v50, %v359_v42  ;;  %v1527_v58 = vpop.eup %1526  ;;  %v374_v59 = vadd.f32 1.0, %v1525_v57  ;;  %v392_v50 = vld [vmem:[#allocation4 + $0x38] sm:$0xff] }
 0x132   :  { %v379_v54 = vmul.f32 0.0, %v367_v52  ;;  %v1958_v55 = vadd.f32 %v380_v49, %v378_v51  ;;  %v375_v60 = vadd.f32 1.0, %v1527_v58  ;;  %v400_v37 = vunpack.c.h.bf16 %v392_v50 }
 0x133   :  { %v376_v62 = vmul.f32 0.5, %v374_v59 }
 0x134   :  { %1528 = vtanh.f32 %v1958_v55  ;;  %v1961_v56 = vadd.f32 %v381_v53, %v379_v54  ;;  %v377_v63 = vmul.f32 0.5, %v375_v60 }
 0x136   :  { %1530 = vtanh.f32 %v1961_v56 }
 0x13e   :  { %v1529_v61 = vpop.eup %1528 }
 0x13f   :  { %v386_v34 = vmul.f32 %v1529_v61, %v376_v62  ;;  %v399_v61 = vunpack.c.l.bf16 %v392_v50 }
 0x140   :  { %v1531_v33 = vpop.eup %1530 }
 0x141   :  { %v387_v35 = vmul.f32 %v1531_v33, %v377_v63 }
 0x143   :  { %v401_v36 = vpack.c.bf16 %v387_v35, %v386_v34  ;;  %v396_v35 = vunpack.c.h.bf16 %v390_v41 }
 0x145   :  { %435 = vmatmul.mubr.bf16.vlgmr.msra.gmra.mrb[4].mxu0 %v401_v36  ;;  %478 = vmatmul.mubr.bf16.vlgmr.msra.gmra.mrb[4].mxu1 %v401_v36 }
 0x146   :  { %547 = vmatpush1.bf16.msra.mxu0 %v1828_v2  ;;  %590 = vmatpush1.bf16.msra.mxu1 %v1838_v6 }
 0x147   :  { %548 = vmatprep.subr.bf16.mxu0 %v1831_v3  ;;  %591 = vmatprep.subr.bf16.mxu1 %v1844_v8 }
 0x148   :  { %578 = vmatprep.mubr.bf16.mxu0 %v1780_v0  ;;  %621 = vmatprep.mubr.bf16.mxu1 %v1780_v0 }
 0x14a   :  { %549 = vmatpush1.bf16.msra.mxu0 %v1836_v5  ;;  %592 = vmatpush1.bf16.msra.mxu1 %v1847_v9 }
 0x14b   :  { %550 = vmatprep.subr.bf16.mxu0 %v1841_v7  ;;  %593 = vmatprep.subr.bf16.mxu1 %v1856_v12 }
 0x14e   :  { %551 = vmatpush1.bf16.msra.mxu0 %v1851_v10  ;;  %594 = vmatpush1.bf16.msra.mxu1 %v1859_v13 }
 0x14f   :  { %552 = vmatprep.subr.bf16.mxu0 %v1854_v11  ;;  %595 = vmatprep.subr.bf16.mxu1 %v1865_v15 }
 0x152   :  { %553 = vmatpush1.bf16.msra.mxu0 %v1863_v14  ;;  %596 = vmatpush1.bf16.msra.mxu1 %v1873_v18 }
 0x153   :  { %554 = vmatprep.subr.bf16.mxu0 %v1868_v16  ;;  %597 = vmatprep.subr.bf16.mxu1 %v1877_v19 }
 0x156   :  { %555 = vmatpush1.bf16.msra.mxu0 %v1871_v17  ;;  %598 = vmatpush1.bf16.msra.mxu1 %v1883_v21 }
 0x157   :  { %556 = vmatprep.subr.bf16.mxu0 %v1880_v20  ;;  %599 = vmatprep.subr.bf16.mxu1 %v1889_v23 }
 0x15a   :  { %557 = vmatpush1.bf16.msra.mxu0 %v1887_v22  ;;  %600 = vmatpush1.bf16.msra.mxu1 %v1895_v25 }
 0x15b   :  { %558 = vmatprep.subr.bf16.mxu0 %v1892_v24  ;;  %601 = vmatprep.subr.bf16.mxu1 %v1901_v27 }
 0x15e   :  { %559 = vmatpush1.bf16.msra.mxu0 %v1899_v26  ;;  %602 = vmatpush1.bf16.msra.mxu1 %v1907_v29 }
 0x15f   :  { %560 = vmatprep.subr.bf16.mxu0 %v1904_v28  ;;  %603 = vmatprep.subr.bf16.mxu1 %v1913_v31 }
 0x162   :  { %561 = vmatpush1.bf16.msra.mxu0 %v1911_v30  ;;  %604 = vmatpush1.bf16.msra.mxu1 %v1917_v32 }
 0x163   :  { %690 = vmatprep.subr.bf16.mxu0 %v1826_v1  ;;  %733 = vmatprep.subr.bf16.mxu1 %v1834_v4 }
 0x218   :  { %v436_v45 = vpop.f32.mrb[4].mxu0  ;;  %v479_v46 = vpop.f32.mrb[4].mxu1 }
 0x219   :  { %v488_v47 = vadd.f32 %v436_v45, %v393_v40  ;;  %v438_v42 = vpop.f32.mrb[5].mxu0  ;;  %v481_v49 = vpop.f32.mrb[5].mxu1  ;;  %v490_v63 = vadd.f32 %v479_v46, %v395_v48 }
 0x21a   :  { %v489_v51 = vadd.f32 %v438_v42, %v394_v43  ;;  %v440_v52 = vpop.f32.mrb[6].mxu0  ;;  %v483_v53 = vpop.f32.mrb[6].mxu1  ;;  %v491_v39 = vadd.f32 %v481_v49, %v396_v35 }
 0x21b   :  { %v496_v54 = vmul.f32 0.5, %v488_v47  ;;  %v492_v57 = vadd.f32 %v440_v52, %v397_v44  ;;  %v442_v58 = vpop.f32.mrb[7].mxu0  ;;  %v485_v59 = vpop.f32.mrb[7].mxu1  ;;  %v494_v36 = vadd.f32 %v483_v53, %v399_v61 }
 0x21c   :  { %v504_v60 = vmul.f32 0.5, %v489_v51  ;;  %v493_v62 = vadd.f32 %v442_v58, %v398_v38  ;;  %v495_v40 = vadd.f32 %v485_v59, %v400_v37  ;;  %v514_v47 = vmul.f32 0.5, %v491_v39 }
 0x21d   :  { %1532 = vtanh.f32 %v496_v54  ;;  %v497_v33 = vmul.f32 0.5, %v492_v57 }
 0x21e   :  { %1534 = vtanh.f32 %v504_v60  ;;  %v505_v34 = vmul.f32 0.5, %v493_v62  ;;  %v515_v38 = vmul.f32 0.5, %v495_v40 }
 0x21f   :  { %1536 = vtanh.f32 %v497_v33 }
 0x220   :  { %1538 = vtanh.f32 %v490_v63 }
 0x221   :  { %1540 = vtanh.f32 %v505_v34 }
 0x222   :  { %1542 = vtanh.f32 %v494_v36 }
 0x223   :  { %1544 = vtanh.f32 %v514_v47  ;;  %v535_v47 = vld [vmem:[#allocation4 + $0x50] sm:$0xff] }
 0x224   :  { %1546 = vtanh.f32 %v515_v38  ;;  %v534_v38 = vld [vmem:[#allocation4 + $0x48] sm:$0xff] }
 0x227   :  { %v1533_v43 = vpop.eup %1532 }
 0x228   :  { %v1535_v44 = vpop.eup %1534  ;;  %v500_v45 = vadd.f32 1.0, %v1533_v43 }
 0x229   :  { %v508_v42 = vadd.f32 1.0, %v1535_v44  ;;  %v1537_v51 = vpop.eup %1536 }
 0x22a   :  { %v502_v46 = vmul.f32 0.5, %v500_v45  ;;  %v1539_v48 = vpop.eup %1538  ;;  %v501_v54 = vadd.f32 1.0, %v1537_v51 }
 0x22b   :  { %v510_v52 = vmul.f32 0.5, %v508_v42  ;;  %v1541_v41 = vpop.eup %1540 }
 0x22c   :  { %v524_v57 = vmul.f32 %v1539_v48, %v502_v46  ;;  %v503_v53 = vmul.f32 0.5, %v501_v54  ;;  %v509_v49 = vadd.f32 1.0, %v1541_v41  ;;  %v1543_v58 = vpop.eup %1542  ;;  %v541_v46 = vunpack.c.l.bf16 %v535_v47 }
 0x22d   :  { %v522_v50 = vmul.f32 %v510_v52, %v1958_v55  ;;  %v1545_v33 = vpop.eup %1544  ;;  %v542_v54 = vunpack.c.h.bf16 %v535_v47 }
 0x22e   :  { %v511_v60 = vmul.f32 0.5, %v509_v49  ;;  %v525_v61 = vmul.f32 %v1543_v58, %v503_v53  ;;  %v1547_v34 = vpop.eup %1546  ;;  %v518_v35 = vadd.f32 1.0, %v1545_v33  ;;  %v536_v49 = vld [vmem:[#allocation4 + $0x58] sm:$0xff] }
 0x22f   :  { %v1999_v59 = vadd.f32 %v524_v57, %v522_v50  ;;  %v519_v55 = vadd.f32 1.0, %v1547_v34  ;;  %v539_v57 = vunpack.c.l.bf16 %v534_v38 }
 0x230   :  { %v523_v62 = vmul.f32 %v511_v60, %v1961_v56  ;;  %v520_v37 = vmul.f32 0.5, %v518_v35  ;;  %v533_v56 = vld [vmem:[#allocation4 + $0x40] sm:$0xff] }
 0x231   :  { %1548 = vtanh.f32 %v1999_v59  ;;  %v521_v39 = vmul.f32 0.5, %v519_v55  ;;  %v537_v42 = vunpack.c.l.bf16 %v533_v56  ;;  %v538_v51 = vunpack.c.h.bf16 %v533_v56 }
 0x232   :  { %v2003_v63 = vadd.f32 %v525_v61, %v523_v62  ;;  %v544_v56 = vunpack.c.h.bf16 %v536_v49 }
 0x234   :  { %1550 = vtanh.f32 %v2003_v63 }
 0x23b   :  { %v1549_v36 = vpop.eup %1548 }
 0x23c   :  { %v530_v43 = vmul.f32 %v1549_v36, %v520_v37  ;;  %v543_v36 = vunpack.c.l.bf16 %v536_v49 }
 0x23e   :  { %v1551_v40 = vpop.eup %1550 }
 0x23f   :  { %v531_v44 = vmul.f32 %v1551_v40, %v521_v39 }
 0x241   :  { %v545_v45 = vpack.c.bf16 %v531_v44, %v530_v43  ;;  %v540_v44 = vunpack.c.h.bf16 %v534_v38 }
 0x243   :  { %579 = vmatmul.mubr.bf16.vlgmr.msra.gmra.mrb[8].mxu0 %v545_v45  ;;  %622 = vmatmul.mubr.bf16.vlgmr.msra.gmra.mrb[8].mxu1 %v545_v45 }
 0x244   :  { %691 = vmatpush1.bf16.msra.mxu0 %v1828_v2  ;;  %734 = vmatpush1.bf16.msra.mxu1 %v1838_v6 }
 0x245   :  { %692 = vmatprep.subr.bf16.mxu0 %v1831_v3  ;;  %735 = vmatprep.subr.bf16.mxu1 %v1844_v8 }
 0x246   :  { %722 = vmatprep.mubr.bf16.mxu0 %v1780_v0  ;;  %765 = vmatprep.mubr.bf16.mxu1 %v1780_v0 }
 0x248   :  { %693 = vmatpush1.bf16.msra.mxu0 %v1836_v5  ;;  %736 = vmatpush1.bf16.msra.mxu1 %v1847_v9 }
 0x249   :  { %694 = vmatprep.subr.bf16.mxu0 %v1841_v7  ;;  %737 = vmatprep.subr.bf16.mxu1 %v1856_v12 }
 0x24c   :  { %695 = vmatpush1.bf16.msra.mxu0 %v1851_v10  ;;  %738 = vmatpush1.bf16.msra.mxu1 %v1859_v13 }
 0x24d   :  { %696 = vmatprep.subr.bf16.mxu0 %v1854_v11  ;;  %739 = vmatprep.subr.bf16.mxu1 %v1865_v15 }
 0x250   :  { %697 = vmatpush1.bf16.msra.mxu0 %v1863_v14  ;;  %740 = vmatpush1.bf16.msra.mxu1 %v1873_v18 }
 0x251   :  { %698 = vmatprep.subr.bf16.mxu0 %v1868_v16  ;;  %741 = vmatprep.subr.bf16.mxu1 %v1877_v19 }
 0x254   :  { %699 = vmatpush1.bf16.msra.mxu0 %v1871_v17  ;;  %742 = vmatpush1.bf16.msra.mxu1 %v1883_v21 }
 0x255   :  { %700 = vmatprep.subr.bf16.mxu0 %v1880_v20  ;;  %743 = vmatprep.subr.bf16.mxu1 %v1889_v23 }
 0x258   :  { %701 = vmatpush1.bf16.msra.mxu0 %v1887_v22  ;;  %744 = vmatpush1.bf16.msra.mxu1 %v1895_v25 }
 0x259   :  { %702 = vmatprep.subr.bf16.mxu0 %v1892_v24  ;;  %745 = vmatprep.subr.bf16.mxu1 %v1901_v27 }
 0x25c   :  { %703 = vmatpush1.bf16.msra.mxu0 %v1899_v26  ;;  %746 = vmatpush1.bf16.msra.mxu1 %v1907_v29 }
 0x25d   :  { %704 = vmatprep.subr.bf16.mxu0 %v1904_v28  ;;  %747 = vmatprep.subr.bf16.mxu1 %v1913_v31 }
 0x260   :  { %705 = vmatpush1.bf16.msra.mxu0 %v1911_v30  ;;  %748 = vmatpush1.bf16.msra.mxu1 %v1917_v32 }
 0x261   :  { %834 = vmatprep.subr.bf16.mxu0 %v1826_v1  ;;  %877 = vmatprep.subr.bf16.mxu1 %v1834_v4 }
 0x316   :  { %v580_v48 = vpop.f32.mrb[8].mxu0  ;;  %v623_v52 = vpop.f32.mrb[8].mxu1 }
 0x317   :  { %v632_v41 = vadd.f32 %v580_v48, %v537_v42  ;;  %v582_v50 = vpop.f32.mrb[9].mxu0  ;;  %v625_v53 = vpop.f32.mrb[9].mxu1  ;;  %v634_v39 = vadd.f32 %v623_v52, %v539_v57 }
 0x318   :  { %v633_v58 = vadd.f32 %v582_v50, %v538_v51  ;;  %v584_v60 = vpop.f32.mrb[10].mxu0  ;;  %v627_v61 = vpop.f32.mrb[10].mxu1  ;;  %v635_v47 = vadd.f32 %v625_v53, %v540_v44 }
 0x319   :  { %v640_v62 = vmul.f32 0.5, %v632_v41  ;;  %v636_v33 = vadd.f32 %v584_v60, %v541_v46  ;;  %v586_v34 = vpop.f32.mrb[11].mxu0  ;;  %v629_v35 = vpop.f32.mrb[11].mxu1  ;;  %v638_v45 = vadd.f32 %v627_v61, %v543_v36 }
 0x31a   :  { %v648_v55 = vmul.f32 0.5, %v633_v58  ;;  %v637_v37 = vadd.f32 %v586_v34, %v542_v54  ;;  %v639_v42 = vadd.f32 %v629_v35, %v544_v56  ;;  %v658_v41 = vmul.f32 0.5, %v635_v47 }
 0x31b   :  { %1552 = vtanh.f32 %v640_v62  ;;  %v641_v40 = vmul.f32 0.5, %v636_v33 }
 0x31c   :  { %1554 = vtanh.f32 %v648_v55  ;;  %v649_v43 = vmul.f32 0.5, %v637_v37  ;;  %v659_v54 = vmul.f32 0.5, %v639_v42 }
 0x31d   :  { %1556 = vtanh.f32 %v641_v40 }
 0x31e   :  { %1558 = vtanh.f32 %v634_v39 }
 0x31f   :  { %1560 = vtanh.f32 %v649_v43 }
 0x320   :  { %1562 = vtanh.f32 %v638_v45 }
 0x321   :  { %1564 = vtanh.f32 %v658_v41 }
 0x322   :  { %1566 = vtanh.f32 %v659_v54 }
 0x325   :  { %v1553_v51 = vpop.eup %1552 }
 0x326   :  { %v1555_v46 = vpop.eup %1554  ;;  %v644_v48 = vadd.f32 1.0, %v1553_v51 }
 0x327   :  { %v652_v50 = vadd.f32 1.0, %v1555_v46  ;;  %v1557_v58 = vpop.eup %1556 }
 0x328   :  { %v646_v52 = vmul.f32 0.5, %v644_v48  ;;  %v1559_v57 = vpop.eup %1558  ;;  %v645_v62 = vadd.f32 1.0, %v1557_v58 }
 0x329   :  { %v654_v60 = vmul.f32 0.5, %v652_v50  ;;  %v1561_v38 = vpop.eup %1560 }
 0x32a   :  { %v668_v33 = vmul.f32 %v1559_v57, %v646_v52  ;;  %v647_v61 = vmul.f32 0.5, %v645_v62  ;;  %v653_v53 = vadd.f32 1.0, %v1561_v38  ;;  %v1563_v34 = vpop.eup %1562 }
 0x32b   :  { %v666_v49 = vmul.f32 %v654_v60, %v1999_v59  ;;  %v1565_v40 = vpop.eup %1564 }
 0x32c   :  { %v655_v55 = vmul.f32 0.5, %v653_v53  ;;  %v669_v36 = vmul.f32 %v1563_v34, %v647_v61  ;;  %v1567_v43 = vpop.eup %1566  ;;  %v662_v44 = vadd.f32 1.0, %v1565_v40 }
 0x32d   :  { %v2041_v35 = vadd.f32 %v668_v33, %v666_v49  ;;  %v663_v59 = vadd.f32 1.0, %v1567_v43 }
 0x32e   :  { %v667_v37 = vmul.f32 %v655_v55, %v2003_v63  ;;  %v664_v56 = vmul.f32 0.5, %v662_v44 }
 0x32f   :  { %1568 = vtanh.f32 %v2041_v35  ;;  %v665_v47 = vmul.f32 0.5, %v663_v59 }
 0x330   :  { %v2045_v39 = vadd.f32 %v669_v36, %v667_v37 }
 0x332   :  { %1570 = vtanh.f32 %v2045_v39 }
 0x339   :  { %v1569_v45 = vpop.eup %1568 }
 0x33a   :  { %v674_v51 = vmul.f32 %v1569_v45, %v664_v56 }
 0x33c   :  { %v1571_v42 = vpop.eup %1570 }
 0x33d   :  { %v675_v46 = vmul.f32 %v1571_v42, %v665_v47 }
 0x33f   :  { %v689_v48 = vpack.c.bf16 %v675_v46, %v674_v51 }
 0x341   :  { %723 = vmatmul.mubr.bf16.vlgmr.msra.gmra.mrb[12].mxu0 %v689_v48  ;;  %766 = vmatmul.mubr.bf16.vlgmr.msra.gmra.mrb[12].mxu1 %v689_v48 }
 0x342   :  { %835 = vmatpush1.bf16.msra.mxu0 %v1828_v2  ;;  %878 = vmatpush1.bf16.msra.mxu1 %v1838_v6  ;;  %v677_v2 = vld [vmem:[#allocation4 + $0x60] sm:$0xff]  ;;  %v678_v6 = vld [vmem:[#allocation4 + $0x68] sm:$0xff] }
 0x343   :  { %836 = vmatprep.subr.bf16.mxu0 %v1831_v3  ;;  %879 = vmatprep.subr.bf16.mxu1 %v1844_v8  ;;  %v679_v3 = vld [vmem:[#allocation4 + $0x70] sm:$0xff]  ;;  %v684_v33 = vunpack.c.h.bf16 %v678_v6 }
 0x344   :  { %866 = vmatprep.mubr.bf16.mxu0 %v1780_v0  ;;  %909 = vmatprep.mubr.bf16.mxu1 %v1780_v0  ;;  %v685_v8 = vunpack.c.l.bf16 %v679_v3 }
 0x346   :  { %837 = vmatpush1.bf16.msra.mxu0 %v1836_v5  ;;  %880 = vmatpush1.bf16.msra.mxu1 %v1847_v9  ;;  %v681_v5 = vunpack.c.l.bf16 %v677_v2 }
 0x347   :  { %838 = vmatprep.subr.bf16.mxu0 %v1841_v7  ;;  %881 = vmatprep.subr.bf16.mxu1 %v1856_v12  ;;  %v682_v7 = vunpack.c.h.bf16 %v677_v2 }
 0x34a   :  { %839 = vmatpush1.bf16.msra.mxu0 %v1851_v10  ;;  %882 = vmatpush1.bf16.msra.mxu1 %v1859_v13  ;;  %v683_v13 = vunpack.c.l.bf16 %v678_v6 }
 0x34b   :  { %840 = vmatprep.subr.bf16.mxu0 %v1854_v11  ;;  %883 = vmatprep.subr.bf16.mxu1 %v1865_v15  ;;  %v686_v11 = vunpack.c.h.bf16 %v679_v3 }
 0x34e   :  { %841 = vmatpush1.bf16.msra.mxu0 %v1863_v14  ;;  %884 = vmatpush1.bf16.msra.mxu1 %v1873_v18 }
 0x34f   :  { %842 = vmatprep.subr.bf16.mxu0 %v1868_v16  ;;  %885 = vmatprep.subr.bf16.mxu1 %v1877_v19  ;;  %v680_v16 = vld [vmem:[#allocation4 + $0x78] sm:$0xff] }
 0x350   :  { %v687_v52 = vunpack.c.l.bf16 %v680_v16  ;;  %v688_v61 = vunpack.c.h.bf16 %v680_v16 }
 0x352   :  { %843 = vmatpush1.bf16.msra.mxu0 %v1871_v17  ;;  %886 = vmatpush1.bf16.msra.mxu1 %v1883_v21 }
 0x353   :  { %844 = vmatprep.subr.bf16.mxu0 %v1880_v20  ;;  %887 = vmatprep.subr.bf16.mxu1 %v1889_v23 }
 0x356   :  { %845 = vmatpush1.bf16.msra.mxu0 %v1887_v22  ;;  %888 = vmatpush1.bf16.msra.mxu1 %v1895_v25 }
 0x357   :  { %846 = vmatprep.subr.bf16.mxu0 %v1892_v24  ;;  %889 = vmatprep.subr.bf16.mxu1 %v1901_v27 }
 0x35a   :  { %847 = vmatpush1.bf16.msra.mxu0 %v1899_v26  ;;  %890 = vmatpush1.bf16.msra.mxu1 %v1907_v29 }
 0x35b   :  { %848 = vmatprep.subr.bf16.mxu0 %v1904_v28  ;;  %891 = vmatprep.subr.bf16.mxu1 %v1913_v31 }
 0x35e   :  { %849 = vmatpush1.bf16.msra.mxu0 %v1911_v30  ;;  %892 = vmatpush1.bf16.msra.mxu1 %v1917_v32 }
 0x35f   :  { %978 = vmatprep.subr.bf16.mxu0 %v1826_v1  ;;  %1021 = vmatprep.subr.bf16.mxu1 %v1834_v4 }
 0x414   :  { %v724_v9 = vpop.f32.mrb[12].mxu0  ;;  %v767_v10 = vpop.f32.mrb[12].mxu1 }
 0x415   :  { %v776_v12 = vadd.f32 %v724_v9, %v681_v5  ;;  %v726_v14 = vpop.f32.mrb[13].mxu0  ;;  %v769_v15 = vpop.f32.mrb[13].mxu1  ;;  %v778_v60 = vadd.f32 %v767_v10, %v683_v13 }
 0x416   :  { %v777_v17 = vadd.f32 %v726_v14, %v682_v7  ;;  %v728_v63 = vpop.f32.mrb[14].mxu0  ;;  %v771_v41 = vpop.f32.mrb[14].mxu1  ;;  %v779_v53 = vadd.f32 %v769_v15, %v684_v33  ;;  %v2122_v33 = vld [vmem:[#allocation7 + $0x64] ss:$16 sps:$4 sm:$0xff]  }
 0x417   :  { %v784_v1 = vmul.f32 0.5, %v776_v12  ;;  %v780_v50 = vadd.f32 %v728_v63, %v685_v8  ;;  %v730_v4 = vpop.f32.mrb[15].mxu0  ;;  %v773_v54 = vpop.f32.mrb[15].mxu1  ;;  %v782_v49 = vadd.f32 %v771_v41, %v687_v52  ;;  %v2107_v52 = vld [vmem:[#allocation7 + $0x28] ss:$16 sps:$4 sm:$0xff]  }
 0x418   :  { %v792_v58 = vmul.f32 0.5, %v777_v17  ;;  %v781_v57 = vadd.f32 %v730_v4, %v686_v11  ;;  %v783_v34 = vadd.f32 %v773_v54, %v688_v61  ;;  %v802_v40 = vmul.f32 0.5, %v779_v53  ;;  %v2096_v4 = vld [vmem:[#allocation7 + $0x24] ss:$16 sps:$4 sm:$0xff]   ;;  %v2099_v54 = vld [vmem:[#allocation7 + $0x2c] ss:$16 sps:$4 sm:$0xff]  }
 0x419   :  { %1572 = vtanh.f32 %v784_v1  ;;  %v785_v62 = vmul.f32 0.5, %v780_v50  ;;  %v2093_v50 = vld [vmem:[#allocation7 + $0x8] ss:$16 sps:$4 sm:$0xff]   ;;  %v2128_v61 = vld [vmem:[#allocation7 + $0x60] ss:$16 sps:$4 sm:$0xff]  }
 0x41a   :  { %1574 = vtanh.f32 %v792_v58  ;;  %v793_v38 = vmul.f32 0.5, %v781_v57  ;;  %v803_v44 = vmul.f32 0.5, %v783_v34  ;;  %v2104_v58 = vld [vmem:[#allocation7 + $0x20] ss:$16 sps:$4 sm:$0xff]   ;;  %v2110_v57 = vld [vmem:[#allocation7 + $0x44] ss:$16 sps:$4 sm:$0xff]  }
 0x41b   :  { %1576 = vtanh.f32 %v785_v62  ;;  %v2116_v62 = vld [vmem:[#allocation7 + $0x40] ss:$16 sps:$4 sm:$0xff]   ;;  %v2132_v53 = vld [vmem:[#allocation7 + $0x84] ss:$16 sps:$4 sm:$0xff]  }
 0x41c   :  { %1578 = vtanh.f32 %v778_v60  ;;  %v2113_v60 = vld [vmem:[#allocation7 + $0x4c] ss:$16 sps:$4 sm:$0xff]   ;;  %v2136_v34 = vld [vmem:[#allocation7 + $0x80] ss:$16 sps:$4 sm:$0xff]  }
 0x41d   :  { %1580 = vtanh.f32 %v793_v38  ;;  %v2119_v38 = vld [vmem:[#allocation7 + $0x48] ss:$16 sps:$4 sm:$0xff]  }
 0x41e   :  { %1582 = vtanh.f32 %v782_v49  ;;  %v2125_v49 = vld [vmem:[#allocation7 + $0x6c] ss:$16 sps:$4 sm:$0xff]  }
 0x41f   :  { %1584 = vtanh.f32 %v802_v40 }
 0x420   :  { %1586 = vtanh.f32 %v803_v44 }
 0x423   :  { %v1573_v55 = vpop.eup %1572 }
 0x424   :  { %v1575_v36 = vpop.eup %1574  ;;  %v788_v37 = vadd.f32 1.0, %v1573_v55  ;;  %v824_v55 = vld [vmem:[#allocation4 + $0x98] sm:$0xff] }
 0x425   :  { %v796_v43 = vadd.f32 1.0, %v1575_v36  ;;  %v1577_v59 = vpop.eup %1576 }
 0x426   :  { %v790_v45 = vmul.f32 0.5, %v788_v37  ;;  %v1579_v56 = vpop.eup %1578  ;;  %v789_v42 = vadd.f32 1.0, %v1577_v59 }
 0x427   :  { %v798_v47 = vmul.f32 0.5, %v796_v43  ;;  %v1581_v51 = vpop.eup %1580 }
 0x428   :  { %v812_v46 = vmul.f32 %v1579_v56, %v790_v45  ;;  %v791_v2 = vmul.f32 0.5, %v789_v42  ;;  %v797_v3 = vadd.f32 1.0, %v1581_v51  ;;  %v1583_v5 = vpop.eup %1582 }
 0x429   :  { %v810_v48 = vmul.f32 %v798_v47, %v2041_v35  ;;  %v1585_v11 = vpop.eup %1584  ;;  %v831_v47 = vunpack.c.l.bf16 %v824_v55 }
 0x42a   :  { %v799_v7 = vmul.f32 0.5, %v797_v3  ;;  %v813_v8 = vmul.f32 %v1583_v5, %v791_v2  ;;  %v1587_v12 = vpop.eup %1586  ;;  %v806_v13 = vadd.f32 1.0, %v1585_v11  ;;  %v832_v5 = vunpack.c.h.bf16 %v824_v55 }
 0x42b   :  { %v2083_v6 = vadd.f32 %v812_v46, %v810_v48  ;;  %v807_v35 = vadd.f32 1.0, %v1587_v12 }
 0x42c   :  { %v811_v9 = vmul.f32 %v799_v7, %v2045_v39  ;;  %v808_v15 = vmul.f32 0.5, %v806_v13  ;;  %v2090_v39 = vld [vmem:[#allocation7] ss:$16 sps:$4 sm:$0xff]  }
 0x42d   :  { %1588 = vtanh.f32 %v2083_v6  ;;  %v809_v16 = vmul.f32 0.5, %v807_v35 }
 0x42e   :  { %v2087_v10 = vadd.f32 %v813_v8, %v811_v9 }
 0x430   :  { %1590 = vtanh.f32 %v2087_v10 }
 0x437   :  { %v1589_v14 = vpop.eup %1588 }
 0x438   :  { %v818_v63 = vmul.f32 %v1589_v14, %v808_v15 }
 0x43a   :  { %v1591_v17 = vpop.eup %1590 }
 0x43b   :  { %v819_v41 = vmul.f32 %v1591_v17, %v809_v16 }
 0x43d   :  { %v833_v1 = vpack.c.bf16 %v819_v41, %v818_v63 }
 0x43f   :  { %867 = vmatmul.mubr.bf16.vlgmr.msra.gmra.mrb[16].mxu0 %v833_v1  ;;  %910 = vmatmul.mubr.bf16.vlgmr.msra.gmra.mrb[16].mxu1 %v833_v1 }
 0x440   :  { %979 = vmatpush1.bf16.msra.mxu0 %v2090_v39  ;;  %1022 = vmatpush1.bf16.msra.mxu1 %v2093_v50 }
 0x441   :  { %980 = vmatprep.subr.bf16.mxu0 %v2096_v4  ;;  %1023 = vmatprep.subr.bf16.mxu1 %v2099_v54 }
 0x442   :  { %1010 = vmatprep.mubr.bf16.mxu0 %v1780_v0  ;;  %1053 = vmatprep.mubr.bf16.mxu1 %v1780_v0 }
 0x444   :  { %981 = vmatpush1.bf16.msra.mxu0 %v2104_v58  ;;  %1024 = vmatpush1.bf16.msra.mxu1 %v2107_v52 }
 0x445   :  { %982 = vmatprep.subr.bf16.mxu0 %v2110_v57  ;;  %1025 = vmatprep.subr.bf16.mxu1 %v2113_v60 }
 0x448   :  { %983 = vmatpush1.bf16.msra.mxu0 %v2116_v62  ;;  %1026 = vmatpush1.bf16.msra.mxu1 %v2119_v38 }
 0x449   :  { %984 = vmatprep.subr.bf16.mxu0 %v2122_v33  ;;  %1027 = vmatprep.subr.bf16.mxu1 %v2125_v49 }
 0x44c   :  { %985 = vmatpush1.bf16.msra.mxu0 %v2128_v61  ;;  %1028 = vmatpush1.bf16.msra.mxu1 %v1873_v18  ;;  %v2152_v18 = vld [vmem:[#allocation7 + $0x4] ss:$16 sps:$4 sm:$0xff]  }
 0x44d   :  { %986 = vmatprep.subr.bf16.mxu0 %v2132_v53  ;;  %1029 = vmatprep.subr.bf16.mxu1 %v1877_v19  ;;  %v2155_v19 = vld [vmem:[#allocation7 + $0xc] ss:$16 sps:$4 sm:$0xff]  }
 0x450   :  { %987 = vmatpush1.bf16.msra.mxu0 %v2136_v34  ;;  %1030 = vmatpush1.bf16.msra.mxu1 %v1883_v21  ;;  %v823_v21 = vld [vmem:[#allocation4 + $0x90] sm:$0xff] }
 0x451   :  { %988 = vmatprep.subr.bf16.mxu0 %v1880_v20  ;;  %1031 = vmatprep.subr.bf16.mxu1 %v1889_v23  ;;  %v821_v20 = vld [vmem:[#allocation4 + $0x80] sm:$0xff]  ;;  %v822_v23 = vld [vmem:[#allocation4 + $0x88] sm:$0xff] }
 0x452   :  { %v828_v2 = vunpack.c.h.bf16 %v822_v23 }
 0x454   :  { %989 = vmatpush1.bf16.msra.mxu0 %v1887_v22  ;;  %1032 = vmatpush1.bf16.msra.mxu1 %v1895_v25  ;;  %v825_v22 = vunpack.c.l.bf16 %v821_v20  ;;  %v829_v25 = vunpack.c.l.bf16 %v823_v21 }
 0x455   :  { %990 = vmatprep.subr.bf16.mxu0 %v1892_v24  ;;  %1033 = vmatprep.subr.bf16.mxu1 %v1901_v27  ;;  %v826_v24 = vunpack.c.h.bf16 %v821_v20 }
 0x458   :  { %991 = vmatpush1.bf16.msra.mxu0 %v1899_v26  ;;  %1034 = vmatpush1.bf16.msra.mxu1 %v1907_v29 }
 0x459   :  { %992 = vmatprep.subr.bf16.mxu0 %v1904_v28  ;;  %1035 = vmatprep.subr.bf16.mxu1 %v1913_v31  ;;  %v830_v28 = vunpack.c.h.bf16 %v823_v21 }
 0x45c   :  { %993 = vmatpush1.bf16.msra.mxu0 %v1911_v30  ;;  %1036 = vmatpush1.bf16.msra.mxu1 %v1917_v32  ;;  %v827_v30 = vunpack.c.l.bf16 %v822_v23 }
 0x45d   :  { %1122 = vmatprep.subr.bf16.mxu0 %v2152_v18  ;;  %1165 = vmatprep.subr.bf16.mxu1 %v2155_v19 }
 0x512   :  { %v868_v26 = vpop.f32.mrb[16].mxu0  ;;  %v911_v27 = vpop.f32.mrb[16].mxu1 }
 0x513   :  { %v920_v29 = vadd.f32 %v868_v26, %v825_v22  ;;  %v870_v31 = vpop.f32.mrb[17].mxu0  ;;  %v913_v32 = vpop.f32.mrb[17].mxu1  ;;  %v922_v51 = vadd.f32 %v911_v27, %v827_v30 }
 0x514   :  { %v921_v36 = vadd.f32 %v870_v31, %v826_v24  ;;  %v872_v37 = vpop.f32.mrb[18].mxu0  ;;  %v915_v40 = vpop.f32.mrb[18].mxu1  ;;  %v923_v7 = vadd.f32 %v913_v32, %v828_v2  ;;  %v2207_v2 = vld [vmem:[#allocation7 + $0xcc] ss:$16 sps:$4 sm:$0xff]  }
 0x515   :  { %v928_v43 = vmul.f32 0.5, %v920_v29  ;;  %v924_v44 = vadd.f32 %v872_v37, %v829_v25  ;;  %v874_v59 = vpop.f32.mrb[19].mxu0  ;;  %v917_v45 = vpop.f32.mrb[19].mxu1  ;;  %v926_v3 = vadd.f32 %v915_v40, %v831_v47  ;;  %v2192_v47 = vld [vmem:[#allocation7 + $0xa4] ss:$16 sps:$4 sm:$0xff]  }
 0x516   :  { %v936_v56 = vmul.f32 0.5, %v921_v36  ;;  %v925_v42 = vadd.f32 %v874_v59, %v830_v28  ;;  %v927_v8 = vadd.f32 %v917_v45, %v832_v5  ;;  %v946_v13 = vmul.f32 0.5, %v923_v7  ;;  %v2185_v45 = vld [vmem:[#allocation7 + $0x8c] ss:$16 sps:$4 sm:$0xff]   ;;  %v2213_v5 = vld [vmem:[#allocation7 + $0xc8] ss:$16 sps:$4 sm:$0xff]  }
 0x517   :  { %1592 = vtanh.f32 %v928_v43  ;;  %v929_v46 = vmul.f32 0.5, %v924_v44  ;;  %v2216_v7 = vld [vmem:[#allocation7 + $0xe4] ss:$16 sps:$4 sm:$0xff]  }
 0x518   :  { %1594 = vtanh.f32 %v936_v56  ;;  %v937_v48 = vmul.f32 0.5, %v925_v42  ;;  %v947_v14 = vmul.f32 0.5, %v927_v8  ;;  %v2189_v56 = vld [vmem:[#allocation7 + $0x88] ss:$16 sps:$4 sm:$0xff]   ;;  %v2195_v42 = vld [vmem:[#allocation7 + $0xac] ss:$16 sps:$4 sm:$0xff]  }
 0x519   :  { %1596 = vtanh.f32 %v929_v46  ;;  %v2201_v46 = vld [vmem:[#allocation7 + $0xa8] ss:$16 sps:$4 sm:$0xff]   ;;  %v2219_v8 = vld [vmem:[#allocation7 + $0xec] ss:$16 sps:$4 sm:$0xff]  }
 0x51a   :  { %1598 = vtanh.f32 %v922_v51  ;;  %v2198_v51 = vld [vmem:[#allocation7 + $0xa0] ss:$16 sps:$4 sm:$0xff]  }
 0x51b   :  { %1600 = vtanh.f32 %v937_v48  ;;  %v2204_v48 = vld [vmem:[#allocation7 + $0xc4] ss:$16 sps:$4 sm:$0xff]  }
 0x51c   :  { %1602 = vtanh.f32 %v926_v3  ;;  %v2210_v3 = vld [vmem:[#allocation7 + $0xc0] ss:$16 sps:$4 sm:$0xff]  }
 0x51d   :  { %1604 = vtanh.f32 %v946_v13  ;;  %v967_v13 = vld [vmem:[#allocation4 + $0xb0] sm:$0xff] }
 0x51e   :  { %1606 = vtanh.f32 %v947_v14  ;;  %v966_v14 = vld [vmem:[#allocation4 + $0xa8] sm:$0xff] }
 0x521   :  { %v1593_v9 = vpop.eup %1592 }
 0x522   :  { %v1595_v11 = vpop.eup %1594  ;;  %v932_v12 = vadd.f32 1.0, %v1593_v9  ;;  %v2222_v9 = vld [vmem:[#allocation7 + $0xe0] ss:$16 sps:$4 sm:$0xff]  }
 0x523   :  { %v940_v35 = vadd.f32 1.0, %v1595_v11  ;;  %v1597_v15 = vpop.eup %1596  ;;  %v2225_v11 = vld [vmem:[#allocation7 + $0xe8] ss:$16 sps:$4 sm:$0xff]  }
 0x524   :  { %v934_v16 = vmul.f32 0.5, %v932_v12  ;;  %v1599_v17 = vpop.eup %1598  ;;  %v933_v41 = vadd.f32 1.0, %v1597_v15  ;;  %v965_v12 = vld [vmem:[#allocation4 + $0xa0] sm:$0xff] }
 0x525   :  { %v942_v63 = vmul.f32 0.5, %v940_v35  ;;  %v1601_v1 = vpop.eup %1600  ;;  %v969_v35 = vunpack.c.l.bf16 %v965_v12  ;;  %v970_v15 = vunpack.c.h.bf16 %v965_v12 }
 0x526   :  { %v956_v20 = vmul.f32 %v1599_v17, %v934_v16  ;;  %v935_v22 = vmul.f32 0.5, %v933_v41  ;;  %v941_v23 = vadd.f32 1.0, %v1601_v1  ;;  %v1603_v24 = vpop.eup %1602  ;;  %v973_v16 = vunpack.c.l.bf16 %v967_v13 }
 0x527   :  { %v954_v21 = vmul.f32 %v942_v63, %v2083_v6  ;;  %v1605_v30 = vpop.eup %1604  ;;  %v974_v41 = vunpack.c.h.bf16 %v967_v13 }
 0x528   :  { %v943_v26 = vmul.f32 0.5, %v941_v23  ;;  %v957_v27 = vmul.f32 %v1603_v24, %v935_v22  ;;  %v1607_v31 = vpop.eup %1606  ;;  %v950_v32 = vadd.f32 1.0, %v1605_v30  ;;  %v968_v23 = vld [vmem:[#allocation4 + $0xb8] sm:$0xff] }
 0x529   :  { %v2159_v25 = vadd.f32 %v956_v20, %v954_v21  ;;  %v951_v6 = vadd.f32 1.0, %v1607_v31  ;;  %v971_v20 = vunpack.c.l.bf16 %v966_v14 }
 0x52a   :  { %v955_v28 = vmul.f32 %v943_v26, %v2087_v10  ;;  %v952_v36 = vmul.f32 0.5, %v950_v32  ;;  %v2181_v10 = vld [vmem:[#allocation7 + $0x68] ss:$16 sps:$4 sm:$0xff]   ;;  %v975_v32 = vunpack.c.l.bf16 %v968_v23 }
 0x52b   :  { %1608 = vtanh.f32 %v2159_v25  ;;  %v953_v37 = vmul.f32 0.5, %v951_v6 }
 0x52c   :  { %v2163_v29 = vadd.f32 %v957_v27, %v955_v28 }
 0x52e   :  { %1610 = vtanh.f32 %v2163_v29 }
 0x535   :  { %v1609_v55 = vpop.eup %1608 }
 0x536   :  { %v962_v43 = vmul.f32 %v1609_v55, %v952_v36 }
 0x538   :  { %v1611_v40 = vpop.eup %1610 }
 0x539   :  { %v963_v44 = vmul.f32 %v1611_v40, %v953_v37  ;;  %v972_v40 = vunpack.c.h.bf16 %v966_v14 }
 0x53b   :  { %v977_v59 = vpack.c.bf16 %v963_v44, %v962_v43  ;;  %v976_v44 = vunpack.c.h.bf16 %v968_v23 }
 0x53d   :  { %1011 = vmatmul.mubr.bf16.vlgmr.msra.gmra.mrb[20].mxu0 %v977_v59  ;;  %1054 = vmatmul.mubr.bf16.vlgmr.msra.gmra.mrb[20].mxu1 %v977_v59 }
 0x53e   :  { %1123 = vmatpush1.bf16.msra.mxu0 %v2090_v39  ;;  %1166 = vmatpush1.bf16.msra.mxu1 %v2093_v50 }
 0x53f   :  { %1124 = vmatprep.subr.bf16.mxu0 %v2096_v4  ;;  %1167 = vmatprep.subr.bf16.mxu1 %v2099_v54 }
 0x540   :  { %1154 = vmatprep.mubr.bf16.mxu0 %v1780_v0  ;;  %1197 = vmatprep.mubr.bf16.mxu1 %v1780_v0 }
 0x542   :  { %1125 = vmatpush1.bf16.msra.mxu0 %v2104_v58  ;;  %1168 = vmatpush1.bf16.msra.mxu1 %v2107_v52 }
 0x543   :  { %1126 = vmatprep.subr.bf16.mxu0 %v2110_v57  ;;  %1169 = vmatprep.subr.bf16.mxu1 %v2113_v60 }
 0x546   :  { %1127 = vmatpush1.bf16.msra.mxu0 %v2116_v62  ;;  %1170 = vmatpush1.bf16.msra.mxu1 %v2119_v38 }
 0x547   :  { %1128 = vmatprep.subr.bf16.mxu0 %v2122_v33  ;;  %1171 = vmatprep.subr.bf16.mxu1 %v2125_v49 }
 0x54a   :  { %1129 = vmatpush1.bf16.msra.mxu0 %v2128_v61  ;;  %1172 = vmatpush1.bf16.msra.mxu1 %v2181_v10 }
 0x54b   :  { %1130 = vmatprep.subr.bf16.mxu0 %v2132_v53  ;;  %1173 = vmatprep.subr.bf16.mxu1 %v2185_v45 }
 0x54e   :  { %1131 = vmatpush1.bf16.msra.mxu0 %v2136_v34  ;;  %1174 = vmatpush1.bf16.msra.mxu1 %v2189_v56 }
 0x54f   :  { %1132 = vmatprep.subr.bf16.mxu0 %v2192_v47  ;;  %1175 = vmatprep.subr.bf16.mxu1 %v2195_v42 }
 0x552   :  { %1133 = vmatpush1.bf16.msra.mxu0 %v2198_v51  ;;  %1176 = vmatpush1.bf16.msra.mxu1 %v2201_v46 }
 0x553   :  { %1134 = vmatprep.subr.bf16.mxu0 %v2204_v48  ;;  %1177 = vmatprep.subr.bf16.mxu1 %v2207_v2 }
 0x556   :  { %1135 = vmatpush1.bf16.msra.mxu0 %v2210_v3  ;;  %1178 = vmatpush1.bf16.msra.mxu1 %v2213_v5 }
 0x557   :  { %1136 = vmatprep.subr.bf16.mxu0 %v2216_v7  ;;  %1179 = vmatprep.subr.bf16.mxu1 %v2219_v8 }
 0x55a   :  { %1137 = vmatpush1.bf16.msra.mxu0 %v2222_v9  ;;  %1180 = vmatpush1.bf16.msra.mxu1 %v2225_v11 }
 0x55b   :  { %1266 = vmatprep.subr.bf16.mxu0 %v2152_v18  ;;  %1309 = vmatprep.subr.bf16.mxu1 %v2155_v19 }
 0x610   :  { %v1012_v17 = vpop.f32.mrb[20].mxu0  ;;  %v1055_v63 = vpop.f32.mrb[20].mxu1 }
 0x611   :  { %v1064_v1 = vadd.f32 %v1012_v17, %v969_v35  ;;  %v1014_v21 = vpop.f32.mrb[21].mxu0  ;;  %v1057_v22 = vpop.f32.mrb[21].mxu1  ;;  %v1066_v55 = vadd.f32 %v1055_v63, %v971_v20 }
 0x612   :  { %v1065_v24 = vadd.f32 %v1014_v21, %v970_v15  ;;  %v1016_v26 = vpop.f32.mrb[22].mxu0  ;;  %v1059_v27 = vpop.f32.mrb[22].mxu1  ;;  %v1067_v59 = vadd.f32 %v1057_v22, %v972_v40 }
 0x613   :  { %v1072_v18 = vmul.f32 0.5, %v1064_v1  ;;  %v1068_v28 = vadd.f32 %v1016_v26, %v973_v16  ;;  %v1018_v19 = vpop.f32.mrb[23].mxu0  ;;  %v1061_v30 = vpop.f32.mrb[23].mxu1  ;;  %v1070_v43 = vadd.f32 %v1059_v27, %v975_v32 }
 0x614   :  { %v1080_v31 = vmul.f32 0.5, %v1065_v24  ;;  %v1069_v6 = vadd.f32 %v1018_v19, %v974_v41  ;;  %v1071_v12 = vadd.f32 %v1061_v30, %v976_v44  ;;  %v1090_v16 = vmul.f32 0.5, %v1067_v59 }
 0x615   :  { %1612 = vtanh.f32 %v1072_v18  ;;  %v1073_v36 = vmul.f32 0.5, %v1068_v28 }
 0x616   :  { %1614 = vtanh.f32 %v1080_v31  ;;  %v1081_v37 = vmul.f32 0.5, %v1069_v6  ;;  %v1091_v41 = vmul.f32 0.5, %v1071_v12 }
 0x617   :  { %1616 = vtanh.f32 %v1073_v36 }
 0x618   :  { %1618 = vtanh.f32 %v1066_v55 }
 0x619   :  { %1620 = vtanh.f32 %v1081_v37 }
 0x61a   :  { %1622 = vtanh.f32 %v1070_v43 }
 0x61b   :  { %1624 = vtanh.f32 %v1090_v16 }
 0x61c   :  { %1626 = vtanh.f32 %v1091_v41 }
 0x61f   :  { %v1613_v13 = vpop.eup %1612 }
 0x620   :  { %v1615_v35 = vpop.eup %1614  ;;  %v1076_v15 = vadd.f32 1.0, %v1613_v13 }
 0x621   :  { %v1084_v17 = vadd.f32 1.0, %v1615_v35  ;;  %v1617_v1 = vpop.eup %1616 }
 0x622   :  { %v1078_v63 = vmul.f32 0.5, %v1076_v15  ;;  %v1619_v20 = vpop.eup %1618  ;;  %v1077_v24 = vadd.f32 1.0, %v1617_v1 }
 0x623   :  { %v1086_v21 = vmul.f32 0.5, %v1084_v17  ;;  %v1621_v14 = vpop.eup %1620 }
 0x624   :  { %v1100_v26 = vmul.f32 %v1619_v20, %v1078_v63  ;;  %v1079_v27 = vmul.f32 0.5, %v1077_v24  ;;  %v1085_v22 = vadd.f32 1.0, %v1621_v14  ;;  %v1623_v18 = vpop.eup %1622 }
 0x625   :  { %v1098_v23 = vmul.f32 %v1086_v21, %v2159_v25  ;;  %v1625_v6 = vpop.eup %1624 }
 0x626   :  { %v1087_v19 = vmul.f32 0.5, %v1085_v22  ;;  %v1101_v30 = vmul.f32 %v1623_v18, %v1079_v27  ;;  %v1627_v55 = vpop.eup %1626  ;;  %v1094_v36 = vadd.f32 1.0, %v1625_v6 }
 0x627   :  { %v2231_v28 = vadd.f32 %v1100_v26, %v1098_v23  ;;  %v1095_v25 = vadd.f32 1.0, %v1627_v55 }
 0x628   :  { %v1099_v31 = vmul.f32 %v1087_v19, %v2163_v29  ;;  %v1096_v40 = vmul.f32 0.5, %v1094_v36 }
 0x629   :  { %1628 = vtanh.f32 %v2231_v28  ;;  %v1097_v43 = vmul.f32 0.5, %v1095_v25 }
 0x62a   :  { %v2235_v32 = vadd.f32 %v1101_v30, %v1099_v31 }
 0x62c   :  { %1630 = vtanh.f32 %v2235_v32 }
 0x633   :  { %v1629_v37 = vpop.eup %1628 }
 0x634   :  { %v1106_v59 = vmul.f32 %v1629_v37, %v1096_v40 }
 0x636   :  { %v1631_v44 = vpop.eup %1630 }
 0x637   :  { %v1107_v12 = vmul.f32 %v1631_v44, %v1097_v43 }
 0x639   :  { %v1121_v13 = vpack.c.bf16 %v1107_v12, %v1106_v59 }
 0x63b   :  { %1155 = vmatmul.mubr.bf16.vlgmr.msra.gmra.mrb[24].mxu0 %v1121_v13  ;;  %1198 = vmatmul.mubr.bf16.vlgmr.msra.gmra.mrb[24].mxu1 %v1121_v13 }
 0x63c   :  { %1267 = vmatpush1.bf16.msra.mxu0 %v2090_v39  ;;  %1310 = vmatpush1.bf16.msra.mxu1 %v2093_v50  ;;  %v1111_v39 = vld [vmem:[#allocation4 + $0xd0] sm:$0xff] }
 0x63d   :  { %1268 = vmatprep.subr.bf16.mxu0 %v2096_v4  ;;  %1311 = vmatprep.subr.bf16.mxu1 %v2099_v54  ;;  %v1110_v4 = vld [vmem:[#allocation4 + $0xc8] sm:$0xff] }
 0x63e   :  { %1298 = vmatprep.mubr.bf16.mxu0 %v1780_v0  ;;  %1341 = vmatprep.mubr.bf16.mxu1 %v1780_v0  ;;  %v1109_v0 = vld [vmem:[#allocation4 + $0xc0] sm:$0xff] }
 0x63f   :  { %v1113_v50 = vunpack.c.l.bf16 %v1109_v0  ;;  %v1114_v54 = vunpack.c.h.bf16 %v1109_v0 }
 0x640   :  { %1269 = vmatpush1.bf16.msra.mxu0 %v2104_v58  ;;  %1312 = vmatpush1.bf16.msra.mxu1 %v2107_v52  ;;  %v1117_v58 = vunpack.c.l.bf16 %v1111_v39 }
 0x641   :  { %1270 = vmatprep.subr.bf16.mxu0 %v2110_v57  ;;  %1313 = vmatprep.subr.bf16.mxu1 %v2113_v60  ;;  %v1118_v60 = vunpack.c.h.bf16 %v1111_v39 }
 0x644   :  { %1271 = vmatpush1.bf16.msra.mxu0 %v2116_v62  ;;  %1314 = vmatpush1.bf16.msra.mxu1 %v2119_v38  ;;  %v1115_v38 = vunpack.c.l.bf16 %v1110_v4 }
 0x645   :  { %1272 = vmatprep.subr.bf16.mxu0 %v2122_v33  ;;  %1315 = vmatprep.subr.bf16.mxu1 %v2125_v49 }
 0x648   :  { %1273 = vmatpush1.bf16.msra.mxu0 %v2128_v61  ;;  %1316 = vmatpush1.bf16.msra.mxu1 %v2181_v10  ;;  %v1112_v61 = vld [vmem:[#allocation4 + $0xd8] sm:$0xff] }
 0x649   :  { %1274 = vmatprep.subr.bf16.mxu0 %v2132_v53  ;;  %1317 = vmatprep.subr.bf16.mxu1 %v2185_v45 }
 0x64c   :  { %1275 = vmatpush1.bf16.msra.mxu0 %v2136_v34  ;;  %1318 = vmatpush1.bf16.msra.mxu1 %v2189_v56 }
 0x64d   :  { %1276 = vmatprep.subr.bf16.mxu0 %v2192_v47  ;;  %1319 = vmatprep.subr.bf16.mxu1 %v2195_v42 }
 0x650   :  { %1277 = vmatpush1.bf16.msra.mxu0 %v2198_v51  ;;  %1320 = vmatpush1.bf16.msra.mxu1 %v2201_v46  ;;  %v1119_v51 = vunpack.c.l.bf16 %v1112_v61 }
 0x651   :  { %1278 = vmatprep.subr.bf16.mxu0 %v2204_v48  ;;  %1321 = vmatprep.subr.bf16.mxu1 %v2207_v2 }
 0x654   :  { %1279 = vmatpush1.bf16.msra.mxu0 %v2210_v3  ;;  %1322 = vmatpush1.bf16.msra.mxu1 %v2213_v5  ;;  %v1116_v5 = vunpack.c.h.bf16 %v1110_v4 }
 0x655   :  { %1280 = vmatprep.subr.bf16.mxu0 %v2216_v7  ;;  %1323 = vmatprep.subr.bf16.mxu1 %v2219_v8  ;;  %v1120_v8 = vunpack.c.h.bf16 %v1112_v61 }
 0x658   :  { %1281 = vmatpush1.bf16.msra.mxu0 %v2222_v9  ;;  %1324 = vmatpush1.bf16.msra.mxu1 %v2225_v11 }
 0x70e   :  { %v1156_v52 = vpop.f32.mrb[24].mxu0  ;;  %v1199_v57 = vpop.f32.mrb[24].mxu1 }
 0x70f   :  { %v1208_v62 = vadd.f32 %v1156_v52, %v1113_v50  ;;  %v1158_v33 = vpop.f32.mrb[25].mxu0  ;;  %v1201_v49 = vpop.f32.mrb[25].mxu1  ;;  %v1210_v48 = vadd.f32 %v1199_v57, %v1115_v38  ;;  %v1255_v50 = vld [vmem:[#allocation4 + $0xf0] sm:$0xff] }
 0x710   :  { %v1209_v53 = vadd.f32 %v1158_v33, %v1114_v54  ;;  %v1160_v34 = vpop.f32.mrb[26].mxu0  ;;  %v1203_v29 = vpop.f32.mrb[26].mxu1  ;;  %v1211_v9 = vadd.f32 %v1201_v49, %v1116_v5  ;;  %v1254_v54 = vld [vmem:[#allocation4 + $0xe8] sm:$0xff]  ;;  %v1261_v52 = vunpack.c.l.bf16 %v1255_v50 }
 0x711   :  { %v1216_v10 = vmul.f32 0.5, %v1208_v62  ;;  %v1212_v45 = vadd.f32 %v1160_v34, %v1117_v58  ;;  %v1162_v56 = vpop.f32.mrb[27].mxu0  ;;  %v1205_v47 = vpop.f32.mrb[27].mxu1  ;;  %v1214_v7 = vadd.f32 %v1203_v29, %v1119_v51  ;;  %v1262_v62 = vunpack.c.h.bf16 %v1255_v50 }
 0x712   :  { %v1224_v42 = vmul.f32 0.5, %v1209_v53  ;;  %v1213_v46 = vadd.f32 %v1162_v56, %v1118_v60  ;;  %v1215_v11 = vadd.f32 %v1205_v47, %v1120_v8  ;;  %v1234_v17 = vmul.f32 0.5, %v1211_v9  ;;  %v1256_v53 = vld [vmem:[#allocation4 + $0xf8] sm:$0xff] }
 0x713   :  { %1632 = vtanh.f32 %v1216_v10  ;;  %v1217_v2 = vmul.f32 0.5, %v1212_v45  ;;  %v1259_v33 = vunpack.c.l.bf16 %v1254_v54 }
 0x714   :  { %1634 = vtanh.f32 %v1224_v42  ;;  %v1225_v3 = vmul.f32 0.5, %v1213_v46  ;;  %v1235_v1 = vmul.f32 0.5, %v1215_v11  ;;  %v1263_v46 = vunpack.c.l.bf16 %v1256_v53 }
 0x715   :  { %1636 = vtanh.f32 %v1217_v2  ;;  %v1264_v11 = vunpack.c.h.bf16 %v1256_v53 }
 0x716   :  { %1638 = vtanh.f32 %v1210_v48 }
 0x717   :  { %1640 = vtanh.f32 %v1225_v3  ;;  %v1260_v3 = vunpack.c.h.bf16 %v1254_v54 }
 0x718   :  { %1642 = vtanh.f32 %v1214_v7 }
 0x719   :  { %1644 = vtanh.f32 %v1234_v17 }
 0x71a   :  { %1646 = vtanh.f32 %v1235_v1 }
 0x71d   :  { %v1633_v35 = vpop.eup %1632 }
 0x71e   :  { %v1635_v15 = vpop.eup %1634  ;;  %v1220_v16 = vadd.f32 1.0, %v1633_v35 }
 0x71f   :  { %v1228_v41 = vadd.f32 1.0, %v1635_v15  ;;  %v1637_v63 = vpop.eup %1636 }
 0x720   :  { %v1222_v20 = vmul.f32 0.5, %v1220_v16  ;;  %v1639_v21 = vpop.eup %1638  ;;  %v1221_v14 = vadd.f32 1.0, %v1637_v63 }
 0x721   :  { %v1230_v24 = vmul.f32 0.5, %v1228_v41  ;;  %v1641_v26 = vpop.eup %1640 }
 0x722   :  { %v1244_v23 = vmul.f32 %v1639_v21, %v1222_v20  ;;  %v1223_v22 = vmul.f32 0.5, %v1221_v14  ;;  %v1229_v18 = vadd.f32 1.0, %v1641_v26  ;;  %v1643_v19 = vpop.eup %1642 }
 0x723   :  { %v1242_v27 = vmul.f32 %v1230_v24, %v2231_v28  ;;  %v1645_v25 = vpop.eup %1644 }
 0x724   :  { %v1231_v31 = vmul.f32 0.5, %v1229_v18  ;;  %v1245_v6 = vmul.f32 %v1643_v19, %v1223_v22  ;;  %v1647_v37 = vpop.eup %1646  ;;  %v1238_v40 = vadd.f32 1.0, %v1645_v25 }
 0x725   :  { %v2271_v30 = vadd.f32 %v1244_v23, %v1242_v27  ;;  %v1239_v28 = vadd.f32 1.0, %v1647_v37 }
 0x726   :  { %v1243_v55 = vmul.f32 %v1231_v31, %v2235_v32  ;;  %v1240_v44 = vmul.f32 0.5, %v1238_v40  ;;  %v1253_v32 = vld [vmem:[#allocation4 + $0xe0] sm:$0xff] }
 0x727   :  { %1648 = vtanh.f32 %v2271_v30  ;;  %v1241_v59 = vmul.f32 0.5, %v1239_v28  ;;  %v1257_v4 = vunpack.c.l.bf16 %v1253_v32  ;;  %v1258_v58 = vunpack.c.h.bf16 %v1253_v32 }
 0x728   :  { %v2275_v36 = vadd.f32 %v1245_v6, %v1243_v55 }
 0x72a   :  { %1650 = vtanh.f32 %v2275_v36 }
 0x731   :  { %v1649_v43 = vpop.eup %1648 }
 0x732   :  { %v1250_v13 = vmul.f32 %v1649_v43, %v1240_v44 }
 0x734   :  { %v1651_v12 = vpop.eup %1650 }
 0x735   :  { %v1251_v0 = vmul.f32 %v1651_v12, %v1241_v59 }
 0x737   :  { %v1265_v39 = vpack.c.bf16 %v1251_v0, %v1250_v13 }
 0x739   :  { %1299 = vmatmul.mubr.bf16.vlgmr.msra.gmra.mrb[28].mxu0 %v1265_v39  ;;  %1342 = vmatmul.mubr.bf16.vlgmr.msra.gmra.mrb[28].mxu1 %v1265_v39 }
 0x80c   :  { %v1300_v57 = vpop.f32.mrb[28].mxu0  ;;  %v1343_v60 = vpop.f32.mrb[28].mxu1 }
 0x80d   :  { %v1352_v38 = vadd.f32 %v1300_v57, %v1257_v4  ;;  %v1302_v49 = vpop.f32.mrb[29].mxu0  ;;  %v1345_v61 = vpop.f32.mrb[29].mxu1  ;;  %v1354_v2 = vadd.f32 %v1343_v60, %v1259_v33 }
 0x80e   :  { %v1353_v34 = vadd.f32 %v1302_v49, %v1258_v58  ;;  %v1304_v29 = vpop.f32.mrb[30].mxu0  ;;  %v1347_v10 = vpop.f32.mrb[30].mxu1  ;;  %v1355_v9 = vadd.f32 %v1345_v61, %v1260_v3 }
 0x80f   :  { %v1360_v45 = vmul.f32 0.5, %v1352_v38  ;;  %v1356_v56 = vadd.f32 %v1304_v29, %v1261_v52  ;;  %v1306_v47 = vpop.f32.mrb[31].mxu0  ;;  %v1349_v42 = vpop.f32.mrb[31].mxu1  ;;  %v1358_v8 = vadd.f32 %v1347_v10, %v1263_v46 }
 0x810   :  { %v1368_v51 = vmul.f32 0.5, %v1353_v34  ;;  %v1357_v48 = vadd.f32 %v1306_v47, %v1262_v62  ;;  %v1378_v35 = vmul.f32 0.5, %v1355_v9  ;;  %v1359_v15 = vadd.f32 %v1349_v42, %v1264_v11 }
 0x811   :  { %1652 = vtanh.f32 %v1360_v45  ;;  %v1361_v5 = vmul.f32 0.5, %v1356_v56 }
 0x812   :  { %1654 = vtanh.f32 %v1368_v51  ;;  %v1369_v7 = vmul.f32 0.5, %v1357_v48  ;;  %v1379_v63 = vmul.f32 0.5, %v1359_v15 }
 0x813   :  { %1656 = vtanh.f32 %v1361_v5 }
 0x814   :  { %1658 = vtanh.f32 %v1354_v2 }
 0x815   :  { %1660 = vtanh.f32 %v1369_v7 }
 0x816   :  { %1662 = vtanh.f32 %v1358_v8 }
 0x817   :  { %1664 = vtanh.f32 %v1378_v35 }
 0x818   :  { %1666 = vtanh.f32 %v1379_v63 }
 0x81b   :  { %v1653_v16 = vpop.eup %1652 }
 0x81c   :  { %v1655_v17 = vpop.eup %1654  ;;  %v1364_v41 = vadd.f32 1.0, %v1653_v16 }
 0x81d   :  { %v1372_v1 = vadd.f32 1.0, %v1655_v17  ;;  %v1657_v20 = vpop.eup %1656 }
 0x81e   :  { %v1366_v21 = vmul.f32 0.5, %v1364_v41  ;;  %v1659_v24 = vpop.eup %1658  ;;  %v1365_v26 = vadd.f32 1.0, %v1657_v20 }
 0x81f   :  { %v1374_v14 = vmul.f32 0.5, %v1372_v1  ;;  %v1661_v23 = vpop.eup %1660 }
 0x820   :  { %v1388_v27 = vmul.f32 %v1659_v24, %v1366_v21  ;;  %v1367_v18 = vmul.f32 0.5, %v1365_v26  ;;  %v1373_v19 = vadd.f32 1.0, %v1661_v23  ;;  %v1663_v31 = vpop.eup %1662 }
 0x821   :  { %v1386_v22 = vmul.f32 %v1374_v14, %v2271_v30  ;;  %v1665_v40 = vpop.eup %1664 }
 0x822   :  { %v1375_v55 = vmul.f32 0.5, %v1373_v19  ;;  %v1389_v25 = vmul.f32 %v1663_v31, %v1367_v18  ;;  %v1382_v43 = vadd.f32 1.0, %v1665_v40  ;;  %v1667_v44 = vpop.eup %1666 }
 0x823   :  { %v1390_v6 = vadd.f32 %v1388_v27, %v1386_v22  ;;  %v1383_v12 = vadd.f32 1.0, %v1667_v44 }
 0x824   :  { %v1387_v37 = vmul.f32 %v1375_v55, %v2275_v36  ;;  %v1384_v59 = vmul.f32 0.5, %v1382_v43 }
 0x825   :  { %1668 = vtanh.f32 %v1390_v6  ;;  %v1385_v30 = vmul.f32 0.5, %v1383_v12 }
 0x826   :  { %v1391_v28 = vadd.f32 %v1389_v25, %v1387_v37 }
 0x828   :  { %1670 = vtanh.f32 %v1391_v28 }
 0x82f   :  { %v1669_v13 = vpop.eup %1668 }
 0x830   :  { %v1394_v0 = vmul.f32 %v1669_v13, %v1384_v59 }
 0x832   :  { %1403 = vst [vmem:[#allocation9] sm:$0xff] %v1394_v0  ;;  %v1671_v39 = vpop.eup %1670 }
 0x833   :  { %v1395_v32 = vmul.f32 %v1671_v39, %v1385_v30 }
 0x835   :  { %1404 = vst [vmem:[#allocation9 + $0x8] sm:$0xff] %v1395_v32 }
 0x836   :  { %1759 = shalt.err (!%p1756_p6)
}
 0x837   :  { %s1760_s10 = scalar_lea.hbm %s2294_s2, 256 }
 0x838   :  { %p1761_p7 = scmp.ne.s32.totalorder %s2294_s2, %s1760_s10  ;;  %p1764_p8 = scmp.lt.u32.totalorder %s1760_s10, %s2294_s2 }
 0x83a   :  { %p1766_p9 = pnand %p1764_p8, %p1761_p7 }
 0x83c   :  { %1769 = shalt.err (!%p1766_p9)
}
 0x83d   :  { %s1783_s15 = smov 128   ;;  %s1784_s16 = smov 8  }
 0x83e   :  { %1416 = dma.vmem_to_hbm [thread:$0]  %s1411_s6, 256, %s2294_s2, [#allocation6], %s1783_s15, %s1783_s15, %s1784_s16  }
 0x83f   :  { %1774 = dma.done.wait [#allocation6], 256  }
 0x840   :  { %1775 = vsyncadd [#allocation6], 4294967040 }
 0x841   :  { %1420 = vsyncpa [#allocation5], 1 }
 0x842   :  { %1421 = vsyncpa [#allocation8], 1 }
 0x843   :  { %1422 = vsyncpa [#allocation6], 1 }

// kernel: tpu_custom_call.1
= control target key start
LH: loop header
LB: loop body
LE: loop exit
PB: predicated region body
PF: predicated region fallthrough
CT: control target
= control target key end

     0   :  { %7 = vsyncpa [#allocation5], 0  ;;  %s2292_s0 = inlined_call_operand.hbm [shape: bf16[8,16,512], index: 0, kind: input, shape index: {}]   ;;  %s2293_s1 = inlined_call_operand.hbm [shape: bf16[128,512], index: 1, kind: input, shape index: {}]   ;;  %s2294_s2 = inlined_call_operand.hbm [shape: f32[16,128], index: 2, kind: output, shape index: {}]  }
   0x1   :  { %8 = vsyncpa [#allocation8], 0 }
   0x2   :  { %9 = vsyncpa [#allocation6], 0  ;;  %s1776_s9 = smov [#allocation4]   ;;  %s1704_s13 = scalar_lea.hbm %s2292_s0, 4096 }
   0x3   :  { %s15_s10 = sshll.u32 %s1776_s9, 4  ;;  %p1705_p0 = scmp.ne.s32.totalorder %s2292_s0, %s1704_s13  ;;  %s16_s10 = int_to_ptr.vmem [resolvable:$true] %s15_s10 }
   0x4   :  { %p1708_p1 = scmp.lt.u32.totalorder %s1704_s13, %s2292_s0 }
   0x6   :  { %p1710_p2 = pnand %p1708_p1, %p1705_p0 }
   0x8   :  { %1713 = shalt.err (!%p1710_p2)
}
   0x9   :  { %s1714_s18 = scalar_lea.vmem %s16_s10, 4096  ;;  %p1719_p4 = scmp.lt.s32.totalorder %s16_s10, %s16_s10 }
   0xa   :  { %p1715_p3 = scmp.ne.s32.totalorder %s16_s10, %s1714_s18  ;;  %p1720_p5 = scmp.lt.s32.totalorder %s1714_s18, %s1714_s18 }
   0xc   :  { %p1721_p6 = por %p1720_p5, %p1719_p4 }
   0xe   :  { %p1722_p7 = pnand %p1721_p6, %p1715_p3 }
  0x10   :  { %1725 = shalt.err (!%p1722_p7)
}
  0x11   :  { %s1777_s19 = smov 256   ;;  %s1778_s20 = smov 16  }
  0x12   :  { %21 = dma.hbm_to_vmem [thread:$0]  %s2292_s0, 4096, %s16_s10, [#allocation5], %s1777_s19, %s1777_s19, %s1778_s20  }
  0x13   :  { %s1779_s23 = smov [#allocation7]   ;;  %s1726_s27 = scalar_lea.hbm %s2293_s1, 4096 }
  0x14   :  { %s27_s24 = sshll.u32 %s1779_s23, 4  ;;  %p1727_p8 = scmp.ne.s32.totalorder %s2293_s1, %s1726_s27  ;;  %s28_s24 = int_to_ptr.vmem [resolvable:$true] %s27_s24 }
  0x15   :  { %p1730_p9 = scmp.lt.u32.totalorder %s1726_s27, %s2293_s1 }
  0x17   :  { %p1732_p10 = pnand %p1730_p9, %p1727_p8 }
  0x19   :  { %1735 = shalt.err (!%p1732_p10)
}
  0x1a   :  { %s1736_s4 = scalar_lea.vmem %s28_s24, 4096  ;;  %p1741_p12 = scmp.lt.s32.totalorder %s28_s24, %s28_s24 }
  0x1b   :  { %p1737_p11 = scmp.ne.s32.totalorder %s28_s24, %s1736_s4  ;;  %p1742_p13 = scmp.lt.s32.totalorder %s1736_s4, %s1736_s4 }
  0x1d   :  { %p1743_p0 = por %p1742_p13, %p1741_p12 }
  0x1f   :  { %p1744_p1 = pnand %p1743_p0, %p1737_p11 }
  0x21   :  { %1747 = shalt.err (!%p1744_p1)
}
  0x22   :  { %33 = dma.hbm_to_vmem [thread:$0]  %s2293_s1, 4096, %s28_s24, [#allocation8], %s1777_s19, %s1777_s19, %s1778_s20  }
  0x23   :  { %1770 = dma.done.wait [#allocation5], 4096  }
  0x24   :  { %1771 = vsyncadd [#allocation5], 4294963200 }
  0x25   :  { %1772 = dma.done.wait [#allocation8], 4096  }
  0x26   :  { %1773 = vsyncadd [#allocation8], 4294963200  ;;  %v1780_v0 = vmov 0   ;;  %v1826_v1 = vld [vmem:[#allocation7 + $0x4] ss:$16 sps:$4 sm:$0xff]   ;;  %v1781_v33 = vmov 0.0|0.0  }
  0x27   :  { %290 = vmatprep.mubr.bf16.mxu0 %v1780_v0  ;;  %333 = vmatprep.mubr.bf16.mxu1 %v1780_v0  ;;  %v1828_v2 = vld [vmem:[#allocation7] ss:$16 sps:$4 sm:$0xff]   ;;  %v1831_v3 = vld [vmem:[#allocation7 + $0x24] ss:$16 sps:$4 sm:$0xff]   ;;  %v1834_v4 = vld [vmem:[#allocation7 + $0xc] ss:$16 sps:$4 sm:$0xff]  }
  0x28   :  { %258 = vmatprep.subr.bf16.mxu0 %v1826_v1  ;;  %v1836_v5 = vld [vmem:[#allocation7 + $0x20] ss:$16 sps:$4 sm:$0xff]   ;;  %v1838_v6 = vld [vmem:[#allocation7 + $0x8] ss:$16 sps:$4 sm:$0xff]   ;;  %v1841_v7 = vld [vmem:[#allocation7 + $0x44] ss:$16 sps:$4 sm:$0xff]   ;;  %301 = vmatprep.subr.bf16.mxu1 %v1834_v4 }
  0x29   :  { %259 = vmatpush1.bf16.msra.mxu0 %v1828_v2  ;;  %v1844_v8 = vld [vmem:[#allocation7 + $0x2c] ss:$16 sps:$4 sm:$0xff]   ;;  %302 = vmatpush1.bf16.msra.mxu1 %v1838_v6  ;;  %v1847_v9 = vld [vmem:[#allocation7 + $0x28] ss:$16 sps:$4 sm:$0xff]   ;;  %v1851_v10 = vld [vmem:[#allocation7 + $0x40] ss:$16 sps:$4 sm:$0xff]  }
  0x2a   :  { %260 = vmatprep.subr.bf16.mxu0 %v1831_v3  ;;  %303 = vmatprep.subr.bf16.mxu1 %v1844_v8  ;;  %v1854_v11 = vld [vmem:[#allocation7 + $0x64] ss:$16 sps:$4 sm:$0xff]   ;;  %v1856_v12 = vld [vmem:[#allocation7 + $0x4c] ss:$16 sps:$4 sm:$0xff]   ;;  %v1859_v13 = vld [vmem:[#allocation7 + $0x48] ss:$16 sps:$4 sm:$0xff]  }
  0x2b   :  { %v1863_v14 = vld [vmem:[#allocation7 + $0x60] ss:$16 sps:$4 sm:$0xff]   ;;  %v1865_v15 = vld [vmem:[#allocation7 + $0x6c] ss:$16 sps:$4 sm:$0xff]   ;;  %v1868_v16 = vld [vmem:[#allocation7 + $0x84] ss:$16 sps:$4 sm:$0xff]  }
  0x2c   :  { %v1871_v17 = vld [vmem:[#allocation7 + $0x80] ss:$16 sps:$4 sm:$0xff]   ;;  %v1873_v18 = vld [vmem:[#allocation7 + $0x68] ss:$16 sps:$4 sm:$0xff]   ;;  %v1877_v19 = vld [vmem:[#allocation7 + $0x8c] ss:$16 sps:$4 sm:$0xff]  }
  0x2d   :  { %261 = vmatpush1.bf16.msra.mxu0 %v1836_v5  ;;  %304 = vmatpush1.bf16.msra.mxu1 %v1847_v9  ;;  %v1880_v20 = vld [vmem:[#allocation7 + $0xa4] ss:$16 sps:$4 sm:$0xff]   ;;  %v1883_v21 = vld [vmem:[#allocation7 + $0x88] ss:$16 sps:$4 sm:$0xff]   ;;  %v1887_v22 = vld [vmem:[#allocation7 + $0xa0] ss:$16 sps:$4 sm:$0xff]  }
  0x2e   :  { %262 = vmatprep.subr.bf16.mxu0 %v1841_v7  ;;  %305 = vmatprep.subr.bf16.mxu1 %v1856_v12  ;;  %v1889_v23 = vld [vmem:[#allocation7 + $0xac] ss:$16 sps:$4 sm:$0xff]   ;;  %v1892_v24 = vld [vmem:[#allocation7 + $0xc4] ss:$16 sps:$4 sm:$0xff]   ;;  %v1895_v25 = vld [vmem:[#allocation7 + $0xa8] ss:$16 sps:$4 sm:$0xff]  }
  0x2f   :  { %v1899_v26 = vld [vmem:[#allocation7 + $0xc0] ss:$16 sps:$4 sm:$0xff]   ;;  %v1901_v27 = vld [vmem:[#allocation7 + $0xcc] ss:$16 sps:$4 sm:$0xff]   ;;  %v1904_v28 = vld [vmem:[#allocation7 + $0xe4] ss:$16 sps:$4 sm:$0xff]  }
  0x30   :  { %v1907_v29 = vld [vmem:[#allocation7 + $0xc8] ss:$16 sps:$4 sm:$0xff]   ;;  %v1911_v30 = vld [vmem:[#allocation7 + $0xe0] ss:$16 sps:$4 sm:$0xff]   ;;  %v1913_v31 = vld [vmem:[#allocation7 + $0xec] ss:$16 sps:$4 sm:$0xff]  }
  0x31   :  { %263 = vmatpush1.bf16.msra.mxu0 %v1851_v10  ;;  %306 = vmatpush1.bf16.msra.mxu1 %v1859_v13  ;;  %v1917_v32 = vld [vmem:[#allocation7 + $0xe8] ss:$16 sps:$4 sm:$0xff]   ;;  %v85_v34 = vld [vmem:[#allocation4] sm:$0xff]  ;;  %v87_v35 = vld [vmem:[#allocation4 + $0x10] sm:$0xff]  ;;  %s1782_s1 = smov [#allocation9]  }
  0x32   :  { %264 = vmatprep.subr.bf16.mxu0 %v1854_v11  ;;  %307 = vmatprep.subr.bf16.mxu1 %v1865_v15  ;;  %v89_v36 = vunpack.c.l.bf16 %v85_v34  ;;  %v90_v37 = vunpack.c.h.bf16 %v85_v34  ;;  %v86_v38 = vld [vmem:[#allocation4 + $0x8] sm:$0xff]  ;;  %v93_v39 = vunpack.c.l.bf16 %v87_v35  ;;  %v94_v41 = vunpack.c.h.bf16 %v87_v35  ;;  %v88_v42 = vld [vmem:[#allocation4 + $0x18] sm:$0xff]  ;;  %s1410_s6 = sshll.u32 %s1782_s1, 4  ;;  %s1411_s6 = int_to_ptr.vmem [resolvable:$true] %s1410_s6 }
  0x33   :  { %v91_v45 = vunpack.c.l.bf16 %v86_v38  ;;  %v95_v52 = vunpack.c.l.bf16 %v88_v42  ;;  %v92_v60 = vunpack.c.h.bf16 %v86_v38  ;;  %v96_v63 = vunpack.c.h.bf16 %v88_v42  ;;  %s1748_s7 = scalar_lea.vmem %s1411_s6, 256  ;;  %p1753_p3 = scmp.lt.s32.totalorder %s1411_s6, %s1411_s6 }
  0x34   :  { %p1749_p2 = scmp.ne.s32.totalorder %s1411_s6, %s1748_s7  ;;  %p1754_p4 = scmp.lt.s32.totalorder %s1748_s7, %s1748_s7 }
  0x35   :  { %265 = vmatpush1.bf16.msra.mxu0 %v1863_v14  ;;  %308 = vmatpush1.bf16.msra.mxu1 %v1873_v18 }
  0x36   :  { %266 = vmatprep.subr.bf16.mxu0 %v1868_v16  ;;  %309 = vmatprep.subr.bf16.mxu1 %v1877_v19  ;;  %p1755_p5 = por %p1754_p4, %p1753_p3 }
  0x38   :  { %p1756_p6 = pnand %p1755_p5, %p1749_p2 }
  0x39   :  { %267 = vmatpush1.bf16.msra.mxu0 %v1871_v17  ;;  %310 = vmatpush1.bf16.msra.mxu1 %v1883_v21 }
  0x3a   :  { %268 = vmatprep.subr.bf16.mxu0 %v1880_v20  ;;  %311 = vmatprep.subr.bf16.mxu1 %v1889_v23 }
  0x3d   :  { %269 = vmatpush1.bf16.msra.mxu0 %v1887_v22  ;;  %312 = vmatpush1.bf16.msra.mxu1 %v1895_v25 }
  0x3e   :  { %270 = vmatprep.subr.bf16.mxu0 %v1892_v24  ;;  %313 = vmatprep.subr.bf16.mxu1 %v1901_v27 }
  0x41   :  { %271 = vmatpush1.bf16.msra.mxu0 %v1899_v26  ;;  %314 = vmatpush1.bf16.msra.mxu1 %v1907_v29 }
  0x42   :  { %272 = vmatprep.subr.bf16.mxu0 %v1904_v28  ;;  %315 = vmatprep.subr.bf16.mxu1 %v1913_v31 }
  0x45   :  { %273 = vmatpush1.bf16.msra.mxu0 %v1911_v30  ;;  %316 = vmatpush1.bf16.msra.mxu1 %v1917_v32 }
  0x46   :  { %402 = vmatprep.subr.bf16.mxu0 %v1826_v1  ;;  %445 = vmatprep.subr.bf16.mxu1 %v1834_v4 }
  0x48   :  { %291 = vmatmul.mubr.bf16.vlgmr.msra.gmra.mrb[0].mxu0 %v1781_v33  ;;  %334 = vmatmul.mubr.bf16.vlgmr.msra.gmra.mrb[0].mxu1 %v1781_v33 }
  0x49   :  { %403 = vmatpush1.bf16.msra.mxu0 %v1828_v2  ;;  %434 = vmatprep.mubr.bf16.mxu0 %v1780_v0 }
  0x4a   :  { %404 = vmatprep.subr.bf16.mxu0 %v1831_v3  ;;  %446 = vmatpush1.bf16.msra.mxu1 %v1838_v6 }
  0x4b   :  { %477 = vmatprep.mubr.bf16.mxu1 %v1780_v0  ;;  %447 = vmatprep.subr.bf16.mxu1 %v1844_v8 }
  0x4d   :  { %405 = vmatpush1.bf16.msra.mxu0 %v1836_v5 }
  0x4e   :  { %406 = vmatprep.subr.bf16.mxu0 %v1841_v7  ;;  %448 = vmatpush1.bf16.msra.mxu1 %v1847_v9 }
  0x4f   :  { %449 = vmatprep.subr.bf16.mxu1 %v1856_v12 }
  0x51   :  { %407 = vmatpush1.bf16.msra.mxu0 %v1851_v10 }
  0x52   :  { %408 = vmatprep.subr.bf16.mxu0 %v1854_v11  ;;  %450 = vmatpush1.bf16.msra.mxu1 %v1859_v13 }
  0x53   :  { %451 = vmatprep.subr.bf16.mxu1 %v1865_v15 }
  0x55   :  { %409 = vmatpush1.bf16.msra.mxu0 %v1863_v14 }
  0x56   :  { %410 = vmatprep.subr.bf16.mxu0 %v1868_v16  ;;  %452 = vmatpush1.bf16.msra.mxu1 %v1873_v18 }
  0x57   :  { %453 = vmatprep.subr.bf16.mxu1 %v1877_v19 }
  0x59   :  { %411 = vmatpush1.bf16.msra.mxu0 %v1871_v17 }
  0x5a   :  { %412 = vmatprep.subr.bf16.mxu0 %v1880_v20  ;;  %454 = vmatpush1.bf16.msra.mxu1 %v1883_v21 }
  0x5b   :  { %455 = vmatprep.subr.bf16.mxu1 %v1889_v23 }
  0x5d   :  { %413 = vmatpush1.bf16.msra.mxu0 %v1887_v22 }
  0x5e   :  { %414 = vmatprep.subr.bf16.mxu0 %v1892_v24  ;;  %456 = vmatpush1.bf16.msra.mxu1 %v1895_v25 }
  0x5f   :  { %457 = vmatprep.subr.bf16.mxu1 %v1901_v27 }
  0x61   :  { %415 = vmatpush1.bf16.msra.mxu0 %v1899_v26 }
  0x62   :  { %416 = vmatprep.subr.bf16.mxu0 %v1904_v28  ;;  %458 = vmatpush1.bf16.msra.mxu1 %v1907_v29 }
  0x63   :  { %459 = vmatprep.subr.bf16.mxu1 %v1913_v31 }
  0x65   :  { %417 = vmatpush1.bf16.msra.mxu0 %v1911_v30 }
  0x66   :  { %546 = vmatprep.subr.bf16.mxu0 %v1826_v1  ;;  %460 = vmatpush1.bf16.msra.mxu1 %v1917_v32 }
  0x67   :  { %589 = vmatprep.subr.bf16.mxu1 %v1834_v4 }
 0x11b   :  { %v292_v40 = vpop.f32.mrb[0].mxu0  ;;  %v335_v51 = vpop.f32.mrb[0].mxu1 }
 0x11c   :  { %v344_v43 = vadd.f32 %v292_v40, %v89_v36  ;;  %v294_v44 = vpop.f32.mrb[1].mxu0  ;;  %v337_v55 = vpop.f32.mrb[1].mxu1  ;;  %v346_v57 = vadd.f32 %v335_v51, %v91_v45 }
 0x11d   :  { %v345_v46 = vadd.f32 %v294_v44, %v90_v37  ;;  %v296_v47 = vpop.f32.mrb[2].mxu0  ;;  %v339_v58 = vpop.f32.mrb[2].mxu1  ;;  %v347_v33 = vadd.f32 %v337_v55, %v92_v60 }
 0x11e   :  { %v352_v48 = vmul.f32 0.5, %v344_v43  ;;  %v348_v49 = vadd.f32 %v296_v47, %v93_v39  ;;  %v298_v50 = vpop.f32.mrb[3].mxu0  ;;  %v341_v61 = vpop.f32.mrb[3].mxu1  ;;  %v350_v62 = vadd.f32 %v339_v58, %v95_v52 }
 0x11f   :  { %v360_v53 = vmul.f32 0.5, %v345_v46  ;;  %v349_v54 = vadd.f32 %v298_v50, %v94_v41  ;;  %v351_v34 = vadd.f32 %v341_v61, %v96_v63  ;;  %v370_v35 = vmul.f32 0.5, %v347_v33 }
 0x120   :  { %1512 = vtanh.f32 %v352_v48  ;;  %v353_v56 = vmul.f32 0.5, %v348_v49 }
 0x121   :  { %1514 = vtanh.f32 %v360_v53  ;;  %v361_v59 = vmul.f32 0.5, %v349_v54  ;;  %v371_v37 = vmul.f32 0.5, %v351_v34 }
 0x122   :  { %1516 = vtanh.f32 %v353_v56 }
 0x123   :  { %1518 = vtanh.f32 %v361_v59 }
 0x124   :  { %1520 = vtanh.f32 %v346_v57 }
 0x125   :  { %1522 = vtanh.f32 %v350_v62 }
 0x126   :  { %1524 = vtanh.f32 %v370_v35 }
 0x127   :  { %1526 = vtanh.f32 %v371_v37  ;;  %v389_v37 = vld [vmem:[#allocation4 + $0x20] sm:$0xff] }
 0x12a   :  { %v1513_v36 = vpop.eup %1512 }
 0x12b   :  { %v1515_v39 = vpop.eup %1514  ;;  %v356_v40 = vadd.f32 1.0, %v1513_v36 }
 0x12c   :  { %v1517_v41 = vpop.eup %1516  ;;  %v364_v43 = vadd.f32 1.0, %v1515_v39  ;;  %v391_v39 = vld [vmem:[#allocation4 + $0x30] sm:$0xff] }
 0x12d   :  { %v1519_v44 = vpop.eup %1518  ;;  %v358_v45 = vmul.f32 0.5, %v356_v40  ;;  %v357_v46 = vadd.f32 1.0, %v1517_v41  ;;  %v393_v40 = vunpack.c.l.bf16 %v389_v37  ;;  %v390_v41 = vld [vmem:[#allocation4 + $0x28] sm:$0xff] }
 0x12e   :  { %v1521_v38 = vpop.eup %1520  ;;  %v366_v47 = vmul.f32 0.5, %v364_v43  ;;  %v365_v48 = vadd.f32 1.0, %v1519_v44  ;;  %v394_v43 = vunpack.c.h.bf16 %v389_v37  ;;  %v397_v44 = vunpack.c.l.bf16 %v391_v39 }
 0x12f   :  { %v359_v42 = vmul.f32 0.5, %v357_v46  ;;  %v380_v49 = vmul.f32 %v1521_v38, %v358_v45  ;;  %v1523_v50 = vpop.eup %1522  ;;  %v398_v38 = vunpack.c.h.bf16 %v391_v39 }
 0x130   :  { %v378_v51 = vmul.f32 0.0, %v366_v47  ;;  %v367_v52 = vmul.f32 0.5, %v365_v48  ;;  %v1525_v57 = vpop.eup %1524  ;;  %v395_v48 = vunpack.c.l.bf16 %v390_v41 }
 0x131   :  { %v381_v53 = vmul.f32 %v1523_v50, %v359_v42  ;;  %v1527_v58 = vpop.eup %1526  ;;  %v374_v59 = vadd.f32 1.0, %v1525_v57  ;;  %v392_v50 = vld [vmem:[#allocation4 + $0x38] sm:$0xff] }
 0x132   :  { %v379_v54 = vmul.f32 0.0, %v367_v52  ;;  %v1958_v55 = vadd.f32 %v380_v49, %v378_v51  ;;  %v375_v60 = vadd.f32 1.0, %v1527_v58  ;;  %v400_v37 = vunpack.c.h.bf16 %v392_v50 }
 0x133   :  { %v376_v62 = vmul.f32 0.5, %v374_v59 }
 0x134   :  { %1528 = vtanh.f32 %v1958_v55  ;;  %v1961_v56 = vadd.f32 %v381_v53, %v379_v54  ;;  %v377_v63 = vmul.f32 0.5, %v375_v60 }
 0x136   :  { %1530 = vtanh.f32 %v1961_v56 }
 0x13e   :  { %v1529_v61 = vpop.eup %1528 }
 0x13f   :  { %v386_v34 = vmul.f32 %v1529_v61, %v376_v62  ;;  %v399_v61 = vunpack.c.l.bf16 %v392_v50 }
 0x140   :  { %v1531_v33 = vpop.eup %1530 }
 0x141   :  { %v387_v35 = vmul.f32 %v1531_v33, %v377_v63 }
 0x143   :  { %v401_v36 = vpack.c.bf16 %v387_v35, %v386_v34  ;;  %v396_v35 = vunpack.c.h.bf16 %v390_v41 }
 0x145   :  { %435 = vmatmul.mubr.bf16.vlgmr.msra.gmra.mrb[4].mxu0 %v401_v36  ;;  %478 = vmatmul.mubr.bf16.vlgmr.msra.gmra.mrb[4].mxu1 %v401_v36 }
 0x146   :  { %547 = vmatpush1.bf16.msra.mxu0 %v1828_v2  ;;  %590 = vmatpush1.bf16.msra.mxu1 %v1838_v6 }
 0x147   :  { %548 = vmatprep.subr.bf16.mxu0 %v1831_v3  ;;  %591 = vmatprep.subr.bf16.mxu1 %v1844_v8 }
 0x148   :  { %578 = vmatprep.mubr.bf16.mxu0 %v1780_v0  ;;  %621 = vmatprep.mubr.bf16.mxu1 %v1780_v0 }
 0x14a   :  { %549 = vmatpush1.bf16.msra.mxu0 %v1836_v5  ;;  %592 = vmatpush1.bf16.msra.mxu1 %v1847_v9 }
 0x14b   :  { %550 = vmatprep.subr.bf16.mxu0 %v1841_v7  ;;  %593 = vmatprep.subr.bf16.mxu1 %v1856_v12 }
 0x14e   :  { %551 = vmatpush1.bf16.msra.mxu0 %v1851_v10  ;;  %594 = vmatpush1.bf16.msra.mxu1 %v1859_v13 }
 0x14f   :  { %552 = vmatprep.subr.bf16.mxu0 %v1854_v11  ;;  %595 = vmatprep.subr.bf16.mxu1 %v1865_v15 }
 0x152   :  { %553 = vmatpush1.bf16.msra.mxu0 %v1863_v14  ;;  %596 = vmatpush1.bf16.msra.mxu1 %v1873_v18 }
 0x153   :  { %554 = vmatprep.subr.bf16.mxu0 %v1868_v16  ;;  %597 = vmatprep.subr.bf16.mxu1 %v1877_v19 }
 0x156   :  { %555 = vmatpush1.bf16.msra.mxu0 %v1871_v17  ;;  %598 = vmatpush1.bf16.msra.mxu1 %v1883_v21 }
 0x157   :  { %556 = vmatprep.subr.bf16.mxu0 %v1880_v20  ;;  %599 = vmatprep.subr.bf16.mxu1 %v1889_v23 }
 0x15a   :  { %557 = vmatpush1.bf16.msra.mxu0 %v1887_v22  ;;  %600 = vmatpush1.bf16.msra.mxu1 %v1895_v25 }
 0x15b   :  { %558 = vmatprep.subr.bf16.mxu0 %v1892_v24  ;;  %601 = vmatprep.subr.bf16.mxu1 %v1901_v27 }
 0x15e   :  { %559 = vmatpush1.bf16.msra.mxu0 %v1899_v26  ;;  %602 = vmatpush1.bf16.msra.mxu1 %v1907_v29 }
 0x15f   :  { %560 = vmatprep.subr.bf16.mxu0 %v1904_v28  ;;  %603 = vmatprep.subr.bf16.mxu1 %v1913_v31 }
 0x162   :  { %561 = vmatpush1.bf16.msra.mxu0 %v1911_v30  ;;  %604 = vmatpush1.bf16.msra.mxu1 %v1917_v32 }
 0x163   :  { %690 = vmatprep.subr.bf16.mxu0 %v1826_v1  ;;  %733 = vmatprep.subr.bf16.mxu1 %v1834_v4 }
 0x218   :  { %v436_v45 = vpop.f32.mrb[4].mxu0  ;;  %v479_v46 = vpop.f32.mrb[4].mxu1 }
 0x219   :  { %v488_v47 = vadd.f32 %v436_v45, %v393_v40  ;;  %v438_v42 = vpop.f32.mrb[5].mxu0  ;;  %v481_v49 = vpop.f32.mrb[5].mxu1  ;;  %v490_v63 = vadd.f32 %v479_v46, %v395_v48 }
 0x21a   :  { %v489_v51 = vadd.f32 %v438_v42, %v394_v43  ;;  %v440_v52 = vpop.f32.mrb[6].mxu0  ;;  %v483_v53 = vpop.f32.mrb[6].mxu1  ;;  %v491_v39 = vadd.f32 %v481_v49, %v396_v35 }
 0x21b   :  { %v496_v54 = vmul.f32 0.5, %v488_v47  ;;  %v492_v57 = vadd.f32 %v440_v52, %v397_v44  ;;  %v442_v58 = vpop.f32.mrb[7].mxu0  ;;  %v485_v59 = vpop.f32.mrb[7].mxu1  ;;  %v494_v36 = vadd.f32 %v483_v53, %v399_v61 }
 0x21c   :  { %v504_v60 = vmul.f32 0.5, %v489_v51  ;;  %v493_v62 = vadd.f32 %v442_v58, %v398_v38  ;;  %v495_v40 = vadd.f32 %v485_v59, %v400_v37  ;;  %v514_v47 = vmul.f32 0.5, %v491_v39 }
 0x21d   :  { %1532 = vtanh.f32 %v496_v54  ;;  %v497_v33 = vmul.f32 0.5, %v492_v57 }
 0x21e   :  { %1534 = vtanh.f32 %v504_v60  ;;  %v505_v34 = vmul.f32 0.5, %v493_v62  ;;  %v515_v38 = vmul.f32 0.5, %v495_v40 }
 0x21f   :  { %1536 = vtanh.f32 %v497_v33 }
 0x220   :  { %1538 = vtanh.f32 %v490_v63 }
 0x221   :  { %1540 = vtanh.f32 %v505_v34 }
 0x222   :  { %1542 = vtanh.f32 %v494_v36 }
 0x223   :  { %1544 = vtanh.f32 %v514_v47  ;;  %v535_v47 = vld [vmem:[#allocation4 + $0x50] sm:$0xff] }
 0x224   :  { %1546 = vtanh.f32 %v515_v38  ;;  %v534_v38 = vld [vmem:[#allocation4 + $0x48] sm:$0xff] }
 0x227   :  { %v1533_v43 = vpop.eup %1532 }
 0x228   :  { %v1535_v44 = vpop.eup %1534  ;;  %v500_v45 = vadd.f32 1.0, %v1533_v43 }
 0x229   :  { %v508_v42 = vadd.f32 1.0, %v1535_v44  ;;  %v1537_v51 = vpop.eup %1536 }
 0x22a   :  { %v502_v46 = vmul.f32 0.5, %v500_v45  ;;  %v1539_v48 = vpop.eup %1538  ;;  %v501_v54 = vadd.f32 1.0, %v1537_v51 }
 0x22b   :  { %v510_v52 = vmul.f32 0.5, %v508_v42  ;;  %v1541_v41 = vpop.eup %1540 }
 0x22c   :  { %v524_v57 = vmul.f32 %v1539_v48, %v502_v46  ;;  %v503_v53 = vmul.f32 0.5, %v501_v54  ;;  %v509_v49 = vadd.f32 1.0, %v1541_v41  ;;  %v1543_v58 = vpop.eup %1542  ;;  %v541_v46 = vunpack.c.l.bf16 %v535_v47 }
 0x22d   :  { %v522_v50 = vmul.f32 %v510_v52, %v1958_v55  ;;  %v1545_v33 = vpop.eup %1544  ;;  %v542_v54 = vunpack.c.h.bf16 %v535_v47 }
 0x22e   :  { %v511_v60 = vmul.f32 0.5, %v509_v49  ;;  %v525_v61 = vmul.f32 %v1543_v58, %v503_v53  ;;  %v1547_v34 = vpop.eup %1546  ;;  %v518_v35 = vadd.f32 1.0, %v1545_v33  ;;  %v536_v49 = vld [vmem:[#allocation4 + $0x58] sm:$0xff] }
 0x22f   :  { %v1999_v59 = vadd.f32 %v524_v57, %v522_v50  ;;  %v519_v55 = vadd.f32 1.0, %v1547_v34  ;;  %v539_v57 = vunpack.c.l.bf16 %v534_v38 }
 0x230   :  { %v523_v62 = vmul.f32 %v511_v60, %v1961_v56  ;;  %v520_v37 = vmul.f32 0.5, %v518_v35  ;;  %v533_v56 = vld [vmem:[#allocation4 + $0x40] sm:$0xff] }
 0x231   :  { %1548 = vtanh.f32 %v1999_v59  ;;  %v521_v39 = vmul.f32 0.5, %v519_v55  ;;  %v537_v42 = vunpack.c.l.bf16 %v533_v56  ;;  %v538_v51 = vunpack.c.h.bf16 %v533_v56 }
 0x232   :  { %v2003_v63 = vadd.f32 %v525_v61, %v523_v62  ;;  %v544_v56 = vunpack.c.h.bf16 %v536_v49 }
 0x234   :  { %1550 = vtanh.f32 %v2003_v63 }
 0x23b   :  { %v1549_v36 = vpop.eup %1548 }
 0x23c   :  { %v530_v43 = vmul.f32 %v1549_v36, %v520_v37  ;;  %v543_v36 = vunpack.c.l.bf16 %v536_v49 }
 0x23e   :  { %v1551_v40 = vpop.eup %1550 }
 0x23f   :  { %v531_v44 = vmul.f32 %v1551_v40, %v521_v39 }
 0x241   :  { %v545_v45 = vpack.c.bf16 %v531_v44, %v530_v43  ;;  %v540_v44 = vunpack.c.h.bf16 %v534_v38 }
 0x243   :  { %579 = vmatmul.mubr.bf16.vlgmr.msra.gmra.mrb[8].mxu0 %v545_v45  ;;  %622 = vmatmul.mubr.bf16.vlgmr.msra.gmra.mrb[8].mxu1 %v545_v45 }
 0x244   :  { %691 = vmatpush1.bf16.msra.mxu0 %v1828_v2  ;;  %734 = vmatpush1.bf16.msra.mxu1 %v1838_v6 }
 0x245   :  { %692 = vmatprep.subr.bf16.mxu0 %v1831_v3  ;;  %735 = vmatprep.subr.bf16.mxu1 %v1844_v8 }
 0x246   :  { %722 = vmatprep.mubr.bf16.mxu0 %v1780_v0  ;;  %765 = vmatprep.mubr.bf16.mxu1 %v1780_v0 }
 0x248   :  { %693 = vmatpush1.bf16.msra.mxu0 %v1836_v5  ;;  %736 = vmatpush1.bf16.msra.mxu1 %v1847_v9 }
 0x249   :  { %694 = vmatprep.subr.bf16.mxu0 %v1841_v7  ;;  %737 = vmatprep.subr.bf16.mxu1 %v1856_v12 }
 0x24c   :  { %695 = vmatpush1.bf16.msra.mxu0 %v1851_v10  ;;  %738 = vmatpush1.bf16.msra.mxu1 %v1859_v13 }
 0x24d   :  { %696 = vmatprep.subr.bf16.mxu0 %v1854_v11  ;;  %739 = vmatprep.subr.bf16.mxu1 %v1865_v15 }
 0x250   :  { %697 = vmatpush1.bf16.msra.mxu0 %v1863_v14  ;;  %740 = vmatpush1.bf16.msra.mxu1 %v1873_v18 }
 0x251   :  { %698 = vmatprep.subr.bf16.mxu0 %v1868_v16  ;;  %741 = vmatprep.subr.bf16.mxu1 %v1877_v19 }
 0x254   :  { %699 = vmatpush1.bf16.msra.mxu0 %v1871_v17  ;;  %742 = vmatpush1.bf16.msra.mxu1 %v1883_v21 }
 0x255   :  { %700 = vmatprep.subr.bf16.mxu0 %v1880_v20  ;;  %743 = vmatprep.subr.bf16.mxu1 %v1889_v23 }
 0x258   :  { %701 = vmatpush1.bf16.msra.mxu0 %v1887_v22  ;;  %744 = vmatpush1.bf16.msra.mxu1 %v1895_v25 }
 0x259   :  { %702 = vmatprep.subr.bf16.mxu0 %v1892_v24  ;;  %745 = vmatprep.subr.bf16.mxu1 %v1901_v27 }
 0x25c   :  { %703 = vmatpush1.bf16.msra.mxu0 %v1899_v26  ;;  %746 = vmatpush1.bf16.msra.mxu1 %v1907_v29 }
 0x25d   :  { %704 = vmatprep.subr.bf16.mxu0 %v1904_v28  ;;  %747 = vmatprep.subr.bf16.mxu1 %v1913_v31 }
 0x260   :  { %705 = vmatpush1.bf16.msra.mxu0 %v1911_v30  ;;  %748 = vmatpush1.bf16.msra.mxu1 %v1917_v32 }
 0x261   :  { %834 = vmatprep.subr.bf16.mxu0 %v1826_v1  ;;  %877 = vmatprep.subr.bf16.mxu1 %v1834_v4 }
 0x316   :  { %v580_v48 = vpop.f32.mrb[8].mxu0  ;;  %v623_v52 = vpop.f32.mrb[8].mxu1 }
 0x317   :  { %v632_v41 = vadd.f32 %v580_v48, %v537_v42  ;;  %v582_v50 = vpop.f32.mrb[9].mxu0  ;;  %v625_v53 = vpop.f32.mrb[9].mxu1  ;;  %v634_v39 = vadd.f32 %v623_v52, %v539_v57 }
 0x318   :  { %v633_v58 = vadd.f32 %v582_v50, %v538_v51  ;;  %v584_v60 = vpop.f32.mrb[10].mxu0  ;;  %v627_v61 = vpop.f32.mrb[10].mxu1  ;;  %v635_v47 = vadd.f32 %v625_v53, %v540_v44 }
 0x319   :  { %v640_v62 = vmul.f32 0.5, %v632_v41  ;;  %v636_v33 = vadd.f32 %v584_v60, %v541_v46  ;;  %v586_v34 = vpop.f32.mrb[11].mxu0  ;;  %v629_v35 = vpop.f32.mrb[11].mxu1  ;;  %v638_v45 = vadd.f32 %v627_v61, %v543_v36 }
 0x31a   :  { %v648_v55 = vmul.f32 0.5, %v633_v58  ;;  %v637_v37 = vadd.f32 %v586_v34, %v542_v54  ;;  %v639_v42 = vadd.f32 %v629_v35, %v544_v56  ;;  %v658_v41 = vmul.f32 0.5, %v635_v47 }
 0x31b   :  { %1552 = vtanh.f32 %v640_v62  ;;  %v641_v40 = vmul.f32 0.5, %v636_v33 }
 0x31c   :  { %1554 = vtanh.f32 %v648_v55  ;;  %v649_v43 = vmul.f32 0.5, %v637_v37  ;;  %v659_v54 = vmul.f32 0.5, %v639_v42 }
 0x31d   :  { %1556 = vtanh.f32 %v641_v40 }
 0x31e   :  { %1558 = vtanh.f32 %v634_v39 }
 0x31f   :  { %1560 = vtanh.f32 %v649_v43 }
 0x320   :  { %1562 = vtanh.f32 %v638_v45 }
 0x321   :  { %1564 = vtanh.f32 %v658_v41 }
 0x322   :  { %1566 = vtanh.f32 %v659_v54 }
 0x325   :  { %v1553_v51 = vpop.eup %1552 }
 0x326   :  { %v1555_v46 = vpop.eup %1554  ;;  %v644_v48 = vadd.f32 1.0, %v1553_v51 }
 0x327   :  { %v652_v50 = vadd.f32 1.0, %v1555_v46  ;;  %v1557_v58 = vpop.eup %1556 }
 0x328   :  { %v646_v52 = vmul.f32 0.5, %v644_v48  ;;  %v1559_v57 = vpop.eup %1558  ;;  %v645_v62 = vadd.f32 1.0, %v1557_v58 }
 0x329   :  { %v654_v60 = vmul.f32 0.5, %v652_v50  ;;  %v1561_v38 = vpop.eup %1560 }
 0x32a   :  { %v668_v33 = vmul.f32 %v1559_v57, %v646_v52  ;;  %v647_v61 = vmul.f32 0.5, %v645_v62  ;;  %v653_v53 = vadd.f32 1.0, %v1561_v38  ;;  %v1563_v34 = vpop.eup %1562 }
 0x32b   :  { %v666_v49 = vmul.f32 %v654_v60, %v1999_v59  ;;  %v1565_v40 = vpop.eup %1564 }
 0x32c   :  { %v655_v55 = vmul.f32 0.5, %v653_v53  ;;  %v669_v36 = vmul.f32 %v1563_v34, %v647_v61  ;;  %v1567_v43 = vpop.eup %1566  ;;  %v662_v44 = vadd.f32 1.0, %v1565_v40 }
 0x32d   :  { %v2041_v35 = vadd.f32 %v668_v33, %v666_v49  ;;  %v663_v59 = vadd.f32 1.0, %v1567_v43 }
 0x32e   :  { %v667_v37 = vmul.f32 %v655_v55, %v2003_v63  ;;  %v664_v56 = vmul.f32 0.5, %v662_v44 }
 0x32f   :  { %1568 = vtanh.f32 %v2041_v35  ;;  %v665_v47 = vmul.f32 0.5, %v663_v59 }
 0x330   :  { %v2045_v39 = vadd.f32 %v669_v36, %v667_v37 }
 0x332   :  { %1570 = vtanh.f32 %v2045_v39 }
 0x339   :  { %v1569_v45 = vpop.eup %1568 }
 0x33a   :  { %v674_v51 = vmul.f32 %v1569_v45, %v664_v56 }
 0x33c   :  { %v1571_v42 = vpop.eup %1570 }
 0x33d   :  { %v675_v46 = vmul.f32 %v1571_v42, %v665_v47 }
 0x33f   :  { %v689_v48 = vpack.c.bf16 %v675_v46, %v674_v51 }
 0x341   :  { %723 = vmatmul.mubr.bf16.vlgmr.msra.gmra.mrb[12].mxu0 %v689_v48  ;;  %766 = vmatmul.mubr.bf16.vlgmr.msra.gmra.mrb[12].mxu1 %v689_v48 }
 0x342   :  { %835 = vmatpush1.bf16.msra.mxu0 %v1828_v2  ;;  %878 = vmatpush1.bf16.msra.mxu1 %v1838_v6  ;;  %v677_v2 = vld [vmem:[#allocation4 + $0x60] sm:$0xff]  ;;  %v678_v6 = vld [vmem:[#allocation4 + $0x68] sm:$0xff] }
 0x343   :  { %836 = vmatprep.subr.bf16.mxu0 %v1831_v3  ;;  %879 = vmatprep.subr.bf16.mxu1 %v1844_v8  ;;  %v679_v3 = vld [vmem:[#allocation4 + $0x70] sm:$0xff]  ;;  %v684_v33 = vunpack.c.h.bf16 %v678_v6 }
 0x344   :  { %866 = vmatprep.mubr.bf16.mxu0 %v1780_v0  ;;  %909 = vmatprep.mubr.bf16.mxu1 %v1780_v0  ;;  %v685_v8 = vunpack.c.l.bf16 %v679_v3 }
 0x346   :  { %837 = vmatpush1.bf16.msra.mxu0 %v1836_v5  ;;  %880 = vmatpush1.bf16.msra.mxu1 %v1847_v9  ;;  %v681_v5 = vunpack.c.l.bf16 %v677_v2 }
 0x347   :  { %838 = vmatprep.subr.bf16.mxu0 %v1841_v7  ;;  %881 = vmatprep.subr.bf16.mxu1 %v1856_v12  ;;  %v682_v7 = vunpack.c.h.bf16 %v677_v2 }
 0x34a   :  { %839 = vmatpush1.bf16.msra.mxu0 %v1851_v10  ;;  %882 = vmatpush1.bf16.msra.mxu1 %v1859_v13  ;;  %v683_v13 = vunpack.c.l.bf16 %v678_v6 }
 0x34b   :  { %840 = vmatprep.subr.bf16.mxu0 %v1854_v11  ;;  %883 = vmatprep.subr.bf16.mxu1 %v1865_v15  ;;  %v686_v11 = vunpack.c.h.bf16 %v679_v3 }
 0x34e   :  { %841 = vmatpush1.bf16.msra.mxu0 %v1863_v14  ;;  %884 = vmatpush1.bf16.msra.mxu1 %v1873_v18 }
 0x34f   :  { %842 = vmatprep.subr.bf16.mxu0 %v1868_v16  ;;  %885 = vmatprep.subr.bf16.mxu1 %v1877_v19  ;;  %v680_v16 = vld [vmem:[#allocation4 + $0x78] sm:$0xff] }
 0x350   :  { %v687_v52 = vunpack.c.l.bf16 %v680_v16  ;;  %v688_v61 = vunpack.c.h.bf16 %v680_v16 }
 0x352   :  { %843 = vmatpush1.bf16.msra.mxu0 %v1871_v17  ;;  %886 = vmatpush1.bf16.msra.mxu1 %v1883_v21 }
 0x353   :  { %844 = vmatprep.subr.bf16.mxu0 %v1880_v20  ;;  %887 = vmatprep.subr.bf16.mxu1 %v1889_v23 }
 0x356   :  { %845 = vmatpush1.bf16.msra.mxu0 %v1887_v22  ;;  %888 = vmatpush1.bf16.msra.mxu1 %v1895_v25 }
 0x357   :  { %846 = vmatprep.subr.bf16.mxu0 %v1892_v24  ;;  %889 = vmatprep.subr.bf16.mxu1 %v1901_v27 }
 0x35a   :  { %847 = vmatpush1.bf16.msra.mxu0 %v1899_v26  ;;  %890 = vmatpush1.bf16.msra.mxu1 %v1907_v29 }
 0x35b   :  { %848 = vmatprep.subr.bf16.mxu0 %v1904_v28  ;;  %891 = vmatprep.subr.bf16.mxu1 %v1913_v31 }
 0x35e   :  { %849 = vmatpush1.bf16.msra.mxu0 %v1911_v30  ;;  %892 = vmatpush1.bf16.msra.mxu1 %v1917_v32 }
 0x35f   :  { %978 = vmatprep.subr.bf16.mxu0 %v1826_v1  ;;  %1021 = vmatprep.subr.bf16.mxu1 %v1834_v4 }
 0x414   :  { %v724_v9 = vpop.f32.mrb[12].mxu0  ;;  %v767_v10 = vpop.f32.mrb[12].mxu1 }
 0x415   :  { %v776_v12 = vadd.f32 %v724_v9, %v681_v5  ;;  %v726_v14 = vpop.f32.mrb[13].mxu0  ;;  %v769_v15 = vpop.f32.mrb[13].mxu1  ;;  %v778_v60 = vadd.f32 %v767_v10, %v683_v13 }
 0x416   :  { %v777_v17 = vadd.f32 %v726_v14, %v682_v7  ;;  %v728_v63 = vpop.f32.mrb[14].mxu0  ;;  %v771_v41 = vpop.f32.mrb[14].mxu1  ;;  %v779_v53 = vadd.f32 %v769_v15, %v684_v33  ;;  %v2122_v33 = vld [vmem:[#allocation7 + $0x64] ss:$16 sps:$4 sm:$0xff]  }
 0x417   :  { %v784_v1 = vmul.f32 0.5, %v776_v12  ;;  %v780_v50 = vadd.f32 %v728_v63, %v685_v8  ;;  %v730_v4 = vpop.f32.mrb[15].mxu0  ;;  %v773_v54 = vpop.f32.mrb[15].mxu1  ;;  %v782_v49 = vadd.f32 %v771_v41, %v687_v52  ;;  %v2107_v52 = vld [vmem:[#allocation7 + $0x28] ss:$16 sps:$4 sm:$0xff]  }
 0x418   :  { %v792_v58 = vmul.f32 0.5, %v777_v17  ;;  %v781_v57 = vadd.f32 %v730_v4, %v686_v11  ;;  %v783_v34 = vadd.f32 %v773_v54, %v688_v61  ;;  %v802_v40 = vmul.f32 0.5, %v779_v53  ;;  %v2096_v4 = vld [vmem:[#allocation7 + $0x24] ss:$16 sps:$4 sm:$0xff]   ;;  %v2099_v54 = vld [vmem:[#allocation7 + $0x2c] ss:$16 sps:$4 sm:$0xff]  }
 0x419   :  { %1572 = vtanh.f32 %v784_v1  ;;  %v785_v62 = vmul.f32 0.5, %v780_v50  ;;  %v2093_v50 = vld [vmem:[#allocation7 + $0x8] ss:$16 sps:$4 sm:$0xff]   ;;  %v2128_v61 = vld [vmem:[#allocation7 + $0x60] ss:$16 sps:$4 sm:$0xff]  }
 0x41a   :  { %1574 = vtanh.f32 %v792_v58  ;;  %v793_v38 = vmul.f32 0.5, %v781_v57  ;;  %v803_v44 = vmul.f32 0.5, %v783_v34  ;;  %v2104_v58 = vld [vmem:[#allocation7 + $0x20] ss:$16 sps:$4 sm:$0xff]   ;;  %v2110_v57 = vld [vmem:[#allocation7 + $0x44] ss:$16 sps:$4 sm:$0xff]  }
 0x41b   :  { %1576 = vtanh.f32 %v785_v62  ;;  %v2116_v62 = vld [vmem:[#allocation7 + $0x40] ss:$16 sps:$4 sm:$0xff]   ;;  %v2132_v53 = vld [vmem:[#allocation7 + $0x84] ss:$16 sps:$4 sm:$0xff]  }
 0x41c   :  { %1578 = vtanh.f32 %v778_v60  ;;  %v2113_v60 = vld [vmem:[#allocation7 + $0x4c] ss:$16 sps:$4 sm:$0xff]   ;;  %v2136_v34 = vld [vmem:[#allocation7 + $0x80] ss:$16 sps:$4 sm:$0xff]  }
 0x41d   :  { %1580 = vtanh.f32 %v793_v38  ;;  %v2119_v38 = vld [vmem:[#allocation7 + $0x48] ss:$16 sps:$4 sm:$0xff]  }
 0x41e   :  { %1582 = vtanh.f32 %v782_v49  ;;  %v2125_v49 = vld [vmem:[#allocation7 + $0x6c] ss:$16 sps:$4 sm:$0xff]  }
 0x41f   :  { %1584 = vtanh.f32 %v802_v40 }
 0x420   :  { %1586 = vtanh.f32 %v803_v44 }
 0x423   :  { %v1573_v55 = vpop.eup %1572 }
 0x424   :  { %v1575_v36 = vpop.eup %1574  ;;  %v788_v37 = vadd.f32 1.0, %v1573_v55  ;;  %v824_v55 = vld [vmem:[#allocation4 + $0x98] sm:$0xff] }
 0x425   :  { %v796_v43 = vadd.f32 1.0, %v1575_v36  ;;  %v1577_v59 = vpop.eup %1576 }
 0x426   :  { %v790_v45 = vmul.f32 0.5, %v788_v37  ;;  %v1579_v56 = vpop.eup %1578  ;;  %v789_v42 = vadd.f32 1.0, %v1577_v59 }
 0x427   :  { %v798_v47 = vmul.f32 0.5, %v796_v43  ;;  %v1581_v51 = vpop.eup %1580 }
 0x428   :  { %v812_v46 = vmul.f32 %v1579_v56, %v790_v45  ;;  %v791_v2 = vmul.f32 0.5, %v789_v42  ;;  %v797_v3 = vadd.f32 1.0, %v1581_v51  ;;  %v1583_v5 = vpop.eup %1582 }
 0x429   :  { %v810_v48 = vmul.f32 %v798_v47, %v2041_v35  ;;  %v1585_v11 = vpop.eup %1584  ;;  %v831_v47 = vunpack.c.l.bf16 %v824_v55 }
 0x42a   :  { %v799_v7 = vmul.f32 0.5, %v797_v3  ;;  %v813_v8 = vmul.f32 %v1583_v5, %v791_v2  ;;  %v1587_v12 = vpop.eup %1586  ;;  %v806_v13 = vadd.f32 1.0, %v1585_v11  ;;  %v832_v5 = vunpack.c.h.bf16 %v824_v55 }
 0x42b   :  { %v2083_v6 = vadd.f32 %v812_v46, %v810_v48  ;;  %v807_v35 = vadd.f32 1.0, %v1587_v12 }
 0x42c   :  { %v811_v9 = vmul.f32 %v799_v7, %v2045_v39  ;;  %v808_v15 = vmul.f32 0.5, %v806_v13  ;;  %v2090_v39 = vld [vmem:[#allocation7] ss:$16 sps:$4 sm:$0xff]  }
 0x42d   :  { %1588 = vtanh.f32 %v2083_v6  ;;  %v809_v16 = vmul.f32 0.5, %v807_v35 }
 0x42e   :  { %v2087_v10 = vadd.f32 %v813_v8, %v811_v9 }
 0x430   :  { %1590 = vtanh.f32 %v2087_v10 }
 0x437   :  { %v1589_v14 = vpop.eup %1588 }
 0x438   :  { %v818_v63 = vmul.f32 %v1589_v14, %v808_v15 }
 0x43a   :  { %v1591_v17 = vpop.eup %1590 }
 0x43b   :  { %v819_v41 = vmul.f32 %v1591_v17, %v809_v16 }
 0x43d   :  { %v833_v1 = vpack.c.bf16 %v819_v41, %v818_v63 }
 0x43f   :  { %867 = vmatmul.mubr.bf16.vlgmr.msra.gmra.mrb[16].mxu0 %v833_v1  ;;  %910 = vmatmul.mubr.bf16.vlgmr.msra.gmra.mrb[16].mxu1 %v833_v1 }
 0x440   :  { %979 = vmatpush1.bf16.msra.mxu0 %v2090_v39  ;;  %1022 = vmatpush1.bf16.msra.mxu1 %v2093_v50 }
 0x441   :  { %980 = vmatprep.subr.bf16.mxu0 %v2096_v4  ;;  %1023 = vmatprep.subr.bf16.mxu1 %v2099_v54 }
 0x442   :  { %1010 = vmatprep.mubr.bf16.mxu0 %v1780_v0  ;;  %1053 = vmatprep.mubr.bf16.mxu1 %v1780_v0 }
 0x444   :  { %981 = vmatpush1.bf16.msra.mxu0 %v2104_v58  ;;  %1024 = vmatpush1.bf16.msra.mxu1 %v2107_v52 }
 0x445   :  { %982 = vmatprep.subr.bf16.mxu0 %v2110_v57  ;;  %1025 = vmatprep.subr.bf16.mxu1 %v2113_v60 }
 0x448   :  { %983 = vmatpush1.bf16.msra.mxu0 %v2116_v62  ;;  %1026 = vmatpush1.bf16.msra.mxu1 %v2119_v38 }
 0x449   :  { %984 = vmatprep.subr.bf16.mxu0 %v2122_v33  ;;  %1027 = vmatprep.subr.bf16.mxu1 %v2125_v49 }
 0x44c   :  { %985 = vmatpush1.bf16.msra.mxu0 %v2128_v61  ;;  %1028 = vmatpush1.bf16.msra.mxu1 %v1873_v18  ;;  %v2152_v18 = vld [vmem:[#allocation7 + $0x4] ss:$16 sps:$4 sm:$0xff]  }
 0x44d   :  { %986 = vmatprep.subr.bf16.mxu0 %v2132_v53  ;;  %1029 = vmatprep.subr.bf16.mxu1 %v1877_v19  ;;  %v2155_v19 = vld [vmem:[#allocation7 + $0xc] ss:$16 sps:$4 sm:$0xff]  }
 0x450   :  { %987 = vmatpush1.bf16.msra.mxu0 %v2136_v34  ;;  %1030 = vmatpush1.bf16.msra.mxu1 %v1883_v21  ;;  %v823_v21 = vld [vmem:[#allocation4 + $0x90] sm:$0xff] }
 0x451   :  { %988 = vmatprep.subr.bf16.mxu0 %v1880_v20  ;;  %1031 = vmatprep.subr.bf16.mxu1 %v1889_v23  ;;  %v821_v20 = vld [vmem:[#allocation4 + $0x80] sm:$0xff]  ;;  %v822_v23 = vld [vmem:[#allocation4 + $0x88] sm:$0xff] }
 0x452   :  { %v828_v2 = vunpack.c.h.bf16 %v822_v23 }
 0x454   :  { %989 = vmatpush1.bf16.msra.mxu0 %v1887_v22  ;;  %1032 = vmatpush1.bf16.msra.mxu1 %v1895_v25  ;;  %v825_v22 = vunpack.c.l.bf16 %v821_v20  ;;  %v829_v25 = vunpack.c.l.bf16 %v823_v21 }
 0x455   :  { %990 = vmatprep.subr.bf16.mxu0 %v1892_v24  ;;  %1033 = vmatprep.subr.bf16.mxu1 %v1901_v27  ;;  %v826_v24 = vunpack.c.h.bf16 %v821_v20 }
 0x458   :  { %991 = vmatpush1.bf16.msra.mxu0 %v1899_v26  ;;  %1034 = vmatpush1.bf16.msra.mxu1 %v1907_v29 }
 0x459   :  { %992 = vmatprep.subr.bf16.mxu0 %v1904_v28  ;;  %1035 = vmatprep.subr.bf16.mxu1 %v1913_v31  ;;  %v830_v28 = vunpack.c.h.bf16 %v823_v21 }
 0x45c   :  { %993 = vmatpush1.bf16.msra.mxu0 %v1911_v30  ;;  %1036 = vmatpush1.bf16.msra.mxu1 %v1917_v32  ;;  %v827_v30 = vunpack.c.l.bf16 %v822_v23 }
 0x45d   :  { %1122 = vmatprep.subr.bf16.mxu0 %v2152_v18  ;;  %1165 = vmatprep.subr.bf16.mxu1 %v2155_v19 }
 0x512   :  { %v868_v26 = vpop.f32.mrb[16].mxu0  ;;  %v911_v27 = vpop.f32.mrb[16].mxu1 }
 0x513   :  { %v920_v29 = vadd.f32 %v868_v26, %v825_v22  ;;  %v870_v31 = vpop.f32.mrb[17].mxu0  ;;  %v913_v32 = vpop.f32.mrb[17].mxu1  ;;  %v922_v51 = vadd.f32 %v911_v27, %v827_v30 }
 0x514   :  { %v921_v36 = vadd.f32 %v870_v31, %v826_v24  ;;  %v872_v37 = vpop.f32.mrb[18].mxu0  ;;  %v915_v40 = vpop.f32.mrb[18].mxu1  ;;  %v923_v7 = vadd.f32 %v913_v32, %v828_v2  ;;  %v2207_v2 = vld [vmem:[#allocation7 + $0xcc] ss:$16 sps:$4 sm:$0xff]  }
 0x515   :  { %v928_v43 = vmul.f32 0.5, %v920_v29  ;;  %v924_v44 = vadd.f32 %v872_v37, %v829_v25  ;;  %v874_v59 = vpop.f32.mrb[19].mxu0  ;;  %v917_v45 = vpop.f32.mrb[19].mxu1  ;;  %v926_v3 = vadd.f32 %v915_v40, %v831_v47  ;;  %v2192_v47 = vld [vmem:[#allocation7 + $0xa4] ss:$16 sps:$4 sm:$0xff]  }
 0x516   :  { %v936_v56 = vmul.f32 0.5, %v921_v36  ;;  %v925_v42 = vadd.f32 %v874_v59, %v830_v28  ;;  %v927_v8 = vadd.f32 %v917_v45, %v832_v5  ;;  %v946_v13 = vmul.f32 0.5, %v923_v7  ;;  %v2185_v45 = vld [vmem:[#allocation7 + $0x8c] ss:$16 sps:$4 sm:$0xff]   ;;  %v2213_v5 = vld [vmem:[#allocation7 + $0xc8] ss:$16 sps:$4 sm:$0xff]  }
 0x517   :  { %1592 = vtanh.f32 %v928_v43  ;;  %v929_v46 = vmul.f32 0.5, %v924_v44  ;;  %v2216_v7 = vld [vmem:[#allocation7 + $0xe4] ss:$16 sps:$4 sm:$0xff]  }
 0x518   :  { %1594 = vtanh.f32 %v936_v56  ;;  %v937_v48 = vmul.f32 0.5, %v925_v42  ;;  %v947_v14 = vmul.f32 0.5, %v927_v8  ;;  %v2189_v56 = vld [vmem:[#allocation7 + $0x88] ss:$16 sps:$4 sm:$0xff]   ;;  %v2195_v42 = vld [vmem:[#allocation7 + $0xac] ss:$16 sps:$4 sm:$0xff]  }
 0x519   :  { %1596 = vtanh.f32 %v929_v46  ;;  %v2201_v46 = vld [vmem:[#allocation7 + $0xa8] ss:$16 sps:$4 sm:$0xff]   ;;  %v2219_v8 = vld [vmem:[#allocation7 + $0xec] ss:$16 sps:$4 sm:$0xff]  }
 0x51a   :  { %1598 = vtanh.f32 %v922_v51  ;;  %v2198_v51 = vld [vmem:[#allocation7 + $0xa0] ss:$16 sps:$4 sm:$0xff]  }
 0x51b   :  { %1600 = vtanh.f32 %v937_v48  ;;  %v2204_v48 = vld [vmem:[#allocation7 + $0xc4] ss:$16 sps:$4 sm:$0xff]  }
 0x51c   :  { %1602 = vtanh.f32 %v926_v3  ;;  %v2210_v3 = vld [vmem:[#allocation7 + $0xc0] ss:$16 sps:$4 sm:$0xff]  }
 0x51d   :  { %1604 = vtanh.f32 %v946_v13  ;;  %v967_v13 = vld [vmem:[#allocation4 + $0xb0] sm:$0xff] }
 0x51e   :  { %1606 = vtanh.f32 %v947_v14  ;;  %v966_v14 = vld [vmem:[#allocation4 + $0xa8] sm:$0xff] }
 0x521   :  { %v1593_v9 = vpop.eup %1592 }
 0x522   :  { %v1595_v11 = vpop.eup %1594  ;;  %v932_v12 = vadd.f32 1.0, %v1593_v9  ;;  %v2222_v9 = vld [vmem:[#allocation7 + $0xe0] ss:$16 sps:$4 sm:$0xff]  }
 0x523   :  { %v940_v35 = vadd.f32 1.0, %v1595_v11  ;;  %v1597_v15 = vpop.eup %1596  ;;  %v2225_v11 = vld [vmem:[#allocation7 + $0xe8] ss:$16 sps:$4 sm:$0xff]  }
 0x524   :  { %v934_v16 = vmul.f32 0.5, %v932_v12  ;;  %v1599_v17 = vpop.eup %1598  ;;  %v933_v41 = vadd.f32 1.0, %v1597_v15  ;;  %v965_v12 = vld [vmem:[#allocation4 + $0xa0] sm:$0xff] }
 0x525   :  { %v942_v63 = vmul.f32 0.5, %v940_v35  ;;  %v1601_v1 = vpop.eup %1600  ;;  %v969_v35 = vunpack.c.l.bf16 %v965_v12  ;;  %v970_v15 = vunpack.c.h.bf16 %v965_v12 }
 0x526   :  { %v956_v20 = vmul.f32 %v1599_v17, %v934_v16  ;;  %v935_v22 = vmul.f32 0.5, %v933_v41  ;;  %v941_v23 = vadd.f32 1.0, %v1601_v1  ;;  %v1603_v24 = vpop.eup %1602  ;;  %v973_v16 = vunpack.c.l.bf16 %v967_v13 }
 0x527   :  { %v954_v21 = vmul.f32 %v942_v63, %v2083_v6  ;;  %v1605_v30 = vpop.eup %1604  ;;  %v974_v41 = vunpack.c.h.bf16 %v967_v13 }
 0x528   :  { %v943_v26 = vmul.f32 0.5, %v941_v23  ;;  %v957_v27 = vmul.f32 %v1603_v24, %v935_v22  ;;  %v1607_v31 = vpop.eup %1606  ;;  %v950_v32 = vadd.f32 1.0, %v1605_v30  ;;  %v968_v23 = vld [vmem:[#allocation4 + $0xb8] sm:$0xff] }
 0x529   :  { %v2159_v25 = vadd.f32 %v956_v20, %v954_v21  ;;  %v951_v6 = vadd.f32 1.0, %v1607_v31  ;;  %v971_v20 = vunpack.c.l.bf16 %v966_v14 }
 0x52a   :  { %v955_v28 = vmul.f32 %v943_v26, %v2087_v10  ;;  %v952_v36 = vmul.f32 0.5, %v950_v32  ;;  %v2181_v10 = vld [vmem:[#allocation7 + $0x68] ss:$16 sps:$4 sm:$0xff]   ;;  %v975_v32 = vunpack.c.l.bf16 %v968_v23 }
 0x52b   :  { %1608 = vtanh.f32 %v2159_v25  ;;  %v953_v37 = vmul.f32 0.5, %v951_v6 }
 0x52c   :  { %v2163_v29 = vadd.f32 %v957_v27, %v955_v28 }
 0x52e   :  { %1610 = vtanh.f32 %v2163_v29 }
 0x535   :  { %v1609_v55 = vpop.eup %1608 }
 0x536   :  { %v962_v43 = vmul.f32 %v1609_v55, %v952_v36 }
 0x538   :  { %v1611_v40 = vpop.eup %1610 }
 0x539   :  { %v963_v44 = vmul.f32 %v1611_v40, %v953_v37  ;;  %v972_v40 = vunpack.c.h.bf16 %v966_v14 }
 0x53b   :  { %v977_v59 = vpack.c.bf16 %v963_v44, %v962_v43  ;;  %v976_v44 = vunpack.c.h.bf16 %v968_v23 }
 0x53d   :  { %1011 = vmatmul.mubr.bf16.vlgmr.msra.gmra.mrb[20].mxu0 %v977_v59  ;;  %1054 = vmatmul.mubr.bf16.vlgmr.msra.gmra.mrb[20].mxu1 %v977_v59 }
 0x53e   :  { %1123 = vmatpush1.bf16.msra.mxu0 %v2090_v39  ;;  %1166 = vmatpush1.bf16.msra.mxu1 %v2093_v50 }
 0x53f   :  { %1124 = vmatprep.subr.bf16.mxu0 %v2096_v4  ;;  %1167 = vmatprep.subr.bf16.mxu1 %v2099_v54 }
 0x540   :  { %1154 = vmatprep.mubr.bf16.mxu0 %v1780_v0  ;;  %1197 = vmatprep.mubr.bf16.mxu1 %v1780_v0 }
 0x542   :  { %1125 = vmatpush1.bf16.msra.mxu0 %v2104_v58  ;;  %1168 = vmatpush1.bf16.msra.mxu1 %v2107_v52 }
 0x543   :  { %1126 = vmatprep.subr.bf16.mxu0 %v2110_v57  ;;  %1169 = vmatprep.subr.bf16.mxu1 %v2113_v60 }
 0x546   :  { %1127 = vmatpush1.bf16.msra.mxu0 %v2116_v62  ;;  %1170 = vmatpush1.bf16.msra.mxu1 %v2119_v38 }
 0x547   :  { %1128 = vmatprep.subr.bf16.mxu0 %v2122_v33  ;;  %1171 = vmatprep.subr.bf16.mxu1 %v2125_v49 }
 0x54a   :  { %1129 = vmatpush1.bf16.msra.mxu0 %v2128_v61  ;;  %1172 = vmatpush1.bf16.msra.mxu1 %v2181_v10 }
 0x54b   :  { %1130 = vmatprep.subr.bf16.mxu0 %v2132_v53  ;;  %1173 = vmatprep.subr.bf16.mxu1 %v2185_v45 }
 0x54e   :  { %1131 = vmatpush1.bf16.msra.mxu0 %v2136_v34  ;;  %1174 = vmatpush1.bf16.msra.mxu1 %v2189_v56 }
 0x54f   :  { %1132 = vmatprep.subr.bf16.mxu0 %v2192_v47  ;;  %1175 = vmatprep.subr.bf16.mxu1 %v2195_v42 }
 0x552   :  { %1133 = vmatpush1.bf16.msra.mxu0 %v2198_v51  ;;  %1176 = vmatpush1.bf16.msra.mxu1 %v2201_v46 }
 0x553   :  { %1134 = vmatprep.subr.bf16.mxu0 %v2204_v48  ;;  %1177 = vmatprep.subr.bf16.mxu1 %v2207_v2 }
 0x556   :  { %1135 = vmatpush1.bf16.msra.mxu0 %v2210_v3  ;;  %1178 = vmatpush1.bf16.msra.mxu1 %v2213_v5 }
 0x557   :  { %1136 = vmatprep.subr.bf16.mxu0 %v2216_v7  ;;  %1179 = vmatprep.subr.bf16.mxu1 %v2219_v8 }
 0x55a   :  { %1137 = vmatpush1.bf16.msra.mxu0 %v2222_v9  ;;  %1180 = vmatpush1.bf16.msra.mxu1 %v2225_v11 }
 0x55b   :  { %1266 = vmatprep.subr.bf16.mxu0 %v2152_v18  ;;  %1309 = vmatprep.subr.bf16.mxu1 %v2155_v19 }
 0x610   :  { %v1012_v17 = vpop.f32.mrb[20].mxu0  ;;  %v1055_v63 = vpop.f32.mrb[20].mxu1 }
 0x611   :  { %v1064_v1 = vadd.f32 %v1012_v17, %v969_v35  ;;  %v1014_v21 = vpop.f32.mrb[21].mxu0  ;;  %v1057_v22 = vpop.f32.mrb[21].mxu1  ;;  %v1066_v55 = vadd.f32 %v1055_v63, %v971_v20 }
 0x612   :  { %v1065_v24 = vadd.f32 %v1014_v21, %v970_v15  ;;  %v1016_v26 = vpop.f32.mrb[22].mxu0  ;;  %v1059_v27 = vpop.f32.mrb[22].mxu1  ;;  %v1067_v59 = vadd.f32 %v1057_v22, %v972_v40 }
 0x613   :  { %v1072_v18 = vmul.f32 0.5, %v1064_v1  ;;  %v1068_v28 = vadd.f32 %v1016_v26, %v973_v16  ;;  %v1018_v19 = vpop.f32.mrb[23].mxu0  ;;  %v1061_v30 = vpop.f32.mrb[23].mxu1  ;;  %v1070_v43 = vadd.f32 %v1059_v27, %v975_v32 }
 0x614   :  { %v1080_v31 = vmul.f32 0.5, %v1065_v24  ;;  %v1069_v6 = vadd.f32 %v1018_v19, %v974_v41  ;;  %v1071_v12 = vadd.f32 %v1061_v30, %v976_v44  ;;  %v1090_v16 = vmul.f32 0.5, %v1067_v59 }
 0x615   :  { %1612 = vtanh.f32 %v1072_v18  ;;  %v1073_v36 = vmul.f32 0.5, %v1068_v28 }
 0x616   :  { %1614 = vtanh.f32 %v1080_v31  ;;  %v1081_v37 = vmul.f32 0.5, %v1069_v6  ;;  %v1091_v41 = vmul.f32 0.5, %v1071_v12 }
 0x617   :  { %1616 = vtanh.f32 %v1073_v36 }
 0x618   :  { %1618 = vtanh.f32 %v1066_v55 }
 0x619   :  { %1620 = vtanh.f32 %v1081_v37 }
 0x61a   :  { %1622 = vtanh.f32 %v1070_v43 }
 0x61b   :  { %1624 = vtanh.f32 %v1090_v16 }
 0x61c   :  { %1626 = vtanh.f32 %v1091_v41 }
 0x61f   :  { %v1613_v13 = vpop.eup %1612 }
 0x620   :  { %v1615_v35 = vpop.eup %1614  ;;  %v1076_v15 = vadd.f32 1.0, %v1613_v13 }
 0x621   :  { %v1084_v17 = vadd.f32 1.0, %v1615_v35  ;;  %v1617_v1 = vpop.eup %1616 }
 0x622   :  { %v1078_v63 = vmul.f32 0.5, %v1076_v15  ;;  %v1619_v20 = vpop.eup %1618  ;;  %v1077_v24 = vadd.f32 1.0, %v1617_v1 }
 0x623   :  { %v1086_v21 = vmul.f32 0.5, %v1084_v17  ;;  %v1621_v14 = vpop.eup %1620 }
 0x624   :  { %v1100_v26 = vmul.f32 %v1619_v20, %v1078_v63  ;;  %v1079_v27 = vmul.f32 0.5, %v1077_v24  ;;  %v1085_v22 = vadd.f32 1.0, %v1621_v14  ;;  %v1623_v18 = vpop.eup %1622 }
 0x625   :  { %v1098_v23 = vmul.f32 %v1086_v21, %v2159_v25  ;;  %v1625_v6 = vpop.eup %1624 }
 0x626   :  { %v1087_v19 = vmul.f32 0.5, %v1085_v22  ;;  %v1101_v30 = vmul.f32 %v1623_v18, %v1079_v27  ;;  %v1627_v55 = vpop.eup %1626  ;;  %v1094_v36 = vadd.f32 1.0, %v1625_v6 }
 0x627   :  { %v2231_v28 = vadd.f32 %v1100_v26, %v1098_v23  ;;  %v1095_v25 = vadd.f32 1.0, %v1627_v55 }
 0x628   :  { %v1099_v31 = vmul.f32 %v1087_v19, %v2163_v29  ;;  %v1096_v40 = vmul.f32 0.5, %v1094_v36 }
 0x629   :  { %1628 = vtanh.f32 %v2231_v28  ;;  %v1097_v43 = vmul.f32 0.5, %v1095_v25 }
 0x62a   :  { %v2235_v32 = vadd.f32 %v1101_v30, %v1099_v31 }
 0x62c   :  { %1630 = vtanh.f32 %v2235_v32 }
 0x633   :  { %v1629_v37 = vpop.eup %1628 }
 0x634   :  { %v1106_v59 = vmul.f32 %v1629_v37, %v1096_v40 }
 0x636   :  { %v1631_v44 = vpop.eup %1630 }
 0x637   :  { %v1107_v12 = vmul.f32 %v1631_v44, %v1097_v43 }
 0x639   :  { %v1121_v13 = vpack.c.bf16 %v1107_v12, %v1106_v59 }
 0x63b   :  { %1155 = vmatmul.mubr.bf16.vlgmr.msra.gmra.mrb[24].mxu0 %v1121_v13  ;;  %1198 = vmatmul.mubr.bf16.vlgmr.msra.gmra.mrb[24].mxu1 %v1121_v13 }
 0x63c   :  { %1267 = vmatpush1.bf16.msra.mxu0 %v2090_v39  ;;  %1310 = vmatpush1.bf16.msra.mxu1 %v2093_v50  ;;  %v1111_v39 = vld [vmem:[#allocation4 + $0xd0] sm:$0xff] }
 0x63d   :  { %1268 = vmatprep.subr.bf16.mxu0 %v2096_v4  ;;  %1311 = vmatprep.subr.bf16.mxu1 %v2099_v54  ;;  %v1110_v4 = vld [vmem:[#allocation4 + $0xc8] sm:$0xff] }
 0x63e   :  { %1298 = vmatprep.mubr.bf16.mxu0 %v1780_v0  ;;  %1341 = vmatprep.mubr.bf16.mxu1 %v1780_v0  ;;  %v1109_v0 = vld [vmem:[#allocation4 + $0xc0] sm:$0xff] }
 0x63f   :  { %v1113_v50 = vunpack.c.l.bf16 %v1109_v0  ;;  %v1114_v54 = vunpack.c.h.bf16 %v1109_v0 }
 0x640   :  { %1269 = vmatpush1.bf16.msra.mxu0 %v2104_v58  ;;  %1312 = vmatpush1.bf16.msra.mxu1 %v2107_v52  ;;  %v1117_v58 = vunpack.c.l.bf16 %v1111_v39 }
 0x641   :  { %1270 = vmatprep.subr.bf16.mxu0 %v2110_v57  ;;  %1313 = vmatprep.subr.bf16.mxu1 %v2113_v60  ;;  %v1118_v60 = vunpack.c.h.bf16 %v1111_v39 }
 0x644   :  { %1271 = vmatpush1.bf16.msra.mxu0 %v2116_v62  ;;  %1314 = vmatpush1.bf16.msra.mxu1 %v2119_v38  ;;  %v1115_v38 = vunpack.c.l.bf16 %v1110_v4 }
 0x645   :  { %1272 = vmatprep.subr.bf16.mxu0 %v2122_v33  ;;  %1315 = vmatprep.subr.bf16.mxu1 %v2125_v49 }
 0x648   :  { %1273 = vmatpush1.bf16.msra.mxu0 %v2128_v61  ;;  %1316 = vmatpush1.bf16.msra.mxu1 %v2181_v10  ;;  %v1112_v61 = vld [vmem:[#allocation4 + $0xd8] sm:$0xff] }
 0x649   :  { %1274 = vmatprep.subr.bf16.mxu0 %v2132_v53  ;;  %1317 = vmatprep.subr.bf16.mxu1 %v2185_v45 }
 0x64c   :  { %1275 = vmatpush1.bf16.msra.mxu0 %v2136_v34  ;;  %1318 = vmatpush1.bf16.msra.mxu1 %v2189_v56 }
 0x64d   :  { %1276 = vmatprep.subr.bf16.mxu0 %v2192_v47  ;;  %1319 = vmatprep.subr.bf16.mxu1 %v2195_v42 }
 0x650   :  { %1277 = vmatpush1.bf16.msra.mxu0 %v2198_v51  ;;  %1320 = vmatpush1.bf16.msra.mxu1 %v2201_v46  ;;  %v1119_v51 = vunpack.c.l.bf16 %v1112_v61 }
 0x651   :  { %1278 = vmatprep.subr.bf16.mxu0 %v2204_v48  ;;  %1321 = vmatprep.subr.bf16.mxu1 %v2207_v2 }
 0x654   :  { %1279 = vmatpush1.bf16.msra.mxu0 %v2210_v3  ;;  %1322 = vmatpush1.bf16.msra.mxu1 %v2213_v5  ;;  %v1116_v5 = vunpack.c.h.bf16 %v1110_v4 }
 0x655   :  { %1280 = vmatprep.subr.bf16.mxu0 %v2216_v7  ;;  %1323 = vmatprep.subr.bf16.mxu1 %v2219_v8  ;;  %v1120_v8 = vunpack.c.h.bf16 %v1112_v61 }
 0x658   :  { %1281 = vmatpush1.bf16.msra.mxu0 %v2222_v9  ;;  %1324 = vmatpush1.bf16.msra.mxu1 %v2225_v11 }
 0x70e   :  { %v1156_v52 = vpop.f32.mrb[24].mxu0  ;;  %v1199_v57 = vpop.f32.mrb[24].mxu1 }
 0x70f   :  { %v1208_v62 = vadd.f32 %v1156_v52, %v1113_v50  ;;  %v1158_v33 = vpop.f32.mrb[25].mxu0  ;;  %v1201_v49 = vpop.f32.mrb[25].mxu1  ;;  %v1210_v48 = vadd.f32 %v1199_v57, %v1115_v38  ;;  %v1255_v50 = vld [vmem:[#allocation4 + $0xf0] sm:$0xff] }
 0x710   :  { %v1209_v53 = vadd.f32 %v1158_v33, %v1114_v54  ;;  %v1160_v34 = vpop.f32.mrb[26].mxu0  ;;  %v1203_v29 = vpop.f32.mrb[26].mxu1  ;;  %v1211_v9 = vadd.f32 %v1201_v49, %v1116_v5  ;;  %v1254_v54 = vld [vmem:[#allocation4 + $0xe8] sm:$0xff]  ;;  %v1261_v52 = vunpack.c.l.bf16 %v1255_v50 }
 0x711   :  { %v1216_v10 = vmul.f32 0.5, %v1208_v62  ;;  %v1212_v45 = vadd.f32 %v1160_v34, %v1117_v58  ;;  %v1162_v56 = vpop.f32.mrb[27].mxu0  ;;  %v1205_v47 = vpop.f32.mrb[27].mxu1  ;;  %v1214_v7 = vadd.f32 %v1203_v29, %v1119_v51  ;;  %v1262_v62 = vunpack.c.h.bf16 %v1255_v50 }
 0x712   :  { %v1224_v42 = vmul.f32 0.5, %v1209_v53  ;;  %v1213_v46 = vadd.f32 %v1162_v56, %v1118_v60  ;;  %v1215_v11 = vadd.f32 %v1205_v47, %v1120_v8  ;;  %v1234_v17 = vmul.f32 0.5, %v1211_v9  ;;  %v1256_v53 = vld [vmem:[#allocation4 + $0xf8] sm:$0xff] }
 0x713   :  { %1632 = vtanh.f32 %v1216_v10  ;;  %v1217_v2 = vmul.f32 0.5, %v1212_v45  ;;  %v1259_v33 = vunpack.c.l.bf16 %v1254_v54 }
 0x714   :  { %1634 = vtanh.f32 %v1224_v42  ;;  %v1225_v3 = vmul.f32 0.5, %v1213_v46  ;;  %v1235_v1 = vmul.f32 0.5, %v1215_v11  ;;  %v1263_v46 = vunpack.c.l.bf16 %v1256_v53 }
 0x715   :  { %1636 = vtanh.f32 %v1217_v2  ;;  %v1264_v11 = vunpack.c.h.bf16 %v1256_v53 }
 0x716   :  { %1638 = vtanh.f32 %v1210_v48 }
 0x717   :  { %1640 = vtanh.f32 %v1225_v3  ;;  %v1260_v3 = vunpack.c.h.bf16 %v1254_v54 }
 0x718   :  { %1642 = vtanh.f32 %v1214_v7 }
 0x719   :  { %1644 = vtanh.f32 %v1234_v17 }
 0x71a   :  { %1646 = vtanh.f32 %v1235_v1 }
 0x71d   :  { %v1633_v35 = vpop.eup %1632 }
 0x71e   :  { %v1635_v15 = vpop.eup %1634  ;;  %v1220_v16 = vadd.f32 1.0, %v1633_v35 }
 0x71f   :  { %v1228_v41 = vadd.f32 1.0, %v1635_v15  ;;  %v1637_v63 = vpop.eup %1636 }
 0x720   :  { %v1222_v20 = vmul.f32 0.5, %v1220_v16  ;;  %v1639_v21 = vpop.eup %1638  ;;  %v1221_v14 = vadd.f32 1.0, %v1637_v63 }
 0x721   :  { %v1230_v24 = vmul.f32 0.5, %v1228_v41  ;;  %v1641_v26 = vpop.eup %1640 }
 0x722   :  { %v1244_v23 = vmul.f32 %v1639_v21, %v1222_v20  ;;  %v1223_v22 = vmul.f32 0.5, %v1221_v14  ;;  %v1229_v18 = vadd.f32 1.0, %v1641_v26  ;;  %v1643_v19 = vpop.eup %1642 }
 0x723   :  { %v1242_v27 = vmul.f32 %v1230_v24, %v2231_v28  ;;  %v1645_v25 = vpop.eup %1644 }
 0x724   :  { %v1231_v31 = vmul.f32 0.5, %v1229_v18  ;;  %v1245_v6 = vmul.f32 %v1643_v19, %v1223_v22  ;;  %v1647_v37 = vpop.eup %1646  ;;  %v1238_v40 = vadd.f32 1.0, %v1645_v25 }
 0x725   :  { %v2271_v30 = vadd.f32 %v1244_v23, %v1242_v27  ;;  %v1239_v28 = vadd.f32 1.0, %v1647_v37 }
 0x726   :  { %v1243_v55 = vmul.f32 %v1231_v31, %v2235_v32  ;;  %v1240_v44 = vmul.f32 0.5, %v1238_v40  ;;  %v1253_v32 = vld [vmem:[#allocation4 + $0xe0] sm:$0xff] }
 0x727   :  { %1648 = vtanh.f32 %v2271_v30  ;;  %v1241_v59 = vmul.f32 0.5, %v1239_v28  ;;  %v1257_v4 = vunpack.c.l.bf16 %v1253_v32  ;;  %v1258_v58 = vunpack.c.h.bf16 %v1253_v32 }
 0x728   :  { %v2275_v36 = vadd.f32 %v1245_v6, %v1243_v55 }
 0x72a   :  { %1650 = vtanh.f32 %v2275_v36 }
 0x731   :  { %v1649_v43 = vpop.eup %1648 }
 0x732   :  { %v1250_v13 = vmul.f32 %v1649_v43, %v1240_v44 }
 0x734   :  { %v1651_v12 = vpop.eup %1650 }
 0x735   :  { %v1251_v0 = vmul.f32 %v1651_v12, %v1241_v59 }
 0x737   :  { %v1265_v39 = vpack.c.bf16 %v1251_v0, %v1250_v13 }
 0x739   :  { %1299 = vmatmul.mubr.bf16.vlgmr.msra.gmra.mrb[28].mxu0 %v1265_v39  ;;  %1342 = vmatmul.mubr.bf16.vlgmr.msra.gmra.mrb[28].mxu1 %v1265_v39 }
 0x80c   :  { %v1300_v57 = vpop.f32.mrb[28].mxu0  ;;  %v1343_v60 = vpop.f32.mrb[28].mxu1 }
 0x80d   :  { %v1352_v38 = vadd.f32 %v1300_v57, %v1257_v4  ;;  %v1302_v49 = vpop.f32.mrb[29].mxu0  ;;  %v1345_v61 = vpop.f32.mrb[29].mxu1  ;;  %v1354_v2 = vadd.f32 %v1343_v60, %v1259_v33 }
 0x80e   :  { %v1353_v34 = vadd.f32 %v1302_v49, %v1258_v58  ;;  %v1304_v29 = vpop.f32.mrb[30].mxu0  ;;  %v1347_v10 = vpop.f32.mrb[30].mxu1  ;;  %v1355_v9 = vadd.f32 %v1345_v61, %v1260_v3 }
 0x80f   :  { %v1360_v45 = vmul.f32 0.5, %v1352_v38  ;;  %v1356_v56 = vadd.f32 %v1304_v29, %v1261_v52  ;;  %v1306_v47 = vpop.f32.mrb[31].mxu0  ;;  %v1349_v42 = vpop.f32.mrb[31].mxu1  ;;  %v1358_v8 = vadd.f32 %v1347_v10, %v1263_v46 }
 0x810   :  { %v1368_v51 = vmul.f32 0.5, %v1353_v34  ;;  %v1357_v48 = vadd.f32 %v1306_v47, %v1262_v62  ;;  %v1378_v35 = vmul.f32 0.5, %v1355_v9  ;;  %v1359_v15 = vadd.f32 %v1349_v42, %v1264_v11 }
 0x811   :  { %1652 = vtanh.f32 %v1360_v45  ;;  %v1361_v5 = vmul.f32 0.5, %v1356_v56 }
 0x812   :  { %1654 = vtanh.f32 %v1368_v51  ;;  %v1369_v7 = vmul.f32 0.5, %v1357_v48  ;;  %v1379_v63 = vmul.f32 0.5, %v1359_v15 }
 0x813   :  { %1656 = vtanh.f32 %v1361_v5 }
 0x814   :  { %1658 = vtanh.f32 %v1354_v2 }
 0x815   :  { %1660 = vtanh.f32 %v1369_v7 }
 0x816   :  { %1662 = vtanh.f32 %v1358_v8 }
 0x817   :  { %1664 = vtanh.f32 %v1378_v35 }
 0x818   :  { %1666 = vtanh.f32 %v1379_v63 }
 0x81b   :  { %v1653_v16 = vpop.eup %1652 }
 0x81c   :  { %v1655_v17 = vpop.eup %1654  ;;  %v1364_v41 = vadd.f32 1.0, %v1653_v16 }
 0x81d   :  { %v1372_v1 = vadd.f32 1.0, %v1655_v17  ;;  %v1657_v20 = vpop.eup %1656 }
 0x81e   :  { %v1366_v21 = vmul.f32 0.5, %v1364_v41  ;;  %v1659_v24 = vpop.eup %1658  ;;  %v1365_v26 = vadd.f32 1.0, %v1657_v20 }
 0x81f   :  { %v1374_v14 = vmul.f32 0.5, %v1372_v1  ;;  %v1661_v23 = vpop.eup %1660 }
 0x820   :  { %v1388_v27 = vmul.f32 %v1659_v24, %v1366_v21  ;;  %v1367_v18 = vmul.f32 0.5, %v1365_v26  ;;  %v1373_v19 = vadd.f32 1.0, %v1661_v23  ;;  %v1663_v31 = vpop.eup %1662 }
 0x821   :  { %v1386_v22 = vmul.f32 %v1374_v14, %v2271_v30  ;;  %v1665_v40 = vpop.eup %1664 }
 0x822   :  { %v1375_v55 = vmul.f32 0.5, %v1373_v19  ;;  %v1389_v25 = vmul.f32 %v1663_v31, %v1367_v18  ;;  %v1382_v43 = vadd.f32 1.0, %v1665_v40  ;;  %v1667_v44 = vpop.eup %1666 }
 0x823   :  { %v1390_v6 = vadd.f32 %v1388_v27, %v1386_v22  ;;  %v1383_v12 = vadd.f32 1.0, %v1667_v44 }
 0x824   :  { %v1387_v37 = vmul.f32 %v1375_v55, %v2275_v36  ;;  %v1384_v59 = vmul.f32 0.5, %v1382_v43 }
 0x825   :  { %1668 = vtanh.f32 %v1390_v6  ;;  %v1385_v30 = vmul.f32 0.5, %v1383_v12 }
 0x826   :  { %v1391_v28 = vadd.f32 %v1389_v25, %v1387_v37 }
 0x828   :  { %1670 = vtanh.f32 %v1391_v28 }
 0x82f   :  { %v1669_v13 = vpop.eup %1668 }
 0x830   :  { %v1394_v0 = vmul.f32 %v1669_v13, %v1384_v59 }
 0x832   :  { %1403 = vst [vmem:[#allocation9] sm:$0xff] %v1394_v0  ;;  %v1671_v39 = vpop.eup %1670 }
 0x833   :  { %v1395_v32 = vmul.f32 %v1671_v39, %v1385_v30 }
 0x835   :  { %1404 = vst [vmem:[#allocation9 + $0x8] sm:$0xff] %v1395_v32 }
 0x836   :  { %1759 = shalt.err (!%p1756_p6)
}
 0x837   :  { %s1760_s10 = scalar_lea.hbm %s2294_s2, 256 }
 0x838   :  { %p1761_p7 = scmp.ne.s32.totalorder %s2294_s2, %s1760_s10  ;;  %p1764_p8 = scmp.lt.u32.totalorder %s1760_s10, %s2294_s2 }
 0x83a   :  { %p1766_p9 = pnand %p1764_p8, %p1761_p7 }
 0x83c   :  { %1769 = shalt.err (!%p1766_p9)
}
 0x83d   :  { %s1783_s15 = smov 128   ;;  %s1784_s16 = smov 8  }
 0x83e   :  { %1416 = dma.vmem_to_hbm [thread:$0]  %s1411_s6, 256, %s2294_s2, [#allocation6], %s1783_s15, %s1783_s15, %s1784_s16  }
 0x83f   :  { %1774 = dma.done.wait [#allocation6], 256  }
 0x840   :  { %1775 = vsyncadd [#allocation6], 4294967040 }
 0x841   :  { %1420 = vsyncpa [#allocation5], 1 }
 0x842   :  { %1421 = vsyncpa [#allocation8], 1 }
 0x843   :  { %1422 = vsyncpa [#allocation6], 1 }

</bundles_post_ra>
